<compile_context>
chip_gen: v5e
topology: v5e:2x2
jax: 0.10.0
libtpu: 0.0.40
codegen_flags: <defaults>
</compile_context>

<pallas_src>
import functools
import math

import jax
import jax.numpy as jnp
from jax.experimental import pallas as pl
from jax.experimental.pallas import tpu as pltpu

NEG_INF = -1e9

# Row layout of the packed bias / LayerNorm operand (rows of a (16, D) f32 array).
_B_QB, _B_VB, _B_OB, _B_LN1G, _B_LN1B = 0, 1, 2, 3, 4
_B_CQB, _B_CVB, _B_COB, _B_LN2G, _B_LN2B = 5, 6, 7, 8, 9
_B_FC2B, _B_LN3G, _B_LN3B = 10, 11, 12
_N_BIAS_ROWS = 13


def _decoder_layer_kernel(
    xq_ref, xkv_ref, enc_ref, cmask_ref,
    # weights (all bf16, pre-transposed to (in, out); q weights pre-scaled by hd^-0.5)
    qw, kw, vw, ow, cqw, ckw, cvw, cow, f1w, f2w,
    # packed small params
    bias_ref,   # (16, D) f32
    f1b_ref,    # (1, F) f32
    out_ref,
    *, num_heads: int, head_dim: int,
):
    H, hd = num_heads, head_dim
    f32, bf16 = jnp.float32, jnp.bfloat16

    xq = xq_ref[0]        # (TQ, D) f32 : query / residual rows for this grid step
    xkv = xkv_ref[0]      # (T,  D) bf16: full target sequence (self-attn K/V)
    enc = enc_ref[0]      # (S,  D) bf16: encoder states
    cmask = cmask_ref[0]  # (1,  S) f32 : additive cross-attn padding mask

    TQ, D = xq.shape
    T = xkv.shape[0]

    bias = bias_ref[...]  # (16, D) f32
    row = lambda i: bias[i:i + 1, :]                       # (1, D)
    f1b = f1b_ref[...]                                     # (1, F)

    def layer_norm(h, g, b):
        mu = jnp.mean(h, axis=-1, keepdims=True)
        var = jnp.mean(jnp.square(h - mu), axis=-1, keepdims=True)
        return (h - mu) * jax.lax.rsqrt(var + 1e-5) * g + b

    def split_heads(x2d):
        # (L, H*hd) f32 -> (H, L, hd) bf16 via static lane-slices (one cast per operand).
        return jnp.stack([x2d[:, h * hd:(h + 1) * hd] for h in range(H)],
                         axis=0).astype(bf16)

    def attention(hq_bf, hkv_bf, add_mask, qw_r, qb_b, kw_r, vw_r, vb_b, ow_r, ob_b):
        # hq_bf: (TQ, D) bf16, hkv_bf: (L, D) bf16, add_mask broadcastable to (H, TQ, L).
        # Fused full-MXU-width projections (softmax scaling already folded into qw/qb).
        q_all = jnp.dot(hq_bf, qw_r[...], preferred_element_type=f32) + qb_b
        k_all = jnp.dot(hkv_bf, kw_r[...], preferred_element_type=f32)        # no bias
        v_all = jnp.dot(hkv_bf, vw_r[...], preferred_element_type=f32) + vb_b

        q = split_heads(q_all)        # (H, TQ, hd) bf16
        k = split_heads(k_all)        # (H, L,  hd) bf16
        v = split_heads(v_all)        # (H, L,  hd) bf16

        s = jnp.einsum("hqf,hkf->hqk", q, k,
                       preferred_element_type=f32) + add_mask                 # (H,TQ,L)
        m = jnp.max(s, axis=-1, keepdims=True)
        p = jnp.exp(s - m)
        denom = jnp.sum(p, axis=-1, keepdims=True)                            # (H,TQ,1)

        o = jnp.einsum("hqk,hkf->hqf", p.astype(bf16), v,
                       preferred_element_type=f32)                            # (H,TQ,hd)
        # Deferred (flash-style) normalization on the small per-head output.
        o = o * pl.reciprocal(denom, approx=True)

        # Merge heads back to (TQ, D) and run ONE full-width output projection:
        # the head reduction becomes MXU K-dim accumulation.
        o2d = jnp.concatenate([o[h] for h in range(H)], axis=-1).astype(bf16)
        return jnp.dot(o2d, ow_r[...], preferred_element_type=f32) + ob_b

    # ---- self attention (causal mask generated in-kernel) ----
    q_start = pl.program_id(1) * TQ
    rows = jax.lax.broadcasted_iota(jnp.int32, (TQ, T), 0) + q_start
    cols = jax.lax.broadcasted_iota(jnp.int32, (TQ, T), 1)
    causal = jnp.where(rows >= cols, 0.0, NEG_INF).astype(f32)
    # TODO(synk): exploit causality for long T by looping over KV tiles (online softmax)
    # and skipping fully-masked blocks; bounds the (H,TQ,T) score matrix on v7x.

    residual = xq
    h = attention(xq.astype(bf16), xkv, causal[None],
                  qw, row(_B_QB), kw, vw, row(_B_VB), ow, row(_B_OB))
    h = layer_norm(residual + h, row(_B_LN1G), row(_B_LN1B))

    # ---- cross attention (compact [1, S] additive padding mask) ----
    residual = h
    h2 = attention(h.astype(bf16), enc, cmask[None],
                   cqw, row(_B_CQB), ckw, cvw, row(_B_CVB), cow, row(_B_COB))
    h = layer_norm(residual + h2, row(_B_LN2G), row(_B_LN2B))

    # ---- feed-forward (exact erf GELU, as transformers ACT2FN["gelu"]) ----
    # TODO(synk): for very large D/F on v7x, stream fc1/fc2 with an inner
    # pltpu.emit_pipeline over the F dimension instead of keeping them resident.
    residual = h
    f = jnp.dot(h.astype(bf16), f1w[...], preferred_element_type=f32) + f1b
    f = 0.5 * f * (1.0 + jax.lax.erf(f * (1.0 / math.sqrt(2.0))))
    f = jnp.dot(f.astype(bf16), f2w[...], preferred_element_type=f32) + row(_B_FC2B)
    h = layer_norm(residual + f, row(_B_LN3G), row(_B_LN3B))

    out_ref[0] = h


def unitrec_decoder_layer(x, enc, cross_pad_mask, params, *, num_heads, q_block=None):
    """x: [B,T,D], enc: [B,S,D], cross_pad_mask: [B,S] additive (0 / -1e9).
    Self-attention mask is causal (generated inside the kernel)."""
    B, T, D = x.shape
    S = enc.shape[1]
    H = num_heads
    hd = D // num_heads
    f32, bf16 = jnp.float32, jnp.bfloat16
    scaling = hd ** (-0.5)

    # ---- generation-aware sizing (v7x: 64 MiB VMEM, v5e/v6e: 128 MiB) ----
    try:
        info = pltpu.get_tpu_info()
        vmem_cap = int(getattr(info, "vmem_capacity_bytes", 64 << 20))
    except Exception:  # not on TPU / info unavailable -> conservative default
        vmem_cap = 64 << 20
    if q_block is None:
        cap = 128 if vmem_cap <= (80 << 20) else 256
        q_block = T if T <= cap else cap
    num_q_blocks = pl.cdiv(T, q_block)

    # ---- host-side parameter packing (free) ----
    weights = [
        (params["q_w"] * scaling).astype(bf16),           # softmax scaling folded in
        params["k_w"].astype(bf16),
        params["v_w"].astype(bf16),
        params["o_w"].astype(bf16),
        (params["cq_w"] * scaling).astype(bf16),
        params["ck_w"].astype(bf16),
        params["cv_w"].astype(bf16),
        params["co_w"].astype(bf16),
        params["fc1_w"].astype(bf16),
        params["fc2_w"].astype(bf16),
    ]
    bias_rows = [
        params["q_b"] * scaling, params["v_b"], params["o_b"],
        params["ln1_g"], params["ln1_b"],
        params["cq_b"] * scaling, params["cv_b"], params["co_b"],
        params["ln2_g"], params["ln2_b"],
        params["fc2_b"], params["ln3_g"], params["ln3_b"],
    ]
    assert len(bias_rows) == _N_BIAS_ROWS
    pad_rows = (-_N_BIAS_ROWS) % 8
    bias_pack = jnp.concatenate(
        [r.reshape(1, D).astype(f32) for r in bias_rows]
        + [jnp.zeros((pad_rows, D), f32)], axis=0)        # (16, D)
    f1b = params["fc1_b"].reshape(1, -1).astype(f32)      # (1, F)
    F = f1b.shape[1]
    kernel_params = weights + [bias_pack, f1b]

    cmask = cross_pad_mask.reshape(B, 1, S).astype(f32)

    # ---- VMEM budget (generation-aware, includes intermediates) ----
    def nbytes(shape, dtype):
        return math.prod(shape) * jnp.dtype(dtype).itemsize

    weight_bytes = sum(nbytes(tuple(p.shape), p.dtype) for p in kernel_params)
    stream_bytes = 2 * (2 * nbytes((q_block, D), f32)                 # xq in + out
                        + nbytes((T, D), bf16) + nbytes((S, D), bf16)
                        + nbytes((1, S), f32))
    Lmax = max(T, S)
    inter_bytes = (3 * nbytes((H, q_block, Lmax), f32)                # scores/exp/p
                   + (q_block + 2 * Lmax) * D * 6                     # q/k/v f32 + bf16
                   + 2 * q_block * F * 4                              # FFN intermediate
                   + (4 << 20))                                       # Mosaic scratch

    kernel = functools.partial(_decoder_layer_kernel, num_heads=H, head_dim=hd)
    out_shape = jax.ShapeDtypeStruct((B, T, D), f32)

    def build(weight_pipeline_mode):
        n_copies = 1 if weight_pipeline_mode is not None else 2
        budget = n_copies * weight_bytes + stream_bytes + inter_bytes
        vmem_limit = int(min(max(budget, 32 << 20), int(0.85 * vmem_cap)))

        def wspec(shape):
            if weight_pipeline_mode is None:
                return pl.BlockSpec(shape, lambda b, t: (0,) * len(shape))
            return pl.BlockSpec(shape, lambda b, t: (0,) * len(shape),
                                pipeline_mode=weight_pipeline_mode)

        in_specs = [
            pl.BlockSpec((1, q_block, D), lambda b, t: (b, t, 0)),  # xq (f32 residual)
            pl.BlockSpec((1, T, D), lambda b, t: (b, 0, 0)),        # x full (bf16 K/V)
            pl.BlockSpec((1, S, D), lambda b, t: (b, 0, 0)),        # encoder (bf16)
            pl.BlockSpec((1, 1, S), lambda b, t: (b, 0, 0)),        # cross padding mask
        ] + [wspec(tuple(p.shape)) for p in kernel_params]

        return pl.pallas_call(
            kernel,
            out_shape=out_shape,
            grid_spec=pltpu.PrefetchScalarGridSpec(
                num_scalar_prefetch=0,
                grid=(B, num_q_blocks),
                in_specs=in_specs,
                out_specs=pl.BlockSpec((1, q_block, D), lambda b, t: (b, t, 0)),
            ),
            compiler_params=pltpu.CompilerParams(
                dimension_semantics=("parallel", "parallel"),
                vmem_limit_bytes=vmem_limit,
            ),
        )

    args = (x.astype(f32), x.astype(bf16), enc.astype(bf16), cmask, *kernel_params)
    try:
        # Single-buffer the constant weight operands (halves their VMEM footprint;
        # mandatory headroom on v7x's 64 MiB VMEM for real model sizes).
        out = build(pl.Buffered(1))(*args)
        return jax.block_until_ready(out)
    except Exception:
        # Fallback: default double-buffering if this JAX build rejects Buffered(1).
        out = build(None)(*args)
        return jax.block_until_ready(out)


# ---------------- pure-JAX f32 reference (mirrors the torch forward) ----------------
def _ref_attention(hq, hkv, mask, qw, qb, kw, vw, vb, ow, ob, num_heads):
    B, T, D = hq.shape
    S = hkv.shape[1]
    hd = D // num_heads
    q = (hq @ qw + qb) * (hd ** -0.5)
    k = hkv @ kw
    v = hkv @ vw + vb
    q = q.reshape(B, T, num_heads, hd).transpose(0, 2, 1, 3)
    k = k.reshape(B, S, num_heads, hd).transpose(0, 2, 1, 3)
    v = v.reshape(B, S, num_heads, hd).transpose(0, 2, 1, 3)
    s = jnp.einsum("bhqd,bhkd->bhqk", q, k) + mask
    p = jax.nn.softmax(s, axis=-1)
    o = jnp.einsum("bhqk,bhkd->bhqd", p, v)
    o = o.transpose(0, 2, 1, 3).reshape(B, T, D)
    return o @ ow + ob


def _ref_layer(x, enc, smask, cmask, p, num_heads):
    def ln(h, g, b):
        mu = jnp.mean(h, -1, keepdims=True)
        var = jnp.mean((h - mu) ** 2, -1, keepdims=True)
        return (h - mu) / jnp.sqrt(var + 1e-5) * g[0] + b[0]

    h = x + _ref_attention(x, x, smask, p["q_w"], p["q_b"], p["k_w"], p["v_w"],
                           p["v_b"], p["o_w"], p["o_b"], num_heads)
    h = ln(h, p["ln1_g"], p["ln1_b"])
    h = h + _ref_attention(h, enc, cmask, p["cq_w"], p["cq_b"], p["ck_w"], p["cv_w"],
                           p["cv_b"], p["co_w"], p["co_b"], num_heads)
    h = ln(h, p["ln2_g"], p["ln2_b"])
    f = h @ p["fc1_w"] + p["fc1_b"][0]
    f = 0.5 * f * (1.0 + jax.lax.erf(f / jnp.sqrt(2.0)))
    f = f @ p["fc2_w"] + p["fc2_b"][0]
    return ln(h + f, p["ln3_g"], p["ln3_b"])


if __name__ == "__main__":
    B, T, S, D, H, F = 2, 8, 16, 32, 4, 64

    key = jax.random.PRNGKey(0)
    keys = iter(jax.random.split(key, 40))

    def w(shape, scale=0.02):
        return (scale * jax.random.normal(next(keys), shape)).astype(jnp.float32)

    params = {
        # self-attention (weights pre-transposed to (in, out))
        "q_w": w((D, D)), "q_b": w((1, D)),
        "k_w": w((D, D)),                      # k_proj has no bias
        "v_w": w((D, D)), "v_b": w((1, D)),
        "o_w": w((D, D)), "o_b": w((1, D)),
        "ln1_g": jnp.ones((1, D), jnp.float32), "ln1_b": jnp.zeros((1, D), jnp.float32),
        # cross-attention
        "cq_w": w((D, D)), "cq_b": w((1, D)),
        "ck_w": w((D, D)),
        "cv_w": w((D, D)), "cv_b": w((1, D)),
        "co_w": w((D, D)), "co_b": w((1, D)),
        "ln2_g": jnp.ones((1, D), jnp.float32), "ln2_b": jnp.zeros((1, D), jnp.float32),
        # feed-forward
        "fc1_w": w((D, F)), "fc1_b": w((1, F)),
        "fc2_w": w((F, D)), "fc2_b": w((1, D)),
        "ln3_g": jnp.ones((1, D), jnp.float32), "ln3_b": jnp.zeros((1, D), jnp.float32),
    }

    x = jax.random.normal(next(keys), (B, T, D), jnp.float32)
    enc = jax.random.normal(next(keys), (B, S, D), jnp.float32)

    # cross-attention padding mask (additive [B, S]); batch 1 masks its last 4 positions
    cross_pad = jnp.concatenate(
        [jnp.zeros((1, S)),
         jnp.concatenate([jnp.zeros((1, S - 4)), jnp.full((1, 4), NEG_INF)], axis=1)],
        axis=0,
    ).astype(jnp.float32)

    out = unitrec_decoder_layer(x, enc, cross_pad, params, num_heads=H)
    out = jax.block_until_ready(out)

    # reference uses dense [B,1,T,T] causal and [B,1,T,S] cross masks (torch interface)
    causal = jnp.where(jnp.arange(T)[:, None] >= jnp.arange(T)[None, :],
                       0.0, NEG_INF).astype(jnp.float32)
    self_mask = jnp.broadcast_to(causal, (B, 1, T, T))
    cross_mask = jnp.broadcast_to(cross_pad[:, None, None, :], (B, 1, T, S))

    ref = _ref_layer(x, enc, self_mask, cross_mask, params, H)
    assert out.shape == (B, T, D)
    err = float(jnp.max(jnp.abs(out - ref)))
    # bf16 matmul operands / bf16-streamed K,V + approx reciprocal -> loosened tolerance
    assert jnp.allclose(out, ref, atol=2e-2, rtol=2e-2), err

    print("KERNEL_OK")
</pallas_src>

<mosaic_0001>
module attributes {stable_mosaic.version = 11 : i64} {
  func.func @_decoder_layer_kernel(%arg0: i32, %arg1: i32, %arg2: memref<1x8x32xf32, #tpu.memory_space<vmem>>, %arg3: memref<1x8x32xbf16, #tpu.memory_space<vmem>>, %arg4: memref<1x16x32xbf16, #tpu.memory_space<vmem>>, %arg5: memref<1x1x16xf32, #tpu.memory_space<vmem>>, %arg6: memref<32x32xbf16, #tpu.memory_space<vmem>>, %arg7: memref<32x32xbf16, #tpu.memory_space<vmem>>, %arg8: memref<32x32xbf16, #tpu.memory_space<vmem>>, %arg9: memref<32x32xbf16, #tpu.memory_space<vmem>>, %arg10: memref<32x32xbf16, #tpu.memory_space<vmem>>, %arg11: memref<32x32xbf16, #tpu.memory_space<vmem>>, %arg12: memref<32x32xbf16, #tpu.memory_space<vmem>>, %arg13: memref<32x32xbf16, #tpu.memory_space<vmem>>, %arg14: memref<32x64xbf16, #tpu.memory_space<vmem>>, %arg15: memref<64x32xbf16, #tpu.memory_space<vmem>>, %arg16: memref<16x32xf32, #tpu.memory_space<vmem>>, %arg17: memref<1x64xf32, #tpu.memory_space<vmem>>, %arg18: memref<1x8x32xf32, #tpu.memory_space<vmem>>) attributes {dimension_semantics = [#tpu.dimension_semantics<parallel>, #tpu.dimension_semantics<parallel>], iteration_bounds = array<i64: 2, 1>, scalar_prefetch = 0 : i64, scratch_operands = 0 : i64, tpu.core_type = #tpu.core_type<tc>, window_params = [{transform_indices = @transform_0, window_bounds = array<i64: 1, 8, 32>}, {transform_indices = @transform_1, window_bounds = array<i64: 1, 8, 32>}, {transform_indices = @transform_2, window_bounds = array<i64: 1, 16, 32>}, {transform_indices = @transform_3, window_bounds = array<i64: 1, 1, 16>}, {pipeline_mode = #tpu.pipeline_mode<synchronous>, transform_indices = @transform_4, window_bounds = array<i64: 32, 32>}, {pipeline_mode = #tpu.pipeline_mode<synchronous>, transform_indices = @transform_5, window_bounds = array<i64: 32, 32>}, {pipeline_mode = #tpu.pipeline_mode<synchronous>, transform_indices = @transform_6, window_bounds = array<i64: 32, 32>}, {pipeline_mode = #tpu.pipeline_mode<synchronous>, transform_indices = @transform_7, window_bounds = array<i64: 32, 32>}, {pipeline_mode = #tpu.pipeline_mode<synchronous>, transform_indices = @transform_8, window_bounds = array<i64: 32, 32>}, {pipeline_mode = #tpu.pipeline_mode<synchronous>, transform_indices = @transform_9, window_bounds = array<i64: 32, 32>}, {pipeline_mode = #tpu.pipeline_mode<synchronous>, transform_indices = @transform_10, window_bounds = array<i64: 32, 32>}, {pipeline_mode = #tpu.pipeline_mode<synchronous>, transform_indices = @transform_11, window_bounds = array<i64: 32, 32>}, {pipeline_mode = #tpu.pipeline_mode<synchronous>, transform_indices = @transform_12, window_bounds = array<i64: 32, 64>}, {pipeline_mode = #tpu.pipeline_mode<synchronous>, transform_indices = @transform_13, window_bounds = array<i64: 64, 32>}, {pipeline_mode = #tpu.pipeline_mode<synchronous>, transform_indices = @transform_14, window_bounds = array<i64: 16, 32>}, {pipeline_mode = #tpu.pipeline_mode<synchronous>, transform_indices = @transform_15, window_bounds = array<i64: 1, 64>}, {transform_indices = @transform_16, window_bounds = array<i64: 1, 8, 32>}]} {
    %c0 = arith.constant 0 : index
    %c0_0 = arith.constant 0 : index
    %c0_1 = arith.constant 0 : index
    %0 = vector.load %arg2[%c0, %c0_0, %c0_1] : memref<1x8x32xf32, #tpu.memory_space<vmem>>, vector<1x8x32xf32>
    %1 = vector.shape_cast %0 : vector<1x8x32xf32> to vector<8x32xf32>
    %c0_2 = arith.constant 0 : index
    %c0_3 = arith.constant 0 : index
    %c0_4 = arith.constant 0 : index
    %2 = vector.load %arg3[%c0_2, %c0_3, %c0_4] : memref<1x8x32xbf16, #tpu.memory_space<vmem>>, vector<1x8x32xbf16>
    %3 = vector.shape_cast %2 : vector<1x8x32xbf16> to vector<8x32xbf16>
    %c0_5 = arith.constant 0 : index
    %c0_6 = arith.constant 0 : index
    %c0_7 = arith.constant 0 : index
    %4 = vector.load %arg4[%c0_5, %c0_6, %c0_7] : memref<1x16x32xbf16, #tpu.memory_space<vmem>>, vector<1x16x32xbf16>
    %5 = vector.shape_cast %4 : vector<1x16x32xbf16> to vector<16x32xbf16>
    %c0_8 = arith.constant 0 : index
    %c0_9 = arith.constant 0 : index
    %c0_10 = arith.constant 0 : index
    %6 = vector.load %arg5[%c0_8, %c0_9, %c0_10] : memref<1x1x16xf32, #tpu.memory_space<vmem>>, vector<1x1x16xf32>
    %7 = vector.shape_cast %6 : vector<1x1x16xf32> to vector<1x16xf32>
    %c0_11 = arith.constant 0 : index
    %c0_12 = arith.constant 0 : index
    %8 = vector.load %arg16[%c0_11, %c0_12] : memref<16x32xf32, #tpu.memory_space<vmem>>, vector<16x32xf32>
    %c0_13 = arith.constant 0 : index
    %c0_14 = arith.constant 0 : index
    %9 = vector.load %arg17[%c0_13, %c0_14] : memref<1x64xf32, #tpu.memory_space<vmem>>, vector<1x64xf32>
    %c8_i32 = arith.constant 8 : i32
    %10 = arith.muli %arg1, %c8_i32 : i32
    %11 = tpu.iota {dimensions = array<i32: 0>} : vector<8x8xi32>
    %12 = vector.broadcast %10 : i32 to vector<8x8xi32>
    %13 = arith.addi %11, %12 : vector<8x8xi32>
    %14 = tpu.iota {dimensions = array<i32: 1>} : vector<8x8xi32>
    %15 = arith.cmpi sge, %13, %14 : vector<8x8xi32>
    %cst = arith.constant 0.000000e+00 : f32
    %cst_15 = arith.constant -1.000000e+09 : f32
    %16 = vector.broadcast %cst : f32 to vector<8x8xf32>
    %17 = vector.broadcast %cst_15 : f32 to vector<8x8xf32>
    %18 = arith.select %15, %16, %17 : vector<8x8xi1>, vector<8x8xf32>
    %19 = arith.truncf %1 : vector<8x32xf32> to vector<8x32xbf16>
    %20 = vector.shape_cast %18 : vector<8x8xf32> to vector<1x8x8xf32>
    %21 = vector.extract_strided_slice %8 {offsets = [0, 0], sizes = [1, 32], strides = [1, 1]} : vector<16x32xf32> to vector<1x32xf32>
    %22 = vector.extract_strided_slice %8 {offsets = [1, 0], sizes = [1, 32], strides = [1, 1]} : vector<16x32xf32> to vector<1x32xf32>
    %23 = vector.extract_strided_slice %8 {offsets = [2, 0], sizes = [1, 32], strides = [1, 1]} : vector<16x32xf32> to vector<1x32xf32>
    %c0_16 = arith.constant 0 : index
    %c0_17 = arith.constant 0 : index
    %24 = vector.load %arg6[%c0_16, %c0_17] : memref<32x32xbf16, #tpu.memory_space<vmem>>, vector<32x32xbf16>
    %cst_18 = arith.constant dense<0.000000e+00> : vector<8x32xf32>
    %25 = tpu.matmul %19, %24, %cst_18 {dimension_numbers = #tpu.dot_dimension_numbers<[1], [0], [0], [1], [0, 0, 1, 1], [], []>} : vector<8x32xbf16>, vector<32x32xbf16>, vector<8x32xf32> -> vector<8x32xf32>
    %26 = vector.broadcast %21 : vector<1x32xf32> to vector<8x32xf32>
    %27 = arith.addf %25, %26 : vector<8x32xf32>
    %c0_19 = arith.constant 0 : index
    %c0_20 = arith.constant 0 : index
    %28 = vector.load %arg7[%c0_19, %c0_20] : memref<32x32xbf16, #tpu.memory_space<vmem>>, vector<32x32xbf16>
    %cst_21 = arith.constant dense<0.000000e+00> : vector<8x32xf32>
    %29 = tpu.matmul %3, %28, %cst_21 {dimension_numbers = #tpu.dot_dimension_numbers<[1], [0], [0], [1], [0, 0, 1, 1], [], []>} : vector<8x32xbf16>, vector<32x32xbf16>, vector<8x32xf32> -> vector<8x32xf32>
    %c0_22 = arith.constant 0 : index
    %c0_23 = arith.constant 0 : index
    %30 = vector.load %arg8[%c0_22, %c0_23] : memref<32x32xbf16, #tpu.memory_space<vmem>>, vector<32x32xbf16>
    %cst_24 = arith.constant dense<0.000000e+00> : vector<8x32xf32>
    %31 = tpu.matmul %3, %30, %cst_24 {dimension_numbers = #tpu.dot_dimension_numbers<[1], [0], [0], [1], [0, 0, 1, 1], [], []>} : vector<8x32xbf16>, vector<32x32xbf16>, vector<8x32xf32> -> vector<8x32xf32>
    %32 = vector.broadcast %22 : vector<1x32xf32> to vector<8x32xf32>
    %33 = arith.addf %31, %32 : vector<8x32xf32>
    %34 = vector.extract_strided_slice %27 {offsets = [0, 0], sizes = [8, 8], strides = [1, 1]} : vector<8x32xf32> to vector<8x8xf32>
    %35 = vector.extract_strided_slice %27 {offsets = [0, 8], sizes = [8, 8], strides = [1, 1]} : vector<8x32xf32> to vector<8x8xf32>
    %36 = vector.extract_strided_slice %27 {offsets = [0, 16], sizes = [8, 8], strides = [1, 1]} : vector<8x32xf32> to vector<8x8xf32>
    %37 = vector.extract_strided_slice %27 {offsets = [0, 24], sizes = [8, 8], strides = [1, 1]} : vector<8x32xf32> to vector<8x8xf32>
    %38 = vector.shape_cast %34 : vector<8x8xf32> to vector<1x8x8xf32>
    %39 = vector.shape_cast %35 : vector<8x8xf32> to vector<1x8x8xf32>
    %40 = vector.shape_cast %36 : vector<8x8xf32> to vector<1x8x8xf32>
    %41 = vector.shape_cast %37 : vector<8x8xf32> to vector<1x8x8xf32>
    %42 = tpu.concatenate %38, %39, %40, %41 in 0 : vector<1x8x8xf32>, vector<1x8x8xf32>, vector<1x8x8xf32>, vector<1x8x8xf32> -> vector<4x8x8xf32>
    %43 = arith.truncf %42 : vector<4x8x8xf32> to vector<4x8x8xbf16>
    %44 = vector.extract_strided_slice %29 {offsets = [0, 0], sizes = [8, 8], strides = [1, 1]} : vector<8x32xf32> to vector<8x8xf32>
    %45 = vector.extract_strided_slice %29 {offsets = [0, 8], sizes = [8, 8], strides = [1, 1]} : vector<8x32xf32> to vector<8x8xf32>
    %46 = vector.extract_strided_slice %29 {offsets = [0, 16], sizes = [8, 8], strides = [1, 1]} : vector<8x32xf32> to vector<8x8xf32>
    %47 = vector.extract_strided_slice %29 {offsets = [0, 24], sizes = [8, 8], strides = [1, 1]} : vector<8x32xf32> to vector<8x8xf32>
    %48 = vector.shape_cast %44 : vector<8x8xf32> to vector<1x8x8xf32>
    %49 = vector.shape_cast %45 : vector<8x8xf32> to vector<1x8x8xf32>
    %50 = vector.shape_cast %46 : vector<8x8xf32> to vector<1x8x8xf32>
    %51 = vector.shape_cast %47 : vector<8x8xf32> to vector<1x8x8xf32>
    %52 = tpu.concatenate %48, %49, %50, %51 in 0 : vector<1x8x8xf32>, vector<1x8x8xf32>, vector<1x8x8xf32>, vector<1x8x8xf32> -> vector<4x8x8xf32>
    %53 = arith.truncf %52 : vector<4x8x8xf32> to vector<4x8x8xbf16>
    %54 = vector.extract_strided_slice %33 {offsets = [0, 0], sizes = [8, 8], strides = [1, 1]} : vector<8x32xf32> to vector<8x8xf32>
    %55 = vector.extract_strided_slice %33 {offsets = [0, 8], sizes = [8, 8], strides = [1, 1]} : vector<8x32xf32> to vector<8x8xf32>
    %56 = vector.extract_strided_slice %33 {offsets = [0, 16], sizes = [8, 8], strides = [1, 1]} : vector<8x32xf32> to vector<8x8xf32>
    %57 = vector.extract_strided_slice %33 {offsets = [0, 24], sizes = [8, 8], strides = [1, 1]} : vector<8x32xf32> to vector<8x8xf32>
    %58 = vector.shape_cast %54 : vector<8x8xf32> to vector<1x8x8xf32>
    %59 = vector.shape_cast %55 : vector<8x8xf32> to vector<1x8x8xf32>
    %60 = vector.shape_cast %56 : vector<8x8xf32> to vector<1x8x8xf32>
    %61 = vector.shape_cast %57 : vector<8x8xf32> to vector<1x8x8xf32>
    %62 = tpu.concatenate %58, %59, %60, %61 in 0 : vector<1x8x8xf32>, vector<1x8x8xf32>, vector<1x8x8xf32>, vector<1x8x8xf32> -> vector<4x8x8xf32>
    %63 = arith.truncf %62 : vector<4x8x8xf32> to vector<4x8x8xbf16>
    "tpu.trace_start"() <{level = 10 : i32, message = "hqf,hkf->hqk"}> : () -> ()
    %cst_25 = arith.constant dense<0.000000e+00> : vector<4x8x8xf32>
    %64 = tpu.matmul %43, %53, %cst_25 {dimension_numbers = #tpu.dot_dimension_numbers<[2], [2], [1], [1], [0, 0, 0, 1, 1, 1], [0], [0]>} : vector<4x8x8xbf16>, vector<4x8x8xbf16>, vector<4x8x8xf32> -> vector<4x8x8xf32>
    "tpu.trace_stop"() : () -> ()
    %65 = vector.broadcast %20 : vector<1x8x8xf32> to vector<4x8x8xf32>
    %66 = arith.addf %64, %65 : vector<4x8x8xf32>
    %cst_26 = arith.constant dense<0xFF800000> : vector<4x8xf32>
    %67 = vector.multi_reduction <maximumf>, %66, %cst_26 [2] : vector<4x8x8xf32> to vector<4x8xf32>
    %68 = vector.shape_cast %67 : vector<4x8xf32> to vector<4x8x1xf32>
    %69 = vector.broadcast %68 : vector<4x8x1xf32> to vector<4x8x8xf32>
    %70 = arith.subf %66, %69 : vector<4x8x8xf32>
    %71 = math.exp %70 : vector<4x8x8xf32>
    %cst_27 = arith.constant dense<0.000000e+00> : vector<4x8xf32>
    %72 = vector.multi_reduction <add>, %71, %cst_27 [2] : vector<4x8x8xf32> to vector<4x8xf32>
    %73 = vector.shape_cast %72 : vector<4x8xf32> to vector<4x8x1xf32>
    %74 = arith.truncf %71 : vector<4x8x8xf32> to vector<4x8x8xbf16>
    "tpu.trace_start"() <{level = 10 : i32, message = "hqk,hkf->hqf"}> : () -> ()
    %cst_28 = arith.constant dense<0.000000e+00> : vector<4x8x8xf32>
    %75 = tpu.matmul %74, %63, %cst_28 {dimension_numbers = #tpu.dot_dimension_numbers<[2], [1], [1], [2], [0, 0, 0, 1, 1, 2], [0], [0]>} : vector<4x8x8xbf16>, vector<4x8x8xbf16>, vector<4x8x8xf32> -> vector<4x8x8xf32>
    "tpu.trace_stop"() : () -> ()
    %76 = tpu.reciprocal %73 {approx = true} : vector<4x8x1xf32> -> vector<4x8x1xf32>
    %77 = vector.broadcast %76 : vector<4x8x1xf32> to vector<4x8x8xf32>
    %78 = arith.mulf %75, %77 : vector<4x8x8xf32>
    %79 = vector.extract_strided_slice %78 {offsets = [0, 0, 0], sizes = [1, 8, 8], strides = [1, 1, 1]} : vector<4x8x8xf32> to vector<1x8x8xf32>
    %80 = vector.shape_cast %79 : vector<1x8x8xf32> to vector<8x8xf32>
    %81 = vector.extract_strided_slice %78 {offsets = [1, 0, 0], sizes = [1, 8, 8], strides = [1, 1, 1]} : vector<4x8x8xf32> to vector<1x8x8xf32>
    %82 = vector.shape_cast %81 : vector<1x8x8xf32> to vector<8x8xf32>
    %83 = vector.extract_strided_slice %78 {offsets = [2, 0, 0], sizes = [1, 8, 8], strides = [1, 1, 1]} : vector<4x8x8xf32> to vector<1x8x8xf32>
    %84 = vector.shape_cast %83 : vector<1x8x8xf32> to vector<8x8xf32>
    %85 = vector.extract_strided_slice %78 {offsets = [3, 0, 0], sizes = [1, 8, 8], strides = [1, 1, 1]} : vector<4x8x8xf32> to vector<1x8x8xf32>
    %86 = vector.shape_cast %85 : vector<1x8x8xf32> to vector<8x8xf32>
    %87 = tpu.concatenate %80, %82, %84, %86 in 1 : vector<8x8xf32>, vector<8x8xf32>, vector<8x8xf32>, vector<8x8xf32> -> vector<8x32xf32>
    %88 = arith.truncf %87 : vector<8x32xf32> to vector<8x32xbf16>
    %c0_29 = arith.constant 0 : index
    %c0_30 = arith.constant 0 : index
    %89 = vector.load %arg9[%c0_29, %c0_30] : memref<32x32xbf16, #tpu.memory_space<vmem>>, vector<32x32xbf16>
    %cst_31 = arith.constant dense<0.000000e+00> : vector<8x32xf32>
    %90 = tpu.matmul %88, %89, %cst_31 {dimension_numbers = #tpu.dot_dimension_numbers<[1], [0], [0], [1], [0, 0, 1, 1], [], []>} : vector<8x32xbf16>, vector<32x32xbf16>, vector<8x32xf32> -> vector<8x32xf32>
    %91 = vector.broadcast %23 : vector<1x32xf32> to vector<8x32xf32>
    %92 = arith.addf %90, %91 : vector<8x32xf32>
    %93 = arith.addf %1, %92 : vector<8x32xf32>
    %94 = vector.extract_strided_slice %8 {offsets = [3, 0], sizes = [1, 32], strides = [1, 1]} : vector<16x32xf32> to vector<1x32xf32>
    %95 = vector.extract_strided_slice %8 {offsets = [4, 0], sizes = [1, 32], strides = [1, 1]} : vector<16x32xf32> to vector<1x32xf32>
    %cst_32 = arith.constant dense<0.000000e+00> : vector<8xf32>
    %96 = vector.multi_reduction <add>, %93, %cst_32 [1] : vector<8x32xf32> to vector<8xf32>
    %97 = vector.shape_cast %96 : vector<8xf32> to vector<8x1xf32>
    %cst_33 = arith.constant 3.200000e+01 : f32
    %98 = vector.broadcast %cst_33 : f32 to vector<8x1xf32>
    %99 = arith.divf %97, %98 : vector<8x1xf32>
    %100 = vector.broadcast %99 : vector<8x1xf32> to vector<8x32xf32>
    %101 = arith.subf %93, %100 : vector<8x32xf32>
    %102 = arith.mulf %101, %101 : vector<8x32xf32>
    %cst_34 = arith.constant dense<0.000000e+00> : vector<8xf32>
    %103 = vector.multi_reduction <add>, %102, %cst_34 [1] : vector<8x32xf32> to vector<8xf32>
    %104 = vector.shape_cast %103 : vector<8xf32> to vector<8x1xf32>
    %cst_35 = arith.constant 3.200000e+01 : f32
    %105 = vector.broadcast %cst_35 : f32 to vector<8x1xf32>
    %106 = arith.divf %104, %105 : vector<8x1xf32>
    %107 = vector.broadcast %99 : vector<8x1xf32> to vector<8x32xf32>
    %108 = arith.subf %93, %107 : vector<8x32xf32>
    %cst_36 = arith.constant 9.99999974E-6 : f32
    %109 = vector.broadcast %cst_36 : f32 to vector<8x1xf32>
    %110 = arith.addf %106, %109 : vector<8x1xf32>
    %111 = math.rsqrt %110 : vector<8x1xf32>
    %112 = vector.broadcast %111 : vector<8x1xf32> to vector<8x32xf32>
    %113 = arith.mulf %108, %112 : vector<8x32xf32>
    %114 = vector.broadcast %94 : vector<1x32xf32> to vector<8x32xf32>
    %115 = arith.mulf %113, %114 : vector<8x32xf32>
    %116 = vector.broadcast %95 : vector<1x32xf32> to vector<8x32xf32>
    %117 = arith.addf %115, %116 : vector<8x32xf32>
    %118 = arith.truncf %117 : vector<8x32xf32> to vector<8x32xbf16>
    %119 = vector.shape_cast %7 : vector<1x16xf32> to vector<1x1x16xf32>
    %120 = vector.extract_strided_slice %8 {offsets = [5, 0], sizes = [1, 32], strides = [1, 1]} : vector<16x32xf32> to vector<1x32xf32>
    %121 = vector.extract_strided_slice %8 {offsets = [6, 0], sizes = [1, 32], strides = [1, 1]} : vector<16x32xf32> to vector<1x32xf32>
    %122 = vector.extract_strided_slice %8 {offsets = [7, 0], sizes = [1, 32], strides = [1, 1]} : vector<16x32xf32> to vector<1x32xf32>
    %c0_37 = arith.constant 0 : index
    %c0_38 = arith.constant 0 : index
    %123 = vector.load %arg10[%c0_37, %c0_38] : memref<32x32xbf16, #tpu.memory_space<vmem>>, vector<32x32xbf16>
    %cst_39 = arith.constant dense<0.000000e+00> : vector<8x32xf32>
    %124 = tpu.matmul %118, %123, %cst_39 {dimension_numbers = #tpu.dot_dimension_numbers<[1], [0], [0], [1], [0, 0, 1, 1], [], []>} : vector<8x32xbf16>, vector<32x32xbf16>, vector<8x32xf32> -> vector<8x32xf32>
    %125 = vector.broadcast %120 : vector<1x32xf32> to vector<8x32xf32>
    %126 = arith.addf %124, %125 : vector<8x32xf32>
    %c0_40 = arith.constant 0 : index
    %c0_41 = arith.constant 0 : index
    %127 = vector.load %arg11[%c0_40, %c0_41] : memref<32x32xbf16, #tpu.memory_space<vmem>>, vector<32x32xbf16>
    %cst_42 = arith.constant dense<0.000000e+00> : vector<16x32xf32>
    %128 = tpu.matmul %5, %127, %cst_42 {dimension_numbers = #tpu.dot_dimension_numbers<[1], [0], [0], [1], [0, 0, 1, 1], [], []>} : vector<16x32xbf16>, vector<32x32xbf16>, vector<16x32xf32> -> vector<16x32xf32>
    %c0_43 = arith.constant 0 : index
    %c0_44 = arith.constant 0 : index
    %129 = vector.load %arg12[%c0_43, %c0_44] : memref<32x32xbf16, #tpu.memory_space<vmem>>, vector<32x32xbf16>
    %cst_45 = arith.constant dense<0.000000e+00> : vector<16x32xf32>
    %130 = tpu.matmul %5, %129, %cst_45 {dimension_numbers = #tpu.dot_dimension_numbers<[1], [0], [0], [1], [0, 0, 1, 1], [], []>} : vector<16x32xbf16>, vector<32x32xbf16>, vector<16x32xf32> -> vector<16x32xf32>
    %131 = vector.broadcast %121 : vector<1x32xf32> to vector<16x32xf32>
    %132 = arith.addf %130, %131 : vector<16x32xf32>
    %133 = vector.extract_strided_slice %126 {offsets = [0, 0], sizes = [8, 8], strides = [1, 1]} : vector<8x32xf32> to vector<8x8xf32>
    %134 = vector.extract_strided_slice %126 {offsets = [0, 8], sizes = [8, 8], strides = [1, 1]} : vector<8x32xf32> to vector<8x8xf32>
    %135 = vector.extract_strided_slice %126 {offsets = [0, 16], sizes = [8, 8], strides = [1, 1]} : vector<8x32xf32> to vector<8x8xf32>
    %136 = vector.extract_strided_slice %126 {offsets = [0, 24], sizes = [8, 8], strides = [1, 1]} : vector<8x32xf32> to vector<8x8xf32>
    %137 = vector.shape_cast %133 : vector<8x8xf32> to vector<1x8x8xf32>
    %138 = vector.shape_cast %134 : vector<8x8xf32> to vector<1x8x8xf32>
    %139 = vector.shape_cast %135 : vector<8x8xf32> to vector<1x8x8xf32>
    %140 = vector.shape_cast %136 : vector<8x8xf32> to vector<1x8x8xf32>
    %141 = tpu.concatenate %137, %138, %139, %140 in 0 : vector<1x8x8xf32>, vector<1x8x8xf32>, vector<1x8x8xf32>, vector<1x8x8xf32> -> vector<4x8x8xf32>
    %142 = arith.truncf %141 : vector<4x8x8xf32> to vector<4x8x8xbf16>
    %143 = vector.extract_strided_slice %128 {offsets = [0, 0], sizes = [16, 8], strides = [1, 1]} : vector<16x32xf32> to vector<16x8xf32>
    %144 = vector.extract_strided_slice %128 {offsets = [0, 8], sizes = [16, 8], strides = [1, 1]} : vector<16x32xf32> to vector<16x8xf32>
    %145 = vector.extract_strided_slice %128 {offsets = [0, 16], sizes = [16, 8], strides = [1, 1]} : vector<16x32xf32> to vector<16x8xf32>
    %146 = vector.extract_strided_slice %128 {offsets = [0, 24], sizes = [16, 8], strides = [1, 1]} : vector<16x32xf32> to vector<16x8xf32>
    %147 = vector.shape_cast %143 : vector<16x8xf32> to vector<1x16x8xf32>
    %148 = vector.shape_cast %144 : vector<16x8xf32> to vector<1x16x8xf32>
    %149 = vector.shape_cast %145 : vector<16x8xf32> to vector<1x16x8xf32>
    %150 = vector.shape_cast %146 : vector<16x8xf32> to vector<1x16x8xf32>
    %151 = tpu.concatenate %147, %148, %149, %150 in 0 : vector<1x16x8xf32>, vector<1x16x8xf32>, vector<1x16x8xf32>, vector<1x16x8xf32> -> vector<4x16x8xf32>
    %152 = arith.truncf %151 : vector<4x16x8xf32> to vector<4x16x8xbf16>
    %153 = vector.extract_strided_slice %132 {offsets = [0, 0], sizes = [16, 8], strides = [1, 1]} : vector<16x32xf32> to vector<16x8xf32>
    %154 = vector.extract_strided_slice %132 {offsets = [0, 8], sizes = [16, 8], strides = [1, 1]} : vector<16x32xf32> to vector<16x8xf32>
    %155 = vector.extract_strided_slice %132 {offsets = [0, 16], sizes = [16, 8], strides = [1, 1]} : vector<16x32xf32> to vector<16x8xf32>
    %156 = vector.extract_strided_slice %132 {offsets = [0, 24], sizes = [16, 8], strides = [1, 1]} : vector<16x32xf32> to vector<16x8xf32>
    %157 = vector.shape_cast %153 : vector<16x8xf32> to vector<1x16x8xf32>
    %158 = vector.shape_cast %154 : vector<16x8xf32> to vector<1x16x8xf32>
    %159 = vector.shape_cast %155 : vector<16x8xf32> to vector<1x16x8xf32>
    %160 = vector.shape_cast %156 : vector<16x8xf32> to vector<1x16x8xf32>
    %161 = tpu.concatenate %157, %158, %159, %160 in 0 : vector<1x16x8xf32>, vector<1x16x8xf32>, vector<1x16x8xf32>, vector<1x16x8xf32> -> vector<4x16x8xf32>
    %162 = arith.truncf %161 : vector<4x16x8xf32> to vector<4x16x8xbf16>
    "tpu.trace_start"() <{level = 10 : i32, message = "hqf,hkf->hqk"}> : () -> ()
    %cst_46 = arith.constant dense<0.000000e+00> : vector<4x8x16xf32>
    %163 = tpu.matmul %142, %152, %cst_46 {dimension_numbers = #tpu.dot_dimension_numbers<[2], [2], [1], [1], [0, 0, 0, 1, 1, 1], [0], [0]>} : vector<4x8x8xbf16>, vector<4x16x8xbf16>, vector<4x8x16xf32> -> vector<4x8x16xf32>
    "tpu.trace_stop"() : () -> ()
    %164 = vector.broadcast %119 : vector<1x1x16xf32> to vector<4x8x16xf32>
    %165 = arith.addf %163, %164 : vector<4x8x16xf32>
    %cst_47 = arith.constant dense<0xFF800000> : vector<4x8xf32>
    %166 = vector.multi_reduction <maximumf>, %165, %cst_47 [2] : vector<4x8x16xf32> to vector<4x8xf32>
    %167 = vector.shape_cast %166 : vector<4x8xf32> to vector<4x8x1xf32>
    %168 = vector.broadcast %167 : vector<4x8x1xf32> to vector<4x8x16xf32>
    %169 = arith.subf %165, %168 : vector<4x8x16xf32>
    %170 = math.exp %169 : vector<4x8x16xf32>
    %cst_48 = arith.constant dense<0.000000e+00> : vector<4x8xf32>
    %171 = vector.multi_reduction <add>, %170, %cst_48 [2] : vector<4x8x16xf32> to vector<4x8xf32>
    %172 = vector.shape_cast %171 : vector<4x8xf32> to vector<4x8x1xf32>
    %173 = arith.truncf %170 : vector<4x8x16xf32> to vector<4x8x16xbf16>
    "tpu.trace_start"() <{level = 10 : i32, message = "hqk,hkf->hqf"}> : () -> ()
    %cst_49 = arith.constant dense<0.000000e+00> : vector<4x8x8xf32>
    %174 = tpu.matmul %173, %162, %cst_49 {dimension_numbers = #tpu.dot_dimension_numbers<[2], [1], [1], [2], [0, 0, 0, 1, 1, 2], [0], [0]>} : vector<4x8x16xbf16>, vector<4x16x8xbf16>, vector<4x8x8xf32> -> vector<4x8x8xf32>
    "tpu.trace_stop"() : () -> ()
    %175 = tpu.reciprocal %172 {approx = true} : vector<4x8x1xf32> -> vector<4x8x1xf32>
    %176 = vector.broadcast %175 : vector<4x8x1xf32> to vector<4x8x8xf32>
    %177 = arith.mulf %174, %176 : vector<4x8x8xf32>
    %178 = vector.extract_strided_slice %177 {offsets = [0, 0, 0], sizes = [1, 8, 8], strides = [1, 1, 1]} : vector<4x8x8xf32> to vector<1x8x8xf32>
    %179 = vector.shape_cast %178 : vector<1x8x8xf32> to vector<8x8xf32>
    %180 = vector.extract_strided_slice %177 {offsets = [1, 0, 0], sizes = [1, 8, 8], strides = [1, 1, 1]} : vector<4x8x8xf32> to vector<1x8x8xf32>
    %181 = vector.shape_cast %180 : vector<1x8x8xf32> to vector<8x8xf32>
    %182 = vector.extract_strided_slice %177 {offsets = [2, 0, 0], sizes = [1, 8, 8], strides = [1, 1, 1]} : vector<4x8x8xf32> to vector<1x8x8xf32>
    %183 = vector.shape_cast %182 : vector<1x8x8xf32> to vector<8x8xf32>
    %184 = vector.extract_strided_slice %177 {offsets = [3, 0, 0], sizes = [1, 8, 8], strides = [1, 1, 1]} : vector<4x8x8xf32> to vector<1x8x8xf32>
    %185 = vector.shape_cast %184 : vector<1x8x8xf32> to vector<8x8xf32>
    %186 = tpu.concatenate %179, %181, %183, %185 in 1 : vector<8x8xf32>, vector<8x8xf32>, vector<8x8xf32>, vector<8x8xf32> -> vector<8x32xf32>
    %187 = arith.truncf %186 : vector<8x32xf32> to vector<8x32xbf16>
    %c0_50 = arith.constant 0 : index
    %c0_51 = arith.constant 0 : index
    %188 = vector.load %arg13[%c0_50, %c0_51] : memref<32x32xbf16, #tpu.memory_space<vmem>>, vector<32x32xbf16>
    %cst_52 = arith.constant dense<0.000000e+00> : vector<8x32xf32>
    %189 = tpu.matmul %187, %188, %cst_52 {dimension_numbers = #tpu.dot_dimension_numbers<[1], [0], [0], [1], [0, 0, 1, 1], [], []>} : vector<8x32xbf16>, vector<32x32xbf16>, vector<8x32xf32> -> vector<8x32xf32>
    %190 = vector.broadcast %122 : vector<1x32xf32> to vector<8x32xf32>
    %191 = arith.addf %189, %190 : vector<8x32xf32>
    %192 = arith.addf %117, %191 : vector<8x32xf32>
    %193 = vector.extract_strided_slice %8 {offsets = [8, 0], sizes = [1, 32], strides = [1, 1]} : vector<16x32xf32> to vector<1x32xf32>
    %194 = vector.extract_strided_slice %8 {offsets = [9, 0], sizes = [1, 32], strides = [1, 1]} : vector<16x32xf32> to vector<1x32xf32>
    %cst_53 = arith.constant dense<0.000000e+00> : vector<8xf32>
    %195 = vector.multi_reduction <add>, %192, %cst_53 [1] : vector<8x32xf32> to vector<8xf32>
    %196 = vector.shape_cast %195 : vector<8xf32> to vector<8x1xf32>
    %cst_54 = arith.constant 3.200000e+01 : f32
    %197 = vector.broadcast %cst_54 : f32 to vector<8x1xf32>
    %198 = arith.divf %196, %197 : vector<8x1xf32>
    %199 = vector.broadcast %198 : vector<8x1xf32> to vector<8x32xf32>
    %200 = arith.subf %192, %199 : vector<8x32xf32>
    %201 = arith.mulf %200, %200 : vector<8x32xf32>
    %cst_55 = arith.constant dense<0.000000e+00> : vector<8xf32>
    %202 = vector.multi_reduction <add>, %201, %cst_55 [1] : vector<8x32xf32> to vector<8xf32>
    %203 = vector.shape_cast %202 : vector<8xf32> to vector<8x1xf32>
    %cst_56 = arith.constant 3.200000e+01 : f32
    %204 = vector.broadcast %cst_56 : f32 to vector<8x1xf32>
    %205 = arith.divf %203, %204 : vector<8x1xf32>
    %206 = vector.broadcast %198 : vector<8x1xf32> to vector<8x32xf32>
    %207 = arith.subf %192, %206 : vector<8x32xf32>
    %cst_57 = arith.constant 9.99999974E-6 : f32
    %208 = vector.broadcast %cst_57 : f32 to vector<8x1xf32>
    %209 = arith.addf %205, %208 : vector<8x1xf32>
    %210 = math.rsqrt %209 : vector<8x1xf32>
    %211 = vector.broadcast %210 : vector<8x1xf32> to vector<8x32xf32>
    %212 = arith.mulf %207, %211 : vector<8x32xf32>
    %213 = vector.broadcast %193 : vector<1x32xf32> to vector<8x32xf32>
    %214 = arith.mulf %212, %213 : vector<8x32xf32>
    %215 = vector.broadcast %194 : vector<1x32xf32> to vector<8x32xf32>
    %216 = arith.addf %214, %215 : vector<8x32xf32>
    %217 = arith.truncf %216 : vector<8x32xf32> to vector<8x32xbf16>
    %c0_58 = arith.constant 0 : index
    %c0_59 = arith.constant 0 : index
    %218 = vector.load %arg14[%c0_58, %c0_59] : memref<32x64xbf16, #tpu.memory_space<vmem>>, vector<32x64xbf16>
    %cst_60 = arith.constant dense<0.000000e+00> : vector<8x64xf32>
    %219 = tpu.matmul %217, %218, %cst_60 {dimension_numbers = #tpu.dot_dimension_numbers<[1], [0], [0], [1], [0, 0, 1, 1], [], []>} : vector<8x32xbf16>, vector<32x64xbf16>, vector<8x64xf32> -> vector<8x64xf32>
    %220 = vector.broadcast %9 : vector<1x64xf32> to vector<8x64xf32>
    %221 = arith.addf %219, %220 : vector<8x64xf32>
    %cst_61 = arith.constant 5.000000e-01 : f32
    %222 = vector.broadcast %cst_61 : f32 to vector<8x64xf32>
    %223 = arith.mulf %222, %221 : vector<8x64xf32>
    %cst_62 = arith.constant 0.707106769 : f32
    %224 = vector.broadcast %cst_62 : f32 to vector<8x64xf32>
    %225 = arith.mulf %221, %224 : vector<8x64xf32>
    %226 = math.erf %225 : vector<8x64xf32>
    %cst_63 = arith.constant 1.000000e+00 : f32
    %227 = vector.broadcast %cst_63 : f32 to vector<8x64xf32>
    %228 = arith.addf %227, %226 : vector<8x64xf32>
    %229 = arith.mulf %223, %228 : vector<8x64xf32>
    %230 = arith.truncf %229 : vector<8x64xf32> to vector<8x64xbf16>
    %c0_64 = arith.constant 0 : index
    %c0_65 = arith.constant 0 : index
    %231 = vector.load %arg15[%c0_64, %c0_65] : memref<64x32xbf16, #tpu.memory_space<vmem>>, vector<64x32xbf16>
    %cst_66 = arith.constant dense<0.000000e+00> : vector<8x32xf32>
    %232 = tpu.matmul %230, %231, %cst_66 {dimension_numbers = #tpu.dot_dimension_numbers<[1], [0], [0], [1], [0, 0, 1, 1], [], []>} : vector<8x64xbf16>, vector<64x32xbf16>, vector<8x32xf32> -> vector<8x32xf32>
    %233 = vector.extract_strided_slice %8 {offsets = [10, 0], sizes = [1, 32], strides = [1, 1]} : vector<16x32xf32> to vector<1x32xf32>
    %234 = vector.broadcast %233 : vector<1x32xf32> to vector<8x32xf32>
    %235 = arith.addf %232, %234 : vector<8x32xf32>
    %236 = arith.addf %216, %235 : vector<8x32xf32>
    %237 = vector.extract_strided_slice %8 {offsets = [11, 0], sizes = [1, 32], strides = [1, 1]} : vector<16x32xf32> to vector<1x32xf32>
    %238 = vector.extract_strided_slice %8 {offsets = [12, 0], sizes = [1, 32], strides = [1, 1]} : vector<16x32xf32> to vector<1x32xf32>
    %cst_67 = arith.constant dense<0.000000e+00> : vector<8xf32>
    %239 = vector.multi_reduction <add>, %236, %cst_67 [1] : vector<8x32xf32> to vector<8xf32>
    %240 = vector.shape_cast %239 : vector<8xf32> to vector<8x1xf32>
    %cst_68 = arith.constant 3.200000e+01 : f32
    %241 = vector.broadcast %cst_68 : f32 to vector<8x1xf32>
    %242 = arith.divf %240, %241 : vector<8x1xf32>
    %243 = vector.broadcast %242 : vector<8x1xf32> to vector<8x32xf32>
    %244 = arith.subf %236, %243 : vector<8x32xf32>
    %245 = arith.mulf %244, %244 : vector<8x32xf32>
    %cst_69 = arith.constant dense<0.000000e+00> : vector<8xf32>
    %246 = vector.multi_reduction <add>, %245, %cst_69 [1] : vector<8x32xf32> to vector<8xf32>
    %247 = vector.shape_cast %246 : vector<8xf32> to vector<8x1xf32>
    %cst_70 = arith.constant 3.200000e+01 : f32
    %248 = vector.broadcast %cst_70 : f32 to vector<8x1xf32>
    %249 = arith.divf %247, %248 : vector<8x1xf32>
    %250 = vector.broadcast %242 : vector<8x1xf32> to vector<8x32xf32>
    %251 = arith.subf %236, %250 : vector<8x32xf32>
    %cst_71 = arith.constant 9.99999974E-6 : f32
    %252 = vector.broadcast %cst_71 : f32 to vector<8x1xf32>
    %253 = arith.addf %249, %252 : vector<8x1xf32>
    %254 = math.rsqrt %253 : vector<8x1xf32>
    %255 = vector.broadcast %254 : vector<8x1xf32> to vector<8x32xf32>
    %256 = arith.mulf %251, %255 : vector<8x32xf32>
    %257 = vector.broadcast %237 : vector<1x32xf32> to vector<8x32xf32>
    %258 = arith.mulf %256, %257 : vector<8x32xf32>
    %259 = vector.broadcast %238 : vector<1x32xf32> to vector<8x32xf32>
    %260 = arith.addf %258, %259 : vector<8x32xf32>
    %c0_72 = arith.constant 0 : index
    %c0_73 = arith.constant 0 : index
    %c0_74 = arith.constant 0 : index
    %261 = vector.load %arg18[%c0_72, %c0_73, %c0_74] : memref<1x8x32xf32, #tpu.memory_space<vmem>>, vector<1x8x32xf32>
    %262 = vector.shape_cast %261 : vector<1x8x32xf32> to vector<8x32xf32>
    %263 = vector.shape_cast %260 : vector<8x32xf32> to vector<1x8x32xf32>
    tpu.vector_store %arg18[%c0_72, %c0_73, %c0_74], %263 {strides = array<i32>} : memref<1x8x32xf32, #tpu.memory_space<vmem>>, vector<1x8x32xf32>,
    return
  }
  func.func @transform_0(%arg0: i32, %arg1: i32) -> (i32, i32, i32) {
    %c0_i32 = arith.constant 0 : i32
    %c0_i32_0 = arith.constant 0 : i32
    return %arg0, %arg1, %c0_i32 : i32, i32, i32
  }
  func.func @transform_1(%arg0: i32, %arg1: i32) -> (i32, i32, i32) {
    %c0_i32 = arith.constant 0 : i32
    %c0_i32_0 = arith.constant 0 : i32
    %c0_i32_1 = arith.constant 0 : i32
    return %arg0, %c0_i32, %c0_i32_0 : i32, i32, i32
  }
  func.func @transform_2(%arg0: i32, %arg1: i32) -> (i32, i32, i32) {
    %c0_i32 = arith.constant 0 : i32
    %c0_i32_0 = arith.constant 0 : i32
    %c0_i32_1 = arith.constant 0 : i32
    return %arg0, %c0_i32, %c0_i32_0 : i32, i32, i32
  }
  func.func @transform_3(%arg0: i32, %arg1: i32) -> (i32, i32, i32) {
    %c0_i32 = arith.constant 0 : i32
    %c0_i32_0 = arith.constant 0 : i32
    %c0_i32_1 = arith.constant 0 : i32
    return %arg0, %c0_i32, %c0_i32_0 : i32, i32, i32
  }
  func.func @transform_4(%arg0: i32, %arg1: i32) -> (i32, i32) {
    %c0_i32 = arith.constant 0 : i32
    %c0_i32_0 = arith.constant 0 : i32
    %c0_i32_1 = arith.constant 0 : i32
    return %c0_i32, %c0_i32_0 : i32, i32
  }
  func.func @transform_5(%arg0: i32, %arg1: i32) -> (i32, i32) {
    %c0_i32 = arith.constant 0 : i32
    %c0_i32_0 = arith.constant 0 : i32
    %c0_i32_1 = arith.constant 0 : i32
    return %c0_i32, %c0_i32_0 : i32, i32
  }
  func.func @transform_6(%arg0: i32, %arg1: i32) -> (i32, i32) {
    %c0_i32 = arith.constant 0 : i32
    %c0_i32_0 = arith.constant 0 : i32
    %c0_i32_1 = arith.constant 0 : i32
    return %c0_i32, %c0_i32_0 : i32, i32
  }
  func.func @transform_7(%arg0: i32, %arg1: i32) -> (i32, i32) {
    %c0_i32 = arith.constant 0 : i32
    %c0_i32_0 = arith.constant 0 : i32
    %c0_i32_1 = arith.constant 0 : i32
    return %c0_i32, %c0_i32_0 : i32, i32
  }
  func.func @transform_8(%arg0: i32, %arg1: i32) -> (i32, i32) {
    %c0_i32 = arith.constant 0 : i32
    %c0_i32_0 = arith.constant 0 : i32
    %c0_i32_1 = arith.constant 0 : i32
    return %c0_i32, %c0_i32_0 : i32, i32
  }
  func.func @transform_9(%arg0: i32, %arg1: i32) -> (i32, i32) {
    %c0_i32 = arith.constant 0 : i32
    %c0_i32_0 = arith.constant 0 : i32
    %c0_i32_1 = arith.constant 0 : i32
    return %c0_i32, %c0_i32_0 : i32, i32
  }
  func.func @transform_10(%arg0: i32, %arg1: i32) -> (i32, i32) {
    %c0_i32 = arith.constant 0 : i32
    %c0_i32_0 = arith.constant 0 : i32
    %c0_i32_1 = arith.constant 0 : i32
    return %c0_i32, %c0_i32_0 : i32, i32
  }
  func.func @transform_11(%arg0: i32, %arg1: i32) -> (i32, i32) {
    %c0_i32 = arith.constant 0 : i32
    %c0_i32_0 = arith.constant 0 : i32
    %c0_i32_1 = arith.constant 0 : i32
    return %c0_i32, %c0_i32_0 : i32, i32
  }
  func.func @transform_12(%arg0: i32, %arg1: i32) -> (i32, i32) {
    %c0_i32 = arith.constant 0 : i32
    %c0_i32_0 = arith.constant 0 : i32
    %c0_i32_1 = arith.constant 0 : i32
    return %c0_i32, %c0_i32_0 : i32, i32
  }
  func.func @transform_13(%arg0: i32, %arg1: i32) -> (i32, i32) {
    %c0_i32 = arith.constant 0 : i32
    %c0_i32_0 = arith.constant 0 : i32
    %c0_i32_1 = arith.constant 0 : i32
    return %c0_i32, %c0_i32_0 : i32, i32
  }
  func.func @transform_14(%arg0: i32, %arg1: i32) -> (i32, i32) {
    %c0_i32 = arith.constant 0 : i32
    %c0_i32_0 = arith.constant 0 : i32
    %c0_i32_1 = arith.constant 0 : i32
    return %c0_i32, %c0_i32_0 : i32, i32
  }
  func.func @transform_15(%arg0: i32, %arg1: i32) -> (i32, i32) {
    %c0_i32 = arith.constant 0 : i32
    %c0_i32_0 = arith.constant 0 : i32
    %c0_i32_1 = arith.constant 0 : i32
    return %c0_i32, %c0_i32_0 : i32, i32
  }
  func.func @transform_16(%arg0: i32, %arg1: i32) -> (i32, i32, i32) {
    %c0_i32 = arith.constant 0 : i32
    %c0_i32_0 = arith.constant 0 : i32
    return %arg0, %arg1, %c0_i32 : i32, i32, i32
  }
}

module attributes {stable_mosaic.version = 11 : i64} {
  func.func @_decoder_layer_kernel(%arg0: i32, %arg1: i32, %arg2: memref<1x8x32xf32, #tpu.memory_space<vmem>>, %arg3: memref<1x8x32xbf16, #tpu.memory_space<vmem>>, %arg4: memref<1x16x32xbf16, #tpu.memory_space<vmem>>, %arg5: memref<1x1x16xf32, #tpu.memory_space<vmem>>, %arg6: memref<32x32xbf16, #tpu.memory_space<vmem>>, %arg7: memref<32x32xbf16, #tpu.memory_space<vmem>>, %arg8: memref<32x32xbf16, #tpu.memory_space<vmem>>, %arg9: memref<32x32xbf16, #tpu.memory_space<vmem>>, %arg10: memref<32x32xbf16, #tpu.memory_space<vmem>>, %arg11: memref<32x32xbf16, #tpu.memory_space<vmem>>, %arg12: memref<32x32xbf16, #tpu.memory_space<vmem>>, %arg13: memref<32x32xbf16, #tpu.memory_space<vmem>>, %arg14: memref<32x64xbf16, #tpu.memory_space<vmem>>, %arg15: memref<64x32xbf16, #tpu.memory_space<vmem>>, %arg16: memref<16x32xf32, #tpu.memory_space<vmem>>, %arg17: memref<1x64xf32, #tpu.memory_space<vmem>>, %arg18: memref<1x8x32xf32, #tpu.memory_space<vmem>>) attributes {dimension_semantics = [#tpu.dimension_semantics<parallel>, #tpu.dimension_semantics<parallel>], iteration_bounds = array<i64: 2, 1>, scalar_prefetch = 0 : i64, scratch_operands = 0 : i64, tpu.core_type = #tpu.core_type<tc>, window_params = [{transform_indices = @transform_0, window_bounds = array<i64: 1, 8, 32>}, {transform_indices = @transform_1, window_bounds = array<i64: 1, 8, 32>}, {transform_indices = @transform_2, window_bounds = array<i64: 1, 16, 32>}, {transform_indices = @transform_3, window_bounds = array<i64: 1, 1, 16>}, {pipeline_mode = #tpu.pipeline_mode<synchronous>, transform_indices = @transform_4, window_bounds = array<i64: 32, 32>}, {pipeline_mode = #tpu.pipeline_mode<synchronous>, transform_indices = @transform_5, window_bounds = array<i64: 32, 32>}, {pipeline_mode = #tpu.pipeline_mode<synchronous>, transform_indices = @transform_6, window_bounds = array<i64: 32, 32>}, {pipeline_mode = #tpu.pipeline_mode<synchronous>, transform_indices = @transform_7, window_bounds = array<i64: 32, 32>}, {pipeline_mode = #tpu.pipeline_mode<synchronous>, transform_indices = @transform_8, window_bounds = array<i64: 32, 32>}, {pipeline_mode = #tpu.pipeline_mode<synchronous>, transform_indices = @transform_9, window_bounds = array<i64: 32, 32>}, {pipeline_mode = #tpu.pipeline_mode<synchronous>, transform_indices = @transform_10, window_bounds = array<i64: 32, 32>}, {pipeline_mode = #tpu.pipeline_mode<synchronous>, transform_indices = @transform_11, window_bounds = array<i64: 32, 32>}, {pipeline_mode = #tpu.pipeline_mode<synchronous>, transform_indices = @transform_12, window_bounds = array<i64: 32, 64>}, {pipeline_mode = #tpu.pipeline_mode<synchronous>, transform_indices = @transform_13, window_bounds = array<i64: 64, 32>}, {pipeline_mode = #tpu.pipeline_mode<synchronous>, transform_indices = @transform_14, window_bounds = array<i64: 16, 32>}, {pipeline_mode = #tpu.pipeline_mode<synchronous>, transform_indices = @transform_15, window_bounds = array<i64: 1, 64>}, {transform_indices = @transform_16, window_bounds = array<i64: 1, 8, 32>}]} {
    %c0 = arith.constant 0 : index
    %c0_0 = arith.constant 0 : index
    %c0_1 = arith.constant 0 : index
    %0 = vector.load %arg2[%c0, %c0_0, %c0_1] : memref<1x8x32xf32, #tpu.memory_space<vmem>>, vector<1x8x32xf32>
    %1 = vector.shape_cast %0 : vector<1x8x32xf32> to vector<8x32xf32>
    %c0_2 = arith.constant 0 : index
    %c0_3 = arith.constant 0 : index
    %c0_4 = arith.constant 0 : index
    %2 = vector.load %arg3[%c0_2, %c0_3, %c0_4] : memref<1x8x32xbf16, #tpu.memory_space<vmem>>, vector<1x8x32xbf16>
    %3 = vector.shape_cast %2 : vector<1x8x32xbf16> to vector<8x32xbf16>
    %c0_5 = arith.constant 0 : index
    %c0_6 = arith.constant 0 : index
    %c0_7 = arith.constant 0 : index
    %4 = vector.load %arg4[%c0_5, %c0_6, %c0_7] : memref<1x16x32xbf16, #tpu.memory_space<vmem>>, vector<1x16x32xbf16>
    %5 = vector.shape_cast %4 : vector<1x16x32xbf16> to vector<16x32xbf16>
    %c0_8 = arith.constant 0 : index
    %c0_9 = arith.constant 0 : index
    %c0_10 = arith.constant 0 : index
    %6 = vector.load %arg5[%c0_8, %c0_9, %c0_10] : memref<1x1x16xf32, #tpu.memory_space<vmem>>, vector<1x1x16xf32>
    %7 = vector.shape_cast %6 : vector<1x1x16xf32> to vector<1x16xf32>
    %c0_11 = arith.constant 0 : index
    %c0_12 = arith.constant 0 : index
    %8 = vector.load %arg16[%c0_11, %c0_12] : memref<16x32xf32, #tpu.memory_space<vmem>>, vector<16x32xf32>
    %c0_13 = arith.constant 0 : index
    %c0_14 = arith.constant 0 : index
    %9 = vector.load %arg17[%c0_13, %c0_14] : memref<1x64xf32, #tpu.memory_space<vmem>>, vector<1x64xf32>
    %c8_i32 = arith.constant 8 : i32
    %10 = arith.muli %arg1, %c8_i32 : i32
    %11 = tpu.iota {dimensions = array<i32: 0>} : vector<8x8xi32>
    %12 = vector.broadcast %10 : i32 to vector<8x8xi32>
    %13 = arith.addi %11, %12 : vector<8x8xi32>
    %14 = tpu.iota {dimensions = array<i32: 1>} : vector<8x8xi32>
    %15 = arith.cmpi sge, %13, %14 : vector<8x8xi32>
    %cst = arith.constant 0.000000e+00 : f32
    %cst_15 = arith.constant -1.000000e+09 : f32
    %16 = vector.broadcast %cst : f32 to vector<8x8xf32>
    %17 = vector.broadcast %cst_15 : f32 to vector<8x8xf32>
    %18 = arith.select %15, %16, %17 : vector<8x8xi1>, vector<8x8xf32>
    %19 = arith.truncf %1 : vector<8x32xf32> to vector<8x32xbf16>
    %20 = vector.shape_cast %18 : vector<8x8xf32> to vector<1x8x8xf32>
    %21 = vector.extract_strided_slice %8 {offsets = [0, 0], sizes = [1, 32], strides = [1, 1]} : vector<16x32xf32> to vector<1x32xf32>
    %22 = vector.extract_strided_slice %8 {offsets = [1, 0], sizes = [1, 32], strides = [1, 1]} : vector<16x32xf32> to vector<1x32xf32>
    %23 = vector.extract_strided_slice %8 {offsets = [2, 0], sizes = [1, 32], strides = [1, 1]} : vector<16x32xf32> to vector<1x32xf32>
    %c0_16 = arith.constant 0 : index
    %c0_17 = arith.constant 0 : index
    %24 = vector.load %arg6[%c0_16, %c0_17] : memref<32x32xbf16, #tpu.memory_space<vmem>>, vector<32x32xbf16>
    %cst_18 = arith.constant dense<0.000000e+00> : vector<8x32xf32>
    %25 = tpu.matmul %19, %24, %cst_18 {dimension_numbers = #tpu.dot_dimension_numbers<[1], [0], [0], [1], [0, 0, 1, 1], [], []>} : vector<8x32xbf16>, vector<32x32xbf16>, vector<8x32xf32> -> vector<8x32xf32>
    %26 = vector.broadcast %21 : vector<1x32xf32> to vector<8x32xf32>
    %27 = arith.addf %25, %26 : vector<8x32xf32>
    %c0_19 = arith.constant 0 : index
    %c0_20 = arith.constant 0 : index
    %28 = vector.load %arg7[%c0_19, %c0_20] : memref<32x32xbf16, #tpu.memory_space<vmem>>, vector<32x32xbf16>
    %cst_21 = arith.constant dense<0.000000e+00> : vector<8x32xf32>
    %29 = tpu.matmul %3, %28, %cst_21 {dimension_numbers = #tpu.dot_dimension_numbers<[1], [0], [0], [1], [0, 0, 1, 1], [], []>} : vector<8x32xbf16>, vector<32x32xbf16>, vector<8x32xf32> -> vector<8x32xf32>
    %c0_22 = arith.constant 0 : index
    %c0_23 = arith.constant 0 : index
    %30 = vector.load %arg8[%c0_22, %c0_23] : memref<32x32xbf16, #tpu.memory_space<vmem>>, vector<32x32xbf16>
    %cst_24 = arith.constant dense<0.000000e+00> : vector<8x32xf32>
    %31 = tpu.matmul %3, %30, %cst_24 {dimension_numbers = #tpu.dot_dimension_numbers<[1], [0], [0], [1], [0, 0, 1, 1], [], []>} : vector<8x32xbf16>, vector<32x32xbf16>, vector<8x32xf32> -> vector<8x32xf32>
    %32 = vector.broadcast %22 : vector<1x32xf32> to vector<8x32xf32>
    %33 = arith.addf %31, %32 : vector<8x32xf32>
    %34 = vector.extract_strided_slice %27 {offsets = [0, 0], sizes = [8, 8], strides = [1, 1]} : vector<8x32xf32> to vector<8x8xf32>
    %35 = vector.extract_strided_slice %27 {offsets = [0, 8], sizes = [8, 8], strides = [1, 1]} : vector<8x32xf32> to vector<8x8xf32>
    %36 = vector.extract_strided_slice %27 {offsets = [0, 16], sizes = [8, 8], strides = [1, 1]} : vector<8x32xf32> to vector<8x8xf32>
    %37 = vector.extract_strided_slice %27 {offsets = [0, 24], sizes = [8, 8], strides = [1, 1]} : vector<8x32xf32> to vector<8x8xf32>
    %38 = vector.shape_cast %34 : vector<8x8xf32> to vector<1x8x8xf32>
    %39 = vector.shape_cast %35 : vector<8x8xf32> to vector<1x8x8xf32>
    %40 = vector.shape_cast %36 : vector<8x8xf32> to vector<1x8x8xf32>
    %41 = vector.shape_cast %37 : vector<8x8xf32> to vector<1x8x8xf32>
    %42 = tpu.concatenate %38, %39, %40, %41 in 0 : vector<1x8x8xf32>, vector<1x8x8xf32>, vector<1x8x8xf32>, vector<1x8x8xf32> -> vector<4x8x8xf32>
    %43 = arith.truncf %42 : vector<4x8x8xf32> to vector<4x8x8xbf16>
    %44 = vector.extract_strided_slice %29 {offsets = [0, 0], sizes = [8, 8], strides = [1, 1]} : vector<8x32xf32> to vector<8x8xf32>
    %45 = vector.extract_strided_slice %29 {offsets = [0, 8], sizes = [8, 8], strides = [1, 1]} : vector<8x32xf32> to vector<8x8xf32>
    %46 = vector.extract_strided_slice %29 {offsets = [0, 16], sizes = [8, 8], strides = [1, 1]} : vector<8x32xf32> to vector<8x8xf32>
    %47 = vector.extract_strided_slice %29 {offsets = [0, 24], sizes = [8, 8], strides = [1, 1]} : vector<8x32xf32> to vector<8x8xf32>
    %48 = vector.shape_cast %44 : vector<8x8xf32> to vector<1x8x8xf32>
    %49 = vector.shape_cast %45 : vector<8x8xf32> to vector<1x8x8xf32>
    %50 = vector.shape_cast %46 : vector<8x8xf32> to vector<1x8x8xf32>
    %51 = vector.shape_cast %47 : vector<8x8xf32> to vector<1x8x8xf32>
    %52 = tpu.concatenate %48, %49, %50, %51 in 0 : vector<1x8x8xf32>, vector<1x8x8xf32>, vector<1x8x8xf32>, vector<1x8x8xf32> -> vector<4x8x8xf32>
    %53 = arith.truncf %52 : vector<4x8x8xf32> to vector<4x8x8xbf16>
    %54 = vector.extract_strided_slice %33 {offsets = [0, 0], sizes = [8, 8], strides = [1, 1]} : vector<8x32xf32> to vector<8x8xf32>
    %55 = vector.extract_strided_slice %33 {offsets = [0, 8], sizes = [8, 8], strides = [1, 1]} : vector<8x32xf32> to vector<8x8xf32>
    %56 = vector.extract_strided_slice %33 {offsets = [0, 16], sizes = [8, 8], strides = [1, 1]} : vector<8x32xf32> to vector<8x8xf32>
    %57 = vector.extract_strided_slice %33 {offsets = [0, 24], sizes = [8, 8], strides = [1, 1]} : vector<8x32xf32> to vector<8x8xf32>
    %58 = vector.shape_cast %54 : vector<8x8xf32> to vector<1x8x8xf32>
    %59 = vector.shape_cast %55 : vector<8x8xf32> to vector<1x8x8xf32>
    %60 = vector.shape_cast %56 : vector<8x8xf32> to vector<1x8x8xf32>
    %61 = vector.shape_cast %57 : vector<8x8xf32> to vector<1x8x8xf32>
    %62 = tpu.concatenate %58, %59, %60, %61 in 0 : vector<1x8x8xf32>, vector<1x8x8xf32>, vector<1x8x8xf32>, vector<1x8x8xf32> -> vector<4x8x8xf32>
    %63 = arith.truncf %62 : vector<4x8x8xf32> to vector<4x8x8xbf16>
    "tpu.trace_start"() <{level = 10 : i32, message = "hqf,hkf->hqk"}> : () -> ()
    %cst_25 = arith.constant dense<0.000000e+00> : vector<4x8x8xf32>
    %64 = tpu.matmul %43, %53, %cst_25 {dimension_numbers = #tpu.dot_dimension_numbers<[2], [2], [1], [1], [0, 0, 0, 1, 1, 1], [0], [0]>} : vector<4x8x8xbf16>, vector<4x8x8xbf16>, vector<4x8x8xf32> -> vector<4x8x8xf32>
    "tpu.trace_stop"() : () -> ()
    %65 = vector.broadcast %20 : vector<1x8x8xf32> to vector<4x8x8xf32>
    %66 = arith.addf %64, %65 : vector<4x8x8xf32>
    %cst_26 = arith.constant dense<0xFF800000> : vector<4x8xf32>
    %67 = vector.multi_reduction <maximumf>, %66, %cst_26 [2] : vector<4x8x8xf32> to vector<4x8xf32>
    %68 = vector.shape_cast %67 : vector<4x8xf32> to vector<4x8x1xf32>
    %69 = vector.broadcast %68 : vector<4x8x1xf32> to vector<4x8x8xf32>
    %70 = arith.subf %66, %69 : vector<4x8x8xf32>
    %71 = math.exp %70 : vector<4x8x8xf32>
    %cst_27 = arith.constant dense<0.000000e+00> : vector<4x8xf32>
    %72 = vector.multi_reduction <add>, %71, %cst_27 [2] : vector<4x8x8xf32> to vector<4x8xf32>
    %73 = vector.shape_cast %72 : vector<4x8xf32> to vector<4x8x1xf32>
    %74 = arith.truncf %71 : vector<4x8x8xf32> to vector<4x8x8xbf16>
    "tpu.trace_start"() <{level = 10 : i32, message = "hqk,hkf->hqf"}> : () -> ()
    %cst_28 = arith.constant dense<0.000000e+00> : vector<4x8x8xf32>
    %75 = tpu.matmul %74, %63, %cst_28 {dimension_numbers = #tpu.dot_dimension_numbers<[2], [1], [1], [2], [0, 0, 0, 1, 1, 2], [0], [0]>} : vector<4x8x8xbf16>, vector<4x8x8xbf16>, vector<4x8x8xf32> -> vector<4x8x8xf32>
    "tpu.trace_stop"() : () -> ()
    %76 = tpu.reciprocal %73 {approx = true} : vector<4x8x1xf32> -> vector<4x8x1xf32>
    %77 = vector.broadcast %76 : vector<4x8x1xf32> to vector<4x8x8xf32>
    %78 = arith.mulf %75, %77 : vector<4x8x8xf32>
    %79 = vector.extract_strided_slice %78 {offsets = [0, 0, 0], sizes = [1, 8, 8], strides = [1, 1, 1]} : vector<4x8x8xf32> to vector<1x8x8xf32>
    %80 = vector.shape_cast %79 : vector<1x8x8xf32> to vector<8x8xf32>
    %81 = vector.extract_strided_slice %78 {offsets = [1, 0, 0], sizes = [1, 8, 8], strides = [1, 1, 1]} : vector<4x8x8xf32> to vector<1x8x8xf32>
    %82 = vector.shape_cast %81 : vector<1x8x8xf32> to vector<8x8xf32>
    %83 = vector.extract_strided_slice %78 {offsets = [2, 0, 0], sizes = [1, 8, 8], strides = [1, 1, 1]} : vector<4x8x8xf32> to vector<1x8x8xf32>
    %84 = vector.shape_cast %83 : vector<1x8x8xf32> to vector<8x8xf32>
    %85 = vector.extract_strided_slice %78 {offsets = [3, 0, 0], sizes = [1, 8, 8], strides = [1, 1, 1]} : vector<4x8x8xf32> to vector<1x8x8xf32>
    %86 = vector.shape_cast %85 : vector<1x8x8xf32> to vector<8x8xf32>
    %87 = tpu.concatenate %80, %82, %84, %86 in 1 : vector<8x8xf32>, vector<8x8xf32>, vector<8x8xf32>, vector<8x8xf32> -> vector<8x32xf32>
    %88 = arith.truncf %87 : vector<8x32xf32> to vector<8x32xbf16>
    %c0_29 = arith.constant 0 : index
    %c0_30 = arith.constant 0 : index
    %89 = vector.load %arg9[%c0_29, %c0_30] : memref<32x32xbf16, #tpu.memory_space<vmem>>, vector<32x32xbf16>
    %cst_31 = arith.constant dense<0.000000e+00> : vector<8x32xf32>
    %90 = tpu.matmul %88, %89, %cst_31 {dimension_numbers = #tpu.dot_dimension_numbers<[1], [0], [0], [1], [0, 0, 1, 1], [], []>} : vector<8x32xbf16>, vector<32x32xbf16>, vector<8x32xf32> -> vector<8x32xf32>
    %91 = vector.broadcast %23 : vector<1x32xf32> to vector<8x32xf32>
    %92 = arith.addf %90, %91 : vector<8x32xf32>
    %93 = arith.addf %1, %92 : vector<8x32xf32>
    %94 = vector.extract_strided_slice %8 {offsets = [3, 0], sizes = [1, 32], strides = [1, 1]} : vector<16x32xf32> to vector<1x32xf32>
    %95 = vector.extract_strided_slice %8 {offsets = [4, 0], sizes = [1, 32], strides = [1, 1]} : vector<16x32xf32> to vector<1x32xf32>
    %cst_32 = arith.constant dense<0.000000e+00> : vector<8xf32>
    %96 = vector.multi_reduction <add>, %93, %cst_32 [1] : vector<8x32xf32> to vector<8xf32>
    %97 = vector.shape_cast %96 : vector<8xf32> to vector<8x1xf32>
    %cst_33 = arith.constant 3.200000e+01 : f32
    %98 = vector.broadcast %cst_33 : f32 to vector<8x1xf32>
    %99 = arith.divf %97, %98 : vector<8x1xf32>
    %100 = vector.broadcast %99 : vector<8x1xf32> to vector<8x32xf32>
    %101 = arith.subf %93, %100 : vector<8x32xf32>
    %102 = arith.mulf %101, %101 : vector<8x32xf32>
    %cst_34 = arith.constant dense<0.000000e+00> : vector<8xf32>
    %103 = vector.multi_reduction <add>, %102, %cst_34 [1] : vector<8x32xf32> to vector<8xf32>
    %104 = vector.shape_cast %103 : vector<8xf32> to vector<8x1xf32>
    %cst_35 = arith.constant 3.200000e+01 : f32
    %105 = vector.broadcast %cst_35 : f32 to vector<8x1xf32>
    %106 = arith.divf %104, %105 : vector<8x1xf32>
    %107 = vector.broadcast %99 : vector<8x1xf32> to vector<8x32xf32>
    %108 = arith.subf %93, %107 : vector<8x32xf32>
    %cst_36 = arith.constant 9.99999974E-6 : f32
    %109 = vector.broadcast %cst_36 : f32 to vector<8x1xf32>
    %110 = arith.addf %106, %109 : vector<8x1xf32>
    %111 = math.rsqrt %110 : vector<8x1xf32>
    %112 = vector.broadcast %111 : vector<8x1xf32> to vector<8x32xf32>
    %113 = arith.mulf %108, %112 : vector<8x32xf32>
    %114 = vector.broadcast %94 : vector<1x32xf32> to vector<8x32xf32>
    %115 = arith.mulf %113, %114 : vector<8x32xf32>
    %116 = vector.broadcast %95 : vector<1x32xf32> to vector<8x32xf32>
    %117 = arith.addf %115, %116 : vector<8x32xf32>
    %118 = arith.truncf %117 : vector<8x32xf32> to vector<8x32xbf16>
    %119 = vector.shape_cast %7 : vector<1x16xf32> to vector<1x1x16xf32>
    %120 = vector.extract_strided_slice %8 {offsets = [5, 0], sizes = [1, 32], strides = [1, 1]} : vector<16x32xf32> to vector<1x32xf32>
    %121 = vector.extract_strided_slice %8 {offsets = [6, 0], sizes = [1, 32], strides = [1, 1]} : vector<16x32xf32> to vector<1x32xf32>
    %122 = vector.extract_strided_slice %8 {offsets = [7, 0], sizes = [1, 32], strides = [1, 1]} : vector<16x32xf32> to vector<1x32xf32>
    %c0_37 = arith.constant 0 : index
    %c0_38 = arith.constant 0 : index
    %123 = vector.load %arg10[%c0_37, %c0_38] : memref<32x32xbf16, #tpu.memory_space<vmem>>, vector<32x32xbf16>
    %cst_39 = arith.constant dense<0.000000e+00> : vector<8x32xf32>
    %124 = tpu.matmul %118, %123, %cst_39 {dimension_numbers = #tpu.dot_dimension_numbers<[1], [0], [0], [1], [0, 0, 1, 1], [], []>} : vector<8x32xbf16>, vector<32x32xbf16>, vector<8x32xf32> -> vector<8x32xf32>
    %125 = vector.broadcast %120 : vector<1x32xf32> to vector<8x32xf32>
    %126 = arith.addf %124, %125 : vector<8x32xf32>
    %c0_40 = arith.constant 0 : index
    %c0_41 = arith.constant 0 : index
    %127 = vector.load %arg11[%c0_40, %c0_41] : memref<32x32xbf16, #tpu.memory_space<vmem>>, vector<32x32xbf16>
    %cst_42 = arith.constant dense<0.000000e+00> : vector<16x32xf32>
    %128 = tpu.matmul %5, %127, %cst_42 {dimension_numbers = #tpu.dot_dimension_numbers<[1], [0], [0], [1], [0, 0, 1, 1], [], []>} : vector<16x32xbf16>, vector<32x32xbf16>, vector<16x32xf32> -> vector<16x32xf32>
    %c0_43 = arith.constant 0 : index
    %c0_44 = arith.constant 0 : index
    %129 = vector.load %arg12[%c0_43, %c0_44] : memref<32x32xbf16, #tpu.memory_space<vmem>>, vector<32x32xbf16>
    %cst_45 = arith.constant dense<0.000000e+00> : vector<16x32xf32>
    %130 = tpu.matmul %5, %129, %cst_45 {dimension_numbers = #tpu.dot_dimension_numbers<[1], [0], [0], [1], [0, 0, 1, 1], [], []>} : vector<16x32xbf16>, vector<32x32xbf16>, vector<16x32xf32> -> vector<16x32xf32>
    %131 = vector.broadcast %121 : vector<1x32xf32> to vector<16x32xf32>
    %132 = arith.addf %130, %131 : vector<16x32xf32>
    %133 = vector.extract_strided_slice %126 {offsets = [0, 0], sizes = [8, 8], strides = [1, 1]} : vector<8x32xf32> to vector<8x8xf32>
    %134 = vector.extract_strided_slice %126 {offsets = [0, 8], sizes = [8, 8], strides = [1, 1]} : vector<8x32xf32> to vector<8x8xf32>
    %135 = vector.extract_strided_slice %126 {offsets = [0, 16], sizes = [8, 8], strides = [1, 1]} : vector<8x32xf32> to vector<8x8xf32>
    %136 = vector.extract_strided_slice %126 {offsets = [0, 24], sizes = [8, 8], strides = [1, 1]} : vector<8x32xf32> to vector<8x8xf32>
    %137 = vector.shape_cast %133 : vector<8x8xf32> to vector<1x8x8xf32>
    %138 = vector.shape_cast %134 : vector<8x8xf32> to vector<1x8x8xf32>
    %139 = vector.shape_cast %135 : vector<8x8xf32> to vector<1x8x8xf32>
    %140 = vector.shape_cast %136 : vector<8x8xf32> to vector<1x8x8xf32>
    %141 = tpu.concatenate %137, %138, %139, %140 in 0 : vector<1x8x8xf32>, vector<1x8x8xf32>, vector<1x8x8xf32>, vector<1x8x8xf32> -> vector<4x8x8xf32>
    %142 = arith.truncf %141 : vector<4x8x8xf32> to vector<4x8x8xbf16>
    %143 = vector.extract_strided_slice %128 {offsets = [0, 0], sizes = [16, 8], strides = [1, 1]} : vector<16x32xf32> to vector<16x8xf32>
    %144 = vector.extract_strided_slice %128 {offsets = [0, 8], sizes = [16, 8], strides = [1, 1]} : vector<16x32xf32> to vector<16x8xf32>
    %145 = vector.extract_strided_slice %128 {offsets = [0, 16], sizes = [16, 8], strides = [1, 1]} : vector<16x32xf32> to vector<16x8xf32>
    %146 = vector.extract_strided_slice %128 {offsets = [0, 24], sizes = [16, 8], strides = [1, 1]} : vector<16x32xf32> to vector<16x8xf32>
    %147 = vector.shape_cast %143 : vector<16x8xf32> to vector<1x16x8xf32>
    %148 = vector.shape_cast %144 : vector<16x8xf32> to vector<1x16x8xf32>
    %149 = vector.shape_cast %145 : vector<16x8xf32> to vector<1x16x8xf32>
    %150 = vector.shape_cast %146 : vector<16x8xf32> to vector<1x16x8xf32>
    %151 = tpu.concatenate %147, %148, %149, %150 in 0 : vector<1x16x8xf32>, vector<1x16x8xf32>, vector<1x16x8xf32>, vector<1x16x8xf32> -> vector<4x16x8xf32>
    %152 = arith.truncf %151 : vector<4x16x8xf32> to vector<4x16x8xbf16>
    %153 = vector.extract_strided_slice %132 {offsets = [0, 0], sizes = [16, 8], strides = [1, 1]} : vector<16x32xf32> to vector<16x8xf32>
    %154 = vector.extract_strided_slice %132 {offsets = [0, 8], sizes = [16, 8], strides = [1, 1]} : vector<16x32xf32> to vector<16x8xf32>
    %155 = vector.extract_strided_slice %132 {offsets = [0, 16], sizes = [16, 8], strides = [1, 1]} : vector<16x32xf32> to vector<16x8xf32>
    %156 = vector.extract_strided_slice %132 {offsets = [0, 24], sizes = [16, 8], strides = [1, 1]} : vector<16x32xf32> to vector<16x8xf32>
    %157 = vector.shape_cast %153 : vector<16x8xf32> to vector<1x16x8xf32>
    %158 = vector.shape_cast %154 : vector<16x8xf32> to vector<1x16x8xf32>
    %159 = vector.shape_cast %155 : vector<16x8xf32> to vector<1x16x8xf32>
    %160 = vector.shape_cast %156 : vector<16x8xf32> to vector<1x16x8xf32>
    %161 = tpu.concatenate %157, %158, %159, %160 in 0 : vector<1x16x8xf32>, vector<1x16x8xf32>, vector<1x16x8xf32>, vector<1x16x8xf32> -> vector<4x16x8xf32>
    %162 = arith.truncf %161 : vector<4x16x8xf32> to vector<4x16x8xbf16>
    "tpu.trace_start"() <{level = 10 : i32, message = "hqf,hkf->hqk"}> : () -> ()
    %cst_46 = arith.constant dense<0.000000e+00> : vector<4x8x16xf32>
    %163 = tpu.matmul %142, %152, %cst_46 {dimension_numbers = #tpu.dot_dimension_numbers<[2], [2], [1], [1], [0, 0, 0, 1, 1, 1], [0], [0]>} : vector<4x8x8xbf16>, vector<4x16x8xbf16>, vector<4x8x16xf32> -> vector<4x8x16xf32>
    "tpu.trace_stop"() : () -> ()
    %164 = vector.broadcast %119 : vector<1x1x16xf32> to vector<4x8x16xf32>
    %165 = arith.addf %163, %164 : vector<4x8x16xf32>
    %cst_47 = arith.constant dense<0xFF800000> : vector<4x8xf32>
    %166 = vector.multi_reduction <maximumf>, %165, %cst_47 [2] : vector<4x8x16xf32> to vector<4x8xf32>
    %167 = vector.shape_cast %166 : vector<4x8xf32> to vector<4x8x1xf32>
    %168 = vector.broadcast %167 : vector<4x8x1xf32> to vector<4x8x16xf32>
    %169 = arith.subf %165, %168 : vector<4x8x16xf32>
    %170 = math.exp %169 : vector<4x8x16xf32>
    %cst_48 = arith.constant dense<0.000000e+00> : vector<4x8xf32>
    %171 = vector.multi_reduction <add>, %170, %cst_48 [2] : vector<4x8x16xf32> to vector<4x8xf32>
    %172 = vector.shape_cast %171 : vector<4x8xf32> to vector<4x8x1xf32>
    %173 = arith.truncf %170 : vector<4x8x16xf32> to vector<4x8x16xbf16>
    "tpu.trace_start"() <{level = 10 : i32, message = "hqk,hkf->hqf"}> : () -> ()
    %cst_49 = arith.constant dense<0.000000e+00> : vector<4x8x8xf32>
    %174 = tpu.matmul %173, %162, %cst_49 {dimension_numbers = #tpu.dot_dimension_numbers<[2], [1], [1], [2], [0, 0, 0, 1, 1, 2], [0], [0]>} : vector<4x8x16xbf16>, vector<4x16x8xbf16>, vector<4x8x8xf32> -> vector<4x8x8xf32>
    "tpu.trace_stop"() : () -> ()
    %175 = tpu.reciprocal %172 {approx = true} : vector<4x8x1xf32> -> vector<4x8x1xf32>
    %176 = vector.broadcast %175 : vector<4x8x1xf32> to vector<4x8x8xf32>
    %177 = arith.mulf %174, %176 : vector<4x8x8xf32>
    %178 = vector.extract_strided_slice %177 {offsets = [0, 0, 0], sizes = [1, 8, 8], strides = [1, 1, 1]} : vector<4x8x8xf32> to vector<1x8x8xf32>
    %179 = vector.shape_cast %178 : vector<1x8x8xf32> to vector<8x8xf32>
    %180 = vector.extract_strided_slice %177 {offsets = [1, 0, 0], sizes = [1, 8, 8], strides = [1, 1, 1]} : vector<4x8x8xf32> to vector<1x8x8xf32>
    %181 = vector.shape_cast %180 : vector<1x8x8xf32> to vector<8x8xf32>
    %182 = vector.extract_strided_slice %177 {offsets = [2, 0, 0], sizes = [1, 8, 8], strides = [1, 1, 1]} : vector<4x8x8xf32> to vector<1x8x8xf32>
    %183 = vector.shape_cast %182 : vector<1x8x8xf32> to vector<8x8xf32>
    %184 = vector.extract_strided_slice %177 {offsets = [3, 0, 0], sizes = [1, 8, 8], strides = [1, 1, 1]} : vector<4x8x8xf32> to vector<1x8x8xf32>
    %185 = vector.shape_cast %184 : vector<1x8x8xf32> to vector<8x8xf32>
    %186 = tpu.concatenate %179, %181, %183, %185 in 1 : vector<8x8xf32>, vector<8x8xf32>, vector<8x8xf32>, vector<8x8xf32> -> vector<8x32xf32>
    %187 = arith.truncf %186 : vector<8x32xf32> to vector<8x32xbf16>
    %c0_50 = arith.constant 0 : index
    %c0_51 = arith.constant 0 : index
    %188 = vector.load %arg13[%c0_50, %c0_51] : memref<32x32xbf16, #tpu.memory_space<vmem>>, vector<32x32xbf16>
    %cst_52 = arith.constant dense<0.000000e+00> : vector<8x32xf32>
    %189 = tpu.matmul %187, %188, %cst_52 {dimension_numbers = #tpu.dot_dimension_numbers<[1], [0], [0], [1], [0, 0, 1, 1], [], []>} : vector<8x32xbf16>, vector<32x32xbf16>, vector<8x32xf32> -> vector<8x32xf32>
    %190 = vector.broadcast %122 : vector<1x32xf32> to vector<8x32xf32>
    %191 = arith.addf %189, %190 : vector<8x32xf32>
    %192 = arith.addf %117, %191 : vector<8x32xf32>
    %193 = vector.extract_strided_slice %8 {offsets = [8, 0], sizes = [1, 32], strides = [1, 1]} : vector<16x32xf32> to vector<1x32xf32>
    %194 = vector.extract_strided_slice %8 {offsets = [9, 0], sizes = [1, 32], strides = [1, 1]} : vector<16x32xf32> to vector<1x32xf32>
    %cst_53 = arith.constant dense<0.000000e+00> : vector<8xf32>
    %195 = vector.multi_reduction <add>, %192, %cst_53 [1] : vector<8x32xf32> to vector<8xf32>
    %196 = vector.shape_cast %195 : vector<8xf32> to vector<8x1xf32>
    %cst_54 = arith.constant 3.200000e+01 : f32
    %197 = vector.broadcast %cst_54 : f32 to vector<8x1xf32>
    %198 = arith.divf %196, %197 : vector<8x1xf32>
    %199 = vector.broadcast %198 : vector<8x1xf32> to vector<8x32xf32>
    %200 = arith.subf %192, %199 : vector<8x32xf32>
    %201 = arith.mulf %200, %200 : vector<8x32xf32>
    %cst_55 = arith.constant dense<0.000000e+00> : vector<8xf32>
    %202 = vector.multi_reduction <add>, %201, %cst_55 [1] : vector<8x32xf32> to vector<8xf32>
    %203 = vector.shape_cast %202 : vector<8xf32> to vector<8x1xf32>
    %cst_56 = arith.constant 3.200000e+01 : f32
    %204 = vector.broadcast %cst_56 : f32 to vector<8x1xf32>
    %205 = arith.divf %203, %204 : vector<8x1xf32>
    %206 = vector.broadcast %198 : vector<8x1xf32> to vector<8x32xf32>
    %207 = arith.subf %192, %206 : vector<8x32xf32>
    %cst_57 = arith.constant 9.99999974E-6 : f32
    %208 = vector.broadcast %cst_57 : f32 to vector<8x1xf32>
    %209 = arith.addf %205, %208 : vector<8x1xf32>
    %210 = math.rsqrt %209 : vector<8x1xf32>
    %211 = vector.broadcast %210 : vector<8x1xf32> to vector<8x32xf32>
    %212 = arith.mulf %207, %211 : vector<8x32xf32>
    %213 = vector.broadcast %193 : vector<1x32xf32> to vector<8x32xf32>
    %214 = arith.mulf %212, %213 : vector<8x32xf32>
    %215 = vector.broadcast %194 : vector<1x32xf32> to vector<8x32xf32>
    %216 = arith.addf %214, %215 : vector<8x32xf32>
    %217 = arith.truncf %216 : vector<8x32xf32> to vector<8x32xbf16>
    %c0_58 = arith.constant 0 : index
    %c0_59 = arith.constant 0 : index
    %218 = vector.load %arg14[%c0_58, %c0_59] : memref<32x64xbf16, #tpu.memory_space<vmem>>, vector<32x64xbf16>
    %cst_60 = arith.constant dense<0.000000e+00> : vector<8x64xf32>
    %219 = tpu.matmul %217, %218, %cst_60 {dimension_numbers = #tpu.dot_dimension_numbers<[1], [0], [0], [1], [0, 0, 1, 1], [], []>} : vector<8x32xbf16>, vector<32x64xbf16>, vector<8x64xf32> -> vector<8x64xf32>
    %220 = vector.broadcast %9 : vector<1x64xf32> to vector<8x64xf32>
    %221 = arith.addf %219, %220 : vector<8x64xf32>
    %cst_61 = arith.constant 5.000000e-01 : f32
    %222 = vector.broadcast %cst_61 : f32 to vector<8x64xf32>
    %223 = arith.mulf %222, %221 : vector<8x64xf32>
    %cst_62 = arith.constant 0.707106769 : f32
    %224 = vector.broadcast %cst_62 : f32 to vector<8x64xf32>
    %225 = arith.mulf %221, %224 : vector<8x64xf32>
    %226 = math.erf %225 : vector<8x64xf32>
    %cst_63 = arith.constant 1.000000e+00 : f32
    %227 = vector.broadcast %cst_63 : f32 to vector<8x64xf32>
    %228 = arith.addf %227, %226 : vector<8x64xf32>
    %229 = arith.mulf %223, %228 : vector<8x64xf32>
    %230 = arith.truncf %229 : vector<8x64xf32> to vector<8x64xbf16>
    %c0_64 = arith.constant 0 : index
    %c0_65 = arith.constant 0 : index
    %231 = vector.load %arg15[%c0_64, %c0_65] : memref<64x32xbf16, #tpu.memory_space<vmem>>, vector<64x32xbf16>
    %cst_66 = arith.constant dense<0.000000e+00> : vector<8x32xf32>
    %232 = tpu.matmul %230, %231, %cst_66 {dimension_numbers = #tpu.dot_dimension_numbers<[1], [0], [0], [1], [0, 0, 1, 1], [], []>} : vector<8x64xbf16>, vector<64x32xbf16>, vector<8x32xf32> -> vector<8x32xf32>
    %233 = vector.extract_strided_slice %8 {offsets = [10, 0], sizes = [1, 32], strides = [1, 1]} : vector<16x32xf32> to vector<1x32xf32>
    %234 = vector.broadcast %233 : vector<1x32xf32> to vector<8x32xf32>
    %235 = arith.addf %232, %234 : vector<8x32xf32>
    %236 = arith.addf %216, %235 : vector<8x32xf32>
    %237 = vector.extract_strided_slice %8 {offsets = [11, 0], sizes = [1, 32], strides = [1, 1]} : vector<16x32xf32> to vector<1x32xf32>
    %238 = vector.extract_strided_slice %8 {offsets = [12, 0], sizes = [1, 32], strides = [1, 1]} : vector<16x32xf32> to vector<1x32xf32>
    %cst_67 = arith.constant dense<0.000000e+00> : vector<8xf32>
    %239 = vector.multi_reduction <add>, %236, %cst_67 [1] : vector<8x32xf32> to vector<8xf32>
    %240 = vector.shape_cast %239 : vector<8xf32> to vector<8x1xf32>
    %cst_68 = arith.constant 3.200000e+01 : f32
    %241 = vector.broadcast %cst_68 : f32 to vector<8x1xf32>
    %242 = arith.divf %240, %241 : vector<8x1xf32>
    %243 = vector.broadcast %242 : vector<8x1xf32> to vector<8x32xf32>
    %244 = arith.subf %236, %243 : vector<8x32xf32>
    %245 = arith.mulf %244, %244 : vector<8x32xf32>
    %cst_69 = arith.constant dense<0.000000e+00> : vector<8xf32>
    %246 = vector.multi_reduction <add>, %245, %cst_69 [1] : vector<8x32xf32> to vector<8xf32>
    %247 = vector.shape_cast %246 : vector<8xf32> to vector<8x1xf32>
    %cst_70 = arith.constant 3.200000e+01 : f32
    %248 = vector.broadcast %cst_70 : f32 to vector<8x1xf32>
    %249 = arith.divf %247, %248 : vector<8x1xf32>
    %250 = vector.broadcast %242 : vector<8x1xf32> to vector<8x32xf32>
    %251 = arith.subf %236, %250 : vector<8x32xf32>
    %cst_71 = arith.constant 9.99999974E-6 : f32
    %252 = vector.broadcast %cst_71 : f32 to vector<8x1xf32>
    %253 = arith.addf %249, %252 : vector<8x1xf32>
    %254 = math.rsqrt %253 : vector<8x1xf32>
    %255 = vector.broadcast %254 : vector<8x1xf32> to vector<8x32xf32>
    %256 = arith.mulf %251, %255 : vector<8x32xf32>
    %257 = vector.broadcast %237 : vector<1x32xf32> to vector<8x32xf32>
    %258 = arith.mulf %256, %257 : vector<8x32xf32>
    %259 = vector.broadcast %238 : vector<1x32xf32> to vector<8x32xf32>
    %260 = arith.addf %258, %259 : vector<8x32xf32>
    %c0_72 = arith.constant 0 : index
    %c0_73 = arith.constant 0 : index
    %c0_74 = arith.constant 0 : index
    %261 = vector.load %arg18[%c0_72, %c0_73, %c0_74] : memref<1x8x32xf32, #tpu.memory_space<vmem>>, vector<1x8x32xf32>
    %262 = vector.shape_cast %261 : vector<1x8x32xf32> to vector<8x32xf32>
    %263 = vector.shape_cast %260 : vector<8x32xf32> to vector<1x8x32xf32>
    tpu.vector_store %arg18[%c0_72, %c0_73, %c0_74], %263 {strides = array<i32>} : memref<1x8x32xf32, #tpu.memory_space<vmem>>, vector<1x8x32xf32>,
    return
  }
  func.func @transform_0(%arg0: i32, %arg1: i32) -> (i32, i32, i32) {
    %c0_i32 = arith.constant 0 : i32
    %c0_i32_0 = arith.constant 0 : i32
    return %arg0, %arg1, %c0_i32 : i32, i32, i32
  }
  func.func @transform_1(%arg0: i32, %arg1: i32) -> (i32, i32, i32) {
    %c0_i32 = arith.constant 0 : i32
    %c0_i32_0 = arith.constant 0 : i32
    %c0_i32_1 = arith.constant 0 : i32
    return %arg0, %c0_i32, %c0_i32_0 : i32, i32, i32
  }
  func.func @transform_2(%arg0: i32, %arg1: i32) -> (i32, i32, i32) {
    %c0_i32 = arith.constant 0 : i32
    %c0_i32_0 = arith.constant 0 : i32
    %c0_i32_1 = arith.constant 0 : i32
    return %arg0, %c0_i32, %c0_i32_0 : i32, i32, i32
  }
  func.func @transform_3(%arg0: i32, %arg1: i32) -> (i32, i32, i32) {
    %c0_i32 = arith.constant 0 : i32
    %c0_i32_0 = arith.constant 0 : i32
    %c0_i32_1 = arith.constant 0 : i32
    return %arg0, %c0_i32, %c0_i32_0 : i32, i32, i32
  }
  func.func @transform_4(%arg0: i32, %arg1: i32) -> (i32, i32) {
    %c0_i32 = arith.constant 0 : i32
    %c0_i32_0 = arith.constant 0 : i32
    %c0_i32_1 = arith.constant 0 : i32
    return %c0_i32, %c0_i32_0 : i32, i32
  }
  func.func @transform_5(%arg0: i32, %arg1: i32) -> (i32, i32) {
    %c0_i32 = arith.constant 0 : i32
    %c0_i32_0 = arith.constant 0 : i32
    %c0_i32_1 = arith.constant 0 : i32
    return %c0_i32, %c0_i32_0 : i32, i32
  }
  func.func @transform_6(%arg0: i32, %arg1: i32) -> (i32, i32) {
    %c0_i32 = arith.constant 0 : i32
    %c0_i32_0 = arith.constant 0 : i32
    %c0_i32_1 = arith.constant 0 : i32
    return %c0_i32, %c0_i32_0 : i32, i32
  }
  func.func @transform_7(%arg0: i32, %arg1: i32) -> (i32, i32) {
    %c0_i32 = arith.constant 0 : i32
    %c0_i32_0 = arith.constant 0 : i32
    %c0_i32_1 = arith.constant 0 : i32
    return %c0_i32, %c0_i32_0 : i32, i32
  }
  func.func @transform_8(%arg0: i32, %arg1: i32) -> (i32, i32) {
    %c0_i32 = arith.constant 0 : i32
    %c0_i32_0 = arith.constant 0 : i32
    %c0_i32_1 = arith.constant 0 : i32
    return %c0_i32, %c0_i32_0 : i32, i32
  }
  func.func @transform_9(%arg0: i32, %arg1: i32) -> (i32, i32) {
    %c0_i32 = arith.constant 0 : i32
    %c0_i32_0 = arith.constant 0 : i32
    %c0_i32_1 = arith.constant 0 : i32
    return %c0_i32, %c0_i32_0 : i32, i32
  }
  func.func @transform_10(%arg0: i32, %arg1: i32) -> (i32, i32) {
    %c0_i32 = arith.constant 0 : i32
    %c0_i32_0 = arith.constant 0 : i32
    %c0_i32_1 = arith.constant 0 : i32
    return %c0_i32, %c0_i32_0 : i32, i32
  }
  func.func @transform_11(%arg0: i32, %arg1: i32) -> (i32, i32) {
    %c0_i32 = arith.constant 0 : i32
    %c0_i32_0 = arith.constant 0 : i32
    %c0_i32_1 = arith.constant 0 : i32
    return %c0_i32, %c0_i32_0 : i32, i32
  }
  func.func @transform_12(%arg0: i32, %arg1: i32) -> (i32, i32) {
    %c0_i32 = arith.constant 0 : i32
    %c0_i32_0 = arith.constant 0 : i32
    %c0_i32_1 = arith.constant 0 : i32
    return %c0_i32, %c0_i32_0 : i32, i32
  }
  func.func @transform_13(%arg0: i32, %arg1: i32) -> (i32, i32) {
    %c0_i32 = arith.constant 0 : i32
    %c0_i32_0 = arith.constant 0 : i32
    %c0_i32_1 = arith.constant 0 : i32
    return %c0_i32, %c0_i32_0 : i32, i32
  }
  func.func @transform_14(%arg0: i32, %arg1: i32) -> (i32, i32) {
    %c0_i32 = arith.constant 0 : i32
    %c0_i32_0 = arith.constant 0 : i32
    %c0_i32_1 = arith.constant 0 : i32
    return %c0_i32, %c0_i32_0 : i32, i32
  }
  func.func @transform_15(%arg0: i32, %arg1: i32) -> (i32, i32) {
    %c0_i32 = arith.constant 0 : i32
    %c0_i32_0 = arith.constant 0 : i32
    %c0_i32_1 = arith.constant 0 : i32
    return %c0_i32, %c0_i32_0 : i32, i32
  }
  func.func @transform_16(%arg0: i32, %arg1: i32) -> (i32, i32, i32) {
    %c0_i32 = arith.constant 0 : i32
    %c0_i32_0 = arith.constant 0 : i32
    return %arg0, %arg1, %c0_i32 : i32, i32, i32
  }
}

</mosaic_0001>

<bundles_post_ra>
// kernel: tpu_custom_call.1
= control target key start
LH: loop header
LB: loop body
LE: loop exit
PB: predicated region body
PF: predicated region fallthrough
CT: control target
= control target key end

     0   :  { %s3408_s0 = inlined_call_operand.vmem [shape: f32[2,8,32], index: 0, kind: input, shape index: {}]   ;;  %s3409_s1 = inlined_call_operand.hbm [shape: bf16[2,8,32], index: 1, kind: input, shape index: {}]   ;;  %s3410_s2 = inlined_call_operand.vmem [shape: bf16[2,16,32], index: 2, kind: input, shape index: {}]   ;;  %s3411_s3 = inlined_call_operand.vmem [shape: f32[2,1,16], index: 3, kind: input, shape index: {}]   ;;  %s3412_s4 = inlined_call_operand.vmem [shape: bf16[32,32], index: 4, kind: input, shape index: {}]   ;;  %s3413_s5 = inlined_call_operand.hbm [shape: bf16[32,32], index: 5, kind: input, shape index: {}]   ;;  %s3414_s6 = inlined_call_operand.hbm [shape: bf16[32,32], index: 6, kind: input, shape index: {}]   ;;  %s3415_s7 = inlined_call_operand.hbm [shape: bf16[32,32], index: 7, kind: input, shape index: {}]   ;;  %s3416_s8 = inlined_call_operand.hbm [shape: bf16[32,32], index: 8, kind: input, shape index: {}]   ;;  %s3417_s9 = inlined_call_operand.hbm [shape: bf16[32,32], index: 9, kind: input, shape index: {}]   ;;  %s3418_s10 = inlined_call_operand.hbm [shape: bf16[32,32], index: 10, kind: input, shape index: {}]   ;;  %s3419_s11 = inlined_call_operand.hbm [shape: bf16[32,32], index: 11, kind: input, shape index: {}]   ;;  %s3420_s12 = inlined_call_operand.hbm [shape: bf16[32,64], index: 12, kind: input, shape index: {}]   ;;  %s3421_s13 = inlined_call_operand.vmem [shape: bf16[64,32], index: 13, kind: input, shape index: {}]   ;;  %s3422_s14 = inlined_call_operand.hbm [shape: f32[16,32], index: 14, kind: input, shape index: {}]   ;;  %s3423_s15 = inlined_call_operand.vmem [shape: f32[1,64], index: 15, kind: input, shape index: {}]   ;;  %s3424_s16 = inlined_call_operand.hbm [shape: f32[2,8,32], index: 16, kind: output, shape index: {}]  }
   0x1   :  { %3430 = sst [smem:[#allocation27_spill]] %s3408_s0 }
   0x2   :  { %3431 = sst [smem:[#allocation28_spill]] %s3410_s2 }
   0x3   :  { %3432 = sst [smem:[#allocation29_spill]] %s3411_s3 }
   0x4   :  { %3433 = sst [smem:[#allocation30_spill]] %s3412_s4 }
   0x5   :  { %3434 = sst [smem:[#allocation31_spill]] %s3413_s5 }
   0x6   :  { %3435 = sst [smem:[#allocation32_spill]] %s3414_s6 }
   0x7   :  { %3436 = sst [smem:[#allocation33_spill]] %s3415_s7 }
   0x8   :  { %3437 = sst [smem:[#allocation34_spill]] %s3416_s8 }
   0x9   :  { %3438 = sst [smem:[#allocation35_spill]] %s3421_s13 }
   0xa   :  { %3439 = sst [smem:[#allocation36_spill]] %s3423_s15 }
   0xb   :  { %3440 = sst [smem:[#allocation37_spill]] %s3424_s16 }
   0xc   :  { %21 = vsyncpa [#allocation3], 0 }
   0xd   :  { %23 = vsyncpa [#allocation3 + $0x1], 0 }
   0xe   :  { %24 = vsyncpa [#allocation6], 0 }
   0xf   :  { %25 = vsyncpa [#allocation9], 0 }
  0x10   :  { %26 = vsyncpa [#allocation12], 0 }
  0x11   :  { %27 = vsyncpa [#allocation15], 0 }
  0x12   :  { %28 = vsyncpa [#allocation18], 0 }
  0x13   :  { %29 = vsyncpa [#allocation4], 0 }
  0x14   :  { %31 = vsyncpa [#allocation4 + $0x1], 0  ;;  %s2995_s21 = smov 0   ;;  %s2997_s22 = smov 0  }
  0x15   :  { %s2999_s23 = smov 0   ;;  %s3001_s24 = smov 0  }
  0x16   :  { %s3003_s25 = smov 0   ;;  %s3005_s26 = smov 0  }
  0x17 LB: > { %s3425_s27 = sadd.s32 4294967295, %s2887_s26   ;;  %p2071_p0 = scmp.ge.s32.totalorder %s2887_s26, 1  ;;  %s2887_s26 = sphi %s3005_s26, %s37_s26   ;;  %s2883_s25 = sphi %s3003_s25, %s3464_s25   ;;  %s2879_s24 = sphi %s3001_s24, %s3463_s24   ;;  %s2875_s23 = sphi %s2999_s23, %s3462_s23   ;;  %s2871_s22 = sphi %s2997_s22, %s3461_s22   ;;  %s2867_s21 = sphi %s2995_s21, %s3460_s21  }
  0x18   : > { %p3029_p1 = scmp.eq.s32.totalorder %s3425_s27, 0  ;;  %p440_p2 = scmp.lt.s32.totalorder %s2887_s26, 3 }
  0x19   : > { %s3442_s5 = sld [smem:[#allocation31_spill]]  ;;  %s2889_s18 = smov [#allocation5]  }
  0x1a   : > { %p3037_p3 = pnand %p2071_p0, %p440_p2  ;;  %s456_s19 = sshll.u32 %s2889_s18, 4  ;;  %s457_s19 = int_to_ptr.vmem [resolvable:$true] %s456_s19 }
  0x1b   : > { %p2081_p6 = scmp.ge.s32.totalorder %s2887_s26, 2  ;;  %s3445_s7 = sld [smem:[#allocation33_spill]] }
  0x1c   : > { %p2286_p4 = pneg %p3037_p3  ;;  %s2891_s16 = smov 4  }
  0x1d   : > { %s2892_s18 = smov [#allocation8]   ;;  %s510_s2 = sshll.u32 %s3417_s9, 4  ;;  %s511_s2 = int_to_ptr.hbm [resolvable:$true] %s510_s2 }
  0x1e   : > { %p3045_p5 = pnand %p2286_p4, %p3029_p1  ;;  %s484_s13 = sshll.u32 %s2892_s18, 4  ;;  %s485_s13 = int_to_ptr.vmem [resolvable:$true] %s484_s13 }
  0x1f   : > { %s454_s0 = sshll.u32 %s3442_s5, 4  ;;  %s2890_s5 = smov 64   ;;  %s455_s0 = int_to_ptr.hbm [resolvable:$true] %s454_s0 }
  0x20   : > { %2289 = dma.hbm_to_vmem [thread:$0]  (!%p3045_p5), %s455_s0, 256, %s457_s19, [#allocation6], %s2890_s5, %s2890_s5, %s2891_s16  }
  0x21   : > { %s482_s27 = sshll.u32 %s3445_s7, 4  ;;  %s538_s7 = sshll.u32 %s3419_s11, 4  ;;  %s483_s27 = int_to_ptr.hbm [resolvable:$true] %s482_s27  ;;  %s539_s7 = int_to_ptr.hbm [resolvable:$true] %s538_s7 }
  0x22   : > { %2295 = dma.hbm_to_vmem [thread:$0]  (!%p3045_p5), %s483_s27, 256, %s485_s13, [#allocation9], %s2890_s5, %s2890_s5, %s2891_s16  }
  0x23   : > { %s2893_s4 = smov [#allocation11]   ;;  %s2894_s3 = smov [#allocation14]  }
  0x24   : > { %s512_s0 = sshll.u32 %s2893_s4, 4  ;;  %s540_s15 = sshll.u32 %s2894_s3, 4  ;;  %s513_s0 = int_to_ptr.vmem [resolvable:$true] %s512_s0  ;;  %s541_s15 = int_to_ptr.vmem [resolvable:$true] %s540_s15 }
  0x25   : > { %2301 = dma.hbm_to_vmem [thread:$0]  (!%p3045_p5), %s511_s2, 256, %s513_s0, [#allocation12], %s2890_s5, %s2890_s5, %s2891_s16  }
  0x26   : > { %s3446_s6 = sld [smem:[#allocation32_spill]]  ;;  %s2895_s30 = smov [#allocation7]  }
  0x27   : > { %2307 = dma.hbm_to_vmem [thread:$0]  (!%p3045_p5), %s539_s7, 256, %s541_s15, [#allocation15], %s2890_s5, %s2890_s5, %s2891_s16  }
  0x28   : > { %s3447_s8 = sld [smem:[#allocation34_spill]]  ;;  %s470_s2 = sshll.u32 %s2895_s30, 4  ;;  %s471_s2 = int_to_ptr.vmem [resolvable:$true] %s470_s2 }
  0x29   : > { %s2896_s0 = smov [#allocation10]   ;;  %s524_s7 = sshll.u32 %s3418_s10, 4  ;;  %s525_s7 = int_to_ptr.hbm [resolvable:$true] %s524_s7 }
  0x2a   : > { %s498_s3 = sshll.u32 %s2896_s0, 4  ;;  %s552_s27 = sshll.u32 %s3420_s12, 4  ;;  %s499_s3 = int_to_ptr.vmem [resolvable:$true] %s498_s3  ;;  %s553_s27 = int_to_ptr.hbm [resolvable:$true] %s552_s27 }
  0x2b   : > { %s2897_s30 = smov [#allocation13]   ;;  %s569_s19 = sshll.u32 %s3422_s14, 4  ;;  %s570_s19 = int_to_ptr.hbm [resolvable:$true] %s569_s19 }
  0x2c   : > { %s468_s13 = sshll.u32 %s3446_s6, 4  ;;  %s2899_s18 = smov [#allocation17]   ;;  %s469_s13 = int_to_ptr.hbm [resolvable:$true] %s468_s13 }
  0x2d   : > { %2292 = dma.hbm_to_vmem [thread:$0]  (!%p3045_p5), %s469_s13, 256, %s471_s2, [#allocation6], %s2890_s5, %s2890_s5, %s2891_s16  }
  0x2e   : > { %s496_s29 = sshll.u32 %s3447_s8, 4  ;;  %s526_s13 = sshll.u32 %s2897_s30, 4  ;;  %s497_s29 = int_to_ptr.hbm [resolvable:$true] %s496_s29  ;;  %s527_s13 = int_to_ptr.vmem [resolvable:$true] %s526_s13 }
  0x2f   : > { %2298 = dma.hbm_to_vmem [thread:$0]  (!%p3045_p5), %s497_s29, 256, %s499_s3, [#allocation9], %s2890_s5, %s2890_s5, %s2891_s16  }
  0x30   : > { %2304 = dma.hbm_to_vmem [thread:$0]  (!%p3045_p5), %s525_s7, 256, %s527_s13, [#allocation12], %s2890_s5, %s2890_s5, %s2891_s16  }
  0x31   : > { %s2898_s2 = smov [#allocation16]   ;;  %s571_s7 = sshll.u32 %s2899_s18, 4  ;;  %s572_s7 = int_to_ptr.vmem [resolvable:$true] %s571_s7 }
  0x32   : > { %s554_s29 = sshll.u32 %s2898_s2, 4  ;;  %s2900_s15 = smov 128   ;;  %s555_s29 = int_to_ptr.vmem [resolvable:$true] %s554_s29 }
  0x33   : > { %2310 = dma.hbm_to_vmem [thread:$0]  (!%p3045_p5), %s553_s27, 256, %s555_s29, [#allocation15], %s2890_s5, %s2890_s5, %s2891_s16  }
  0x34   : > { %s2901_s4 = smov 8   ;;  %s2070_s30 = sadd.s32 4294967294, %s2887_s26  }
  0x35   : > { %2313 = dma.hbm_to_vmem [thread:$0]  (!%p3045_p5), %s570_s19, 256, %s572_s7, [#allocation18], %s2900_s15, %s2900_s15, %s2901_s4  }
  0x36   : > { %s49_s13 = sadd.s32 1, %s2883_s25  ;;  %s84_s2 = sadd.s32 1, %s2875_s23 }
  0x37   : > { %p51_p7 = scmp.ge.s32.totalorder %s49_s13, 2  ;;  %p91_p8 = scmp.ne.s32.totalorder %s2875_s23, %s2871_s22 }
  0x38   : > { %p92_p9 = scmp.eq.s32.totalorder %s2887_s26, 0  ;;  %p97_p10 = scmp.ne.s32.totalorder %s2871_s22, %s2867_s21 }
  0x39   : > { %s3466_s13 = smov (%p51_p7, %s49_s13), 0  ;;  %s3450_s27 = sadd.s32 4294967295, %s2887_s26  }
  0x3a   : > { %p3126_p11 = por %p92_p9, %p91_p8  ;;  %p3132_p12 = por %p3029_p1, %p97_p10 }
  0x3b   : > { %s81_s20 = ssub.s32 %s2883_s25, %s3466_s13  ;;  %p427_p13 = scmp.eq.s32.totalorder %s3450_s27, 1 }
  0x3c   : > { %p82_p0 = scmp.eq.s32.totalorder %s81_s20, 0  ;;  %p433_p2 = scmp.eq.s32.totalorder %s2070_s30, 1 }
  0x3d   : > { %p3140_p4 = por %p427_p13, %p91_p8  ;;  %p2331_p5 = scmp.lt.s32.totalorder %s2887_s26, 2 }
  0x3e   : > { %s3146_s0 = scalar_select %p82_p0, %s2875_s23, %s84_s2  }
  0x3f   : > { %p3148_p7 = por %p433_p2, %p97_p10  ;;  %s598_s19 = sand.u32 1, %s2875_s23  }
  0x40   : > { %s2082_s18 = sshll.u32 %s598_s19, 2  ;;  %s2083_s7 = sshll.u32 %s2883_s25, 2 }
  0x41   : > { %s606_s27 = scalar_lea.hbm %s3409_s1, %s2083_s7  ;;  %s602_s20 = scalar_lea.vmem [#allocation2], %s2082_s18 }
  0x42   : > { %s610_s30 = sshll.u32 %s602_s20, 4  ;;  %s608_s6 = sshll.u32 %s606_s27, 4  ;;  %s611_s30 = int_to_ptr.vmem [resolvable:$true] %s610_s30  ;;  %s609_s6 = int_to_ptr.hbm [resolvable:$true] %s608_s6 }
  0x43   : > { %p2315_p8 = pnand %p2331_p5, %p3126_p11  ;;  %s599_s2 = scalar_lea.sflag [#allocation3], %s598_s19 }
  0x44   : > { %633 = sbr.rel (%p3037_p3) target bundleno = 3023 (0xbcf), region = 84  ;;  %s3162_s8 = sand.u32 (!%p3037_p3), 1, %s2871_s22  }
  0x45   : > { %2317 = dma.hbm_to_vmem [thread:$0]  (!%p2315_p8), %s609_s6, 64, %s611_s30, %s599_s2  }
  0x46   : > { %s2085_s15 = sshll.u32 (!%p3037_p3), %s3162_s8, 2  ;;  %s636_s7 = scalar_lea.sflag (!%p3037_p3), [#allocation3], %s3162_s8 }
  0x47   : > { %s639_s18 = scalar_lea.vmem (!%p3037_p3), [#allocation2], %s2085_s15 }
  0x49   : > { %2838 = dma.done.wait (%p3132_p12), %s636_s7, 64  }
  0x4a   : > { %2840 = vsyncadd (%p3132_p12), %s636_s7, 4294967232 }
  0x4b   : > { %2842 = dma.done.wait (%p3029_p1), [#allocation6], 512  }
  0x4c   : > { %2844 = vsyncadd (%p3029_p1), [#allocation6], 4294966784 }
  0x4d   : > { %2846 = dma.done.wait (%p3029_p1), [#allocation9], 512  }
  0x4e   : > { %2848 = vsyncadd (%p3029_p1), [#allocation9], 4294966784 }
  0x4f   : > { %2850 = dma.done.wait (%p3029_p1), [#allocation12], 512  }
  0x50   : > { %2852 = vsyncadd (%p3029_p1), [#allocation12], 4294966784 }
  0x51   : > { %2854 = dma.done.wait (%p3029_p1), [#allocation15], 512  }
  0x52   : > { %2856 = vsyncadd (%p3029_p1), [#allocation15], 4294966784 }
  0x53   : > { %2858 = dma.done.wait (%p3029_p1), [#allocation18], 256  }
  0x54   : > { %2860 = vsyncadd (%p3029_p1), [#allocation18], 4294967040  ;;  %p749_p3 = scmp.lt.s32.totalorder %s2879_s24, 1  ;;  %s3453_s19 = sld [smem:[#allocation27_spill]]  ;;  %v2227_v1 = vld [vmem:[#allocation5 + $0x8] sm:$0xff]  ;;  %v2226_v3 = vld [vmem:[#allocation5] sm:$0xff]  ;;  %v774_v42 = vlaneseq }
  0x55   : > { %s3454_s30 = sld [smem:[#allocation30_spill]]  ;;  %842 = vmatpush.bf16.msra.mxu1 %v2227_v1  ;;  %vm800_vm0 = vcmask 261120   ;;  %v766_v6 = vld [vmem:[%s639_s18] sm:$0xf]  ;;  %v3212_v7 = vld [vmem:[#allocation17] sm:$0xff]  ;;  %vm921_vm1 = vcmask 64512  }
  0x56   : > { %s3192_s6 = scalar_select %p749_p3, %s2879_s24, 1  ;;  %v787_v8 = vperm.slane %v3212_v7, 0  ;;  %v2229_v17 = vld [vmem:[#allocation7 + $0x8] sm:$0xff]  ;;  %v2228_v18 = vld [vmem:[#allocation7] sm:$0xff]  ;;  %v853_v36 = vperm.slane %v3212_v7, 1  ;;  %vm1041_vm2 = vcmask 1043456  }
  0x57   : > { %s2902_s15 = smov 120   ;;  %s2903_s7 = smov 104   ;;  %872 = vmatpush.bf16.msra.mxu2 %v2229_v17  ;;  %v775_v43 = vshrl.u32 %v774_v42, 7  ;;  %v779_v44 = vand.u32 127, %v774_v42  ;;  %v2905_v45 = vmov -1e+09  }
  0x58   : > { %s2096_s17 = sshll.u32 %s3192_s6, 3  ;;  %s2904_s18 = smov 112   ;;  %vm1136_vm4 = vcmask 130048   ;;  %vm1138_vm5 = vcmask 195584  }
  0x59   : > { %843 = vmatpush.bf16.msra.mxu1 %v2226_v3  ;;  %vm780_vm3 = vcmp.ge.s32.totalorder %v775_v43, %v779_v44  ;;  %s2906_s5 = smov 24   ;;  %s2907_s16 = smov 16  }
  0x5a   : > { %s755_s4 = scalar_lea.vmem %s3453_s19, %s2096_s17  ;;  %v781_v46 = vsel %vm780_vm3, 0.0, %v2905_v45  ;;  %s2908_s19 = smov 8  }
  0x5b   : > { %v2225_v0 = vld [vmem:[%s3454_s30 + $0x8] sm:$0xff]  ;;  %v2224_v2 = vld [vmem:[%s3454_s30] sm:$0xff]  ;;  %873 = vmatpush.bf16.msra.mxu2 %v2228_v18  ;;  %s3455_s20 = sld [smem:[#allocation28_spill]] }
  0x5c   : > { %810 = vmatpush.bf16.msra.mxu0 %v2225_v0  ;;  %v3206_v4 = vld [vmem:[%s755_s4] sm:$0xff]  ;;  %2116 = vmatmul.msk.bf16.vlgmr.msra.gmra.mxu1 %vm800_vm0, %v766_v6  ;;  %s3456_s4 = sld [smem:[#allocation29_spill]] }
  0x5d   : > { %v782_v5 = vpack.c.bf16 %v3206_v4, %v3206_v4 }
  0x5e   : > { %2125 = vmatmul.msk.bf16.vlgmr.msra.gmra.mxu2 %vm800_vm0, %v766_v6 }
  0x60   : > { %811 = vmatpush.bf16.msra.mxu0 %v2224_v2 }
  0x61   : > { %s760_s28 = scalar_lea.vmem %s3455_s20, %s2096_s17 }
  0x62   : > { %s763_s27 = scalar_lea.vmem %s3456_s4, %s3192_s6  ;;  %s2095_s6 = sshll.u32 %s3162_s8, 3 }
  0x63   : > { %2107 = vmatmul.msk.bf16.vlgmr.msra.gmra.mxu0 %vm800_vm0, %v782_v5  ;;  %s748_s17 = scalar_lea.vmem [#allocation19], %s2095_s6 }
  0x64   : > { %s1865_s2 = sshll.u32 %s748_s17, 4  ;;  %s1866_s2 = int_to_ptr.vmem [resolvable:$true] %s1865_s2 }
  0xd9   : > { %v845_v10 = vpop.f32.mrf.mxu1 }
  0xda   : > { %894 = vrot.lane.b32.xlu1 %v845_v10, %s2902_s15  ;;  %900 = vrot.lane.b32.xlu0 %v845_v10, %s2903_s7  ;;  %v903_v12 = vpack.c.bf16 %v845_v10, %v845_v10 }
  0xdc   : > { %v926_v13 = vsel %vm921_vm1, %v903_v12, 0 }
  0xdd   : > { %935 = vmatpush.bf16.xpose.msra.mxu3 %v926_v13 }
  0xe0   : > { %v813_v9 = vpop.f32.mrf.mxu0 }
  0xe1   : > { %v814_v11 = vadd.f32 %v813_v9, %v787_v8  ;;  %v847_v16 = vpop.f32.mrf.mxu1  ;;  %v875_v37 = vpop.f32.mrf.mxu2 }
  0xe2   : > { %897 = vrot.lane.b32.xlu1 %v845_v10, %s2904_s18  ;;  %v876_v38 = vadd.f32 %v875_v37, %v853_v36 }
  0xe3   : > { %880 = vrot.lane.b32.xlu2 %v814_v11, %s2902_s15  ;;  %v889_v14 = vpack.c.bf16 %v814_v11, %v814_v11  ;;  %886 = vrot.lane.b32.xlu0 %v814_v11, %s2903_s7 }
  0xe4   : > { %v917_v39 = vpack.c.bf16 %v876_v38, %v876_v38 }
  0xe5   : > { %2126 = vmatmul.msk.bf16.vlgmr.msra.gmra.mxu3 %vm921_vm1, %v889_v14 }
  0xe6   : > { %v1043_v40 = vsel %vm1041_vm2, %v917_v39, 0 }
  0xe7   : > { %1052 = vmatpush.bf16.msrb.mxu3 %v1043_v40 }
  0xe8   : > { %v815_v15 = vpop.f32.mrf.mxu0 }
  0xe9   : > { %v877_v41 = vpop.f32.mrf.mxu2 }
  0xeb   : > { %883 = vrot.lane.b32.xlu2 %v814_v11, %s2904_s18 }
 0x13d   : > { %v881_v25 = vpop.permute.xlu2 %880 }
 0x13e   : > { %v890_v28 = vpack.c.bf16 %v881_v25, %v881_v25 }
 0x145   : > { %v884_v32 = vpop.permute.xlu2 %883 }
 0x146   : > { %v891_v33 = vpack.c.bf16 %v884_v32, %v884_v32 }
 0x14c   : > { %v895_v19 = vpop.permute.xlu1 %894  ;;  %v901_v20 = vpop.permute.xlu0 %900 }
 0x14d   : > { %v904_v21 = vpack.c.bf16 %v895_v19, %v895_v19  ;;  %v906_v22 = vpack.c.bf16 %v901_v20, %v901_v20 }
 0x14f   : > { %v945_v23 = vsel %vm921_vm1, %v904_v21, 0  ;;  %v983_v24 = vsel %vm921_vm1, %v906_v22, 0 }
 0x150   : > { %954 = vmatpush.bf16.xpose.msrb.mxu0 %v945_v23  ;;  %992 = vmatpush.bf16.xpose.msrb.mxu2 %v983_v24 }
 0x154   : > { %v898_v26 = vpop.permute.xlu1 %897 }
 0x155   : > { %v887_v27 = vpop.permute.xlu0 %886  ;;  %v905_v29 = vpack.c.bf16 %v898_v26, %v898_v26 }
 0x156   : > { %v892_v30 = vpack.c.bf16 %v887_v27, %v887_v27 }
 0x157   : > { %2127 = vmatmul.msk.bf16.vlgmr.msrb.gmra.mxu0 %vm921_vm1, %v890_v28  ;;  %v964_v31 = vsel %vm921_vm1, %v905_v29, 0 }
 0x158   : > { %2129 = vmatmul.msk.bf16.vlgmr.msrb.gmra.mxu2 %vm921_vm1, %v892_v30  ;;  %973 = vmatpush.bf16.xpose.msrb.mxu1 %v964_v31 }
 0x15f   : > { %2128 = vmatmul.msk.bf16.vlgmr.msrb.gmra.mxu1 %vm921_vm1, %v891_v33 }
 0x168   : > { %v937_v34 = vpop.f32.mrf.mxu3 }
 0x169   : > { %v938_v59 = vadd.f32 %v937_v34, %v781_v46 }
 0x16b   : > { %v998_v60 = vsel %vm921_vm1, %v938_v59, -inf }
 0x170   : > { %v939_v35 = vpop.f32.mrf.mxu3 }
 0x1d4   : > { %v956_v47 = vpop.f32.mrf.mxu0 }
 0x1d5   : > { %v957_v48 = vadd.f32 %v956_v47, %v781_v46 }
 0x1d7   : > { %v1001_v49 = vsel %vm921_vm1, %v957_v48, -inf }
 0x1d8   : > { %1002 = vmax.xlane.f32.xlu1 %v1001_v49 }
 0x1db   : > { %v994_v50 = vpop.f32.mrf.mxu2 }
 0x1dc   : > { %v995_v51 = vadd.f32 %v994_v50, %v781_v46  ;;  %v958_v52 = vpop.f32.mrf.mxu0  ;;  %v975_v53 = vpop.f32.mrf.mxu1  ;;  %v2230_v50 = vld [vmem:[#allocation8] sm:$0xff] }
 0x1dd   : > { %v976_v54 = vadd.f32 %v975_v53, %v781_v46 }
 0x1de   : > { %v1007_v55 = vsel %vm921_vm1, %v995_v51, -inf }
 0x1df   : > { %1008 = vmax.xlane.f32.xlu0 %v1007_v55  ;;  %v1004_v56 = vsel %vm921_vm1, %v976_v54, -inf }
 0x1e0   : > { %1005 = vmax.xlane.f32.xlu2 %v1004_v56 }
 0x1e3   : > { %v996_v57 = vpop.f32.mrf.mxu2 }
 0x1e4   : > { %v977_v58 = vpop.f32.mrf.mxu1 }
 0x1f1   : > { %911 = vrot.lane.b32.xlu1 %v876_v38, %s2904_s18 }
 0x1f3   : > { %908 = vrot.lane.b32.xlu0 %v876_v38, %s2902_s15 }
 0x1f8   : > { %914 = vrot.lane.b32.xlu2 %v876_v38, %s2903_s7 }
 0x21d   : > { %999 = vmax.xlane.f32.xlu0 %v998_v60 }
 0x24b   : > { %v1003_v61 = vpop.xlane.xlu1 %1002 }
 0x24c   : > { %v1011_v62 = vsub.f32 %v957_v48, %v1003_v61  ;;  %v2231_v48 = vld [vmem:[#allocation8 + $0x8] sm:$0xff]  ;;  %v1145_v61 = vperm.slane %v3212_v7, 2 }
 0x24d   : > { %1167 = vmatpush.bf16.msra.mxu3 %v2231_v48 }
 0x24e   : > { %v1016_v63 = vmul.f32 1.442695, %v1011_v62 }
 0x250   : > { %2443 = vpow2.f32 %v1016_v63 }
 0x251   : > { %1168 = vmatpush.bf16.msra.mxu3 %v2230_v50  ;;  %v2236_v50 = vld [vmem:[#allocation13] sm:$0xff] }
 0x252   : > { %v1009_v0 = vpop.xlane.xlu0 %1008 }
 0x253   : > { %v1013_v1 = vsub.f32 %v995_v51, %v1009_v0  ;;  %v1006_v2 = vpop.xlane.xlu2 %1005 }
 0x254   : > { %v1012_v5 = vsub.f32 %v976_v54, %v1006_v2 }
 0x255   : > { %v1020_v3 = vmul.f32 1.442695, %v1013_v1 }
 0x256   : > { %v2444_v6 = vpop.eup %2443  ;;  %v1018_v8 = vmul.f32 1.442695, %v1012_v5  ;;  %v2235_v5 = vld [vmem:[#allocation11 + $0x8] sm:$0xff] }
 0x257   : > { %2445 = vpow2.f32 %v1020_v3  ;;  %v1025_v9 = vsel %vm921_vm1, %v2444_v6, 0.0  ;;  %v1035_v25 = vpack.c.bf16 %v2444_v6, %v2444_v6  ;;  %v2909_v3 = vmov 32.0   ;;  %v2234_v6 = vld [vmem:[#allocation11] sm:$0xff] }
 0x258   : > { %2447 = vpow2.f32 %v1018_v8  ;;  %1026 = vadd.xlane.f32.xlu2 %v1025_v9  ;;  %v3265_v9 = vld [vmem:[%s760_s28] sm:$0xff] }
 0x25b   : > { %v915_v10 = vpop.permute.xlu2 %914 }
 0x25c   : > { %v920_v12 = vpack.c.bf16 %v915_v10, %v915_v10 }
 0x25d   : > { %v2446_v11 = vpop.eup %2445 }
 0x25e   : > { %v1031_v13 = vsel %vm921_vm1, %v2446_v11, 0.0  ;;  %v2448_v14 = vpop.eup %2447  ;;  %v1100_v15 = vsel %vm1041_vm2, %v920_v12, 0  ;;  %v1037_v17 = vpack.c.bf16 %v2446_v11, %v2446_v11 }
 0x25f   : > { %1032 = vadd.xlane.f32.xlu0 %v1031_v13  ;;  %1109 = vmatpush.bf16.msra.mxu2 %v1100_v15  ;;  %v1028_v16 = vsel %vm921_vm1, %v2448_v14, 0.0  ;;  %v1036_v24 = vpack.c.bf16 %v2448_v14, %v2448_v14 }
 0x260   : > { %1029 = vadd.xlane.f32.xlu1 %v1028_v16 }
 0x262   : > { %2133 = vmatmul.msk.bf16.vlgmr.msra.gmra.mxu2 %vm921_vm1, %v1037_v17 }
 0x263   : > { %v912_v18 = vpop.permute.xlu1 %911 }
 0x264   : > { %v919_v19 = vpack.c.bf16 %v912_v18, %v912_v18 }
 0x265   : > { %v909_v20 = vpop.permute.xlu0 %908 }
 0x266   : > { %v918_v21 = vpack.c.bf16 %v909_v20, %v909_v20  ;;  %v1081_v22 = vsel %vm1041_vm2, %v919_v19, 0  ;;  %v2233_v19 = vld [vmem:[#allocation10 + $0x8] sm:$0xff]  ;;  %v2232_v20 = vld [vmem:[#allocation10] sm:$0xff] }
 0x267   : > { %1090 = vmatpush.bf16.msra.mxu1 %v1081_v22 }
 0x268   : > { %v1062_v23 = vsel %vm1041_vm2, %v918_v21, 0  ;;  %vm1806_vm2 = vcmask 523264  }
 0x269   : > { %1071 = vmatpush.bf16.msra.mxu0 %v1062_v23 }
 0x26a   : > { %2132 = vmatmul.msk.bf16.vlgmr.msra.gmra.mxu1 %vm921_vm1, %v1036_v24 }
 0x26b   : > { %1272 = vmatpush.bf16.msrb.mxu1 %v2235_v5 }
 0x26c   : > { %2131 = vmatmul.msk.bf16.vlgmr.msra.gmra.mxu0 %vm921_vm1, %v1035_v25 }
 0x26d   : > { %1235 = vmatpush.bf16.msrb.mxu0 %v2233_v19 }
 0x26f   : > { %1273 = vmatpush.bf16.msrb.mxu1 %v2234_v6  ;;  %v1213_v6 = vperm.slane %v3212_v7, 5 }
 0x271   : > { %1236 = vmatpush.bf16.msrb.mxu0 %v2232_v20 }
 0x27a   : > { %2164 = vmatmul.msk.bf16.vlgmr.msrb.gmra.mxu1 %vm800_vm0, %v3265_v9 }
 0x290   : > { %v1000_v26 = vpop.xlane.xlu0 %999 }
 0x291   : > { %v1010_v27 = vsub.f32 %v938_v59, %v1000_v26 }
 0x293   : > { %v1014_v28 = vmul.f32 1.442695, %v1010_v27 }
 0x295   : > { %2449 = vpow2.f32 %v1014_v28 }
 0x29b   : > { %v2450_v29 = vpop.eup %2449 }
 0x29c   : > { %v1022_v30 = vsel %vm921_vm1, %v2450_v29, 0.0  ;;  %v1034_v31 = vpack.c.bf16 %v2450_v29, %v2450_v29 }
 0x29d   : > { %1023 = vadd.xlane.f32.xlu2 %v1022_v30 }
 0x29e   : > { %2130 = vmatmul.msk.bf16.vlgmr.msrb.gmra.mxu3 %vm921_vm1, %v1034_v31 }
 0x2cb   : > { %v1027_v34 = vpop.xlane.xlu2 %1026 }
 0x2d2   : > { %v1033_v32 = vpop.xlane.xlu0 %1032 }
 0x2d3   : > { %v1030_v33 = vpop.xlane.xlu1 %1029  ;;  %2451 = vrcp.f32 %v1033_v32 }
 0x2d4   : > { %2453 = vrcp.f32 %v1030_v33 }
 0x2d5   : > { %2455 = vrcp.f32 %v1027_v34 }
 0x2d9   : > { %v2452_v35 = vpop.eup %2451 }
 0x2da   : > { %v2454_v38 = vpop.eup %2453 }
 0x2db   : > { %v2456_v40 = vpop.eup %2455 }
 0x2e5   : > { %v1111_v36 = vpop.f32.mrf.mxu2 }
 0x2e6   : > { %v1122_v37 = vmul.f32 %v2452_v35, %v1111_v36 }
 0x2e7   : > { %v1092_v39 = vpop.f32.mrf.mxu1 }
 0x2e8   : > { %v1121_v41 = vmul.f32 %v2454_v38, %v1092_v39  ;;  %1132 = vrot.lane.b32.xlu2 %v1122_v37, %s2906_s5  ;;  %v1204_v39 = vperm.slane %v3212_v7, 3 }
 0x2e9   : > { %v1073_v42 = vpop.f32.mrf.mxu0 }
 0x2ea   : > { %v1120_v43 = vmul.f32 %v2456_v40, %v1073_v42  ;;  %1128 = vrot.lane.b32.xlu0 %v1121_v41, %s2907_s16  ;;  %v1206_v41 = vperm.slane %v3212_v7, 4 }
 0x2ec   : > { %1124 = vrot.lane.b32.xlu1 %v1120_v43, %s2908_s19 }
 0x2ed   : > { %v1113_v44 = vpop.f32.mrf.mxu2 }
 0x2ef   : > { %v1094_v45 = vpop.f32.mrf.mxu1 }
 0x2f1   : > { %v1075_v46 = vpop.f32.mrf.mxu0 }
 0x2f2   : > { %v2237_v46 = vld [vmem:[#allocation13 + $0x8] sm:$0xff] }
 0x2f3   : > { %1303 = vmatpush.bf16.msrb.mxu2 %v2237_v46 }
 0x2f7   : > { %v1275_v21 = vpop.f32.mrf.mxu1  ;;  %1304 = vmatpush.bf16.msrb.mxu2 %v2236_v50 }
 0x2f8   : > { %v1345_v25 = vpack.c.bf16 %v1275_v21, %v1275_v21 }
 0x2fa   : > { %v1386_v27 = vunpack.c.l.b16 %v1345_v25  ;;  %2173 = vmatmul.msk.bf16.vlgmr.msrb.gmra.mxu2 %vm800_vm0, %v3265_v9  ;;  %v1284_v25 = vperm.slane %v3212_v7, 6 }
 0x2ff   : > { %v1277_v26 = vpop.f32.mrf.mxu1 }
 0x300   : > { %v1346_v28 = vpack.c.bf16 %v1277_v26, %v1277_v26  ;;  %v2411_v29 = vpack.i.bf16 %v1277_v26, %v1275_v21 }
 0x302   : > { %v1387_v30 = vunpack.c.l.b16 %v1346_v28  ;;  %2412 = vrot.lane.b32.xlu2 %v2411_v29, %s2903_s7 }
 0x304   : > { %v1388_v33 = vpack.c.b16 %v1387_v30, %v1386_v27 }
 0x306   : > { %v1393_v35 = vsel %vm921_vm1, %v1388_v33, 0 }
 0x307   : > { %1402 = vmatpush.bf16.xpose.msrb.mxu3 %v1393_v35 }
 0x30a   : > { %2417 = vrot.lane.b32.xlu2 %v2411_v29, %s2902_s15 }
 0x310   : > { %v1024_v51 = vpop.xlane.xlu2 %1023 }
 0x311   : > { %2457 = vrcp.f32 %v1024_v51 }
 0x312   : > { %2459 = vrcp.f32 %v2909_v3  ;;  %2422 = vrot.lane.b32.xlu2 %v2411_v29, %s2904_s18 }
 0x317   : > { %v2458_v52 = vpop.eup %2457 }
 0x318   : > { %v2460_v8 = vpop.eup %2459 }
 0x319   : > { %v1179_v10 = vmul.f32 32.0, %v2460_v8  ;;  %vm1183_vm6 = vweird.f32 %v2460_v8 }
 0x321   : > { %v1054_v47 = vpop.f32.mrf.mxu3 }
 0x322   : > { %v1119_v53 = vmul.f32 %v2458_v52, %v1054_v47 }
 0x329   : > { %v1056_v49 = vpop.f32.mrf.mxu3 }
 0x342   : > { %v1133_v57 = vpop.permute.xlu2 %1132 }
 0x35c   : > { %v1129_v55 = vpop.permute.xlu0 %1128  ;;  %v2413_v47 = vpop.permute.xlu2 %2412 }
 0x35d   : > { %v2415_v48 = vunpack.i.h.bf16 %v2413_v47  ;;  %v2414_v49 = vunpack.i.l.bf16 %v2413_v47 }
 0x35e   : > { %v1125_v54 = vpop.permute.xlu1 %1124 }
 0x35f   : > { %v1135_v56 = vsel %vm921_vm1, %v1119_v53, %v1125_v54  ;;  %v1352_v51 = vpack.c.bf16 %v2415_v48, %v2415_v48  ;;  %v1351_v52 = vpack.c.bf16 %v2414_v49, %v2414_v49 }
 0x360   : > { %v1137_v58 = vsel %vm1136_vm4, %v1135_v56, %v1129_v55 }
 0x361   : > { %v1139_v59 = vsel %vm1138_vm5, %v1137_v58, %v1133_v57  ;;  %v1459_v53 = vunpack.c.l.b16 %v1352_v51  ;;  %v1458_v54 = vunpack.c.l.b16 %v1351_v52 }
 0x362   : > { %v1140_v60 = vpack.c.bf16 %v1139_v59, %v1139_v59 }
 0x363   : > { %v1460_v55 = vpack.c.b16 %v1459_v53, %v1458_v54 }
 0x364   : > { %2142 = vmatmul.msk.bf16.vlgmr.msra.gmra.mxu3 %vm800_vm0, %v1140_v60  ;;  %v2418_v56 = vpop.permute.xlu2 %2417 }
 0x365   : > { %v2420_v57 = vunpack.i.h.bf16 %v2418_v56  ;;  %v2419_v58 = vunpack.i.l.bf16 %v2418_v56  ;;  %v1465_v59 = vsel %vm921_vm1, %v1460_v55, 0 }
 0x366   : > { %1474 = vmatpush.bf16.xpose.msra.mxu2 %v1465_v59 }
 0x367   : > { %v1348_v60 = vpack.c.bf16 %v2420_v57, %v2420_v57 }
 0x3e7   : > { %v1170_v62 = vpop.f32.mrf.mxu3 }
 0x3e8   : > { %v1171_v63 = vadd.f32 %v1170_v62, %v1145_v61  ;;  %v1347_v61 = vpack.c.bf16 %v2419_v58, %v2419_v58  ;;  %v1411_v62 = vunpack.c.l.b16 %v1348_v60 }
 0x3ea   : > { %v1174_v0 = vadd.f32 %v1171_v63, %v3206_v4  ;;  %v1180_v4 = vsub.f32 1.0, %v1179_v10  ;;  %v1410_v63 = vunpack.c.l.b16 %v1347_v61 }
 0x3ec   : > { %v1175_v1 = vsel %vm800_vm0, %v1174_v0, 0.0  ;;  %v1181_v11 = vmul.f32 %v2460_v8, %v1180_v4 }
 0x3ed   : > { %1176 = vadd.xlane.f32.xlu0 %v1175_v1  ;;  %v2423_v1 = vpop.permute.xlu2 %2422 }
 0x3ee   : > { %v1182_v12 = vadd.f32 %v2460_v8, %v1181_v11  ;;  %v2424_v3 = vunpack.i.l.bf16 %v2423_v1 }
 0x3ef   : > { %v1172_v2 = vpop.f32.mrf.mxu3 }
 0x3f0   : > { %v3269_v13 = vsel %vm1183_vm6, %v2460_v8, %v1182_v12  ;;  %v2425_v2 = vunpack.i.h.bf16 %v2423_v1  ;;  %v1349_v9 = vpack.c.bf16 %v2424_v3, %v2424_v3 }
 0x3f2   : > { %v1350_v8 = vpack.c.bf16 %v2425_v2, %v2425_v2  ;;  %v1434_v11 = vunpack.c.l.b16 %v1349_v9 }
 0x3f4   : > { %v1435_v4 = vunpack.c.l.b16 %v1350_v8 }
 0x460   : > { %v1177_v14 = vpop.xlane.xlu0 %1176 }
 0x461   : > { %v1185_v15 = vmul.f32 %v3269_v13, %v1177_v14  ;;  %v1436_v14 = vpack.c.b16 %v1435_v4, %v1434_v11 }
 0x463   : > { %v1186_v16 = vsub.f32 %v1174_v0, %v1185_v15  ;;  %v1412_v0 = vpack.c.b16 %v1411_v62, %v1410_v63 }
 0x465   : > { %v1187_v17 = vmul.f32 %v1186_v16, %v1186_v16  ;;  %v1417_v5 = vsel %vm921_vm1, %v1412_v0, 0 }
 0x466   : > { %1426 = vmatpush.bf16.xpose.msra.mxu0 %v1417_v5 }
 0x467   : > { %v1188_v18 = vsel %vm800_vm0, %v1187_v17, 0.0 }
 0x468   : > { %1189 = vadd.xlane.f32.xlu1 %v1188_v18 }
 0x4db   : > { %v1190_v22 = vpop.xlane.xlu1 %1189 }
 0x4dc   : > { %v1191_v23 = vmul.f32 %v1190_v22, %v3269_v13 }
 0x4de   : > { %v1192_v24 = vadd.f32 1e-05, %v1191_v23 }
 0x4e0   : > { %2461 = vrsqrt.f32 %v1192_v24  ;;  %vm1199_vm8 = vweird.f32 %v1192_v24 }
 0x4e6   : > { %v2462_v31 = vpop.eup %2461 }
 0x4e7   : > { %v1194_v32 = vmul.f32 %v2462_v31, %v1192_v24  ;;  %vm1200_vm7 = vweird.f32 %v2462_v31  ;;  %v1306_v24 = vpop.f32.mrf.mxu2 }
 0x4e8   : > { %vm1201_vm9 = vmor %vm1199_vm8, %vm1200_vm7  ;;  %v1307_v26 = vadd.f32 %v1306_v24, %v1284_v25 }
 0x4e9   : > { %v1195_v34 = vmul.f32 %v2462_v31, %v1194_v32 }
 0x4ea   : > { %v1373_v27 = vpack.c.bf16 %v1307_v26, %v1307_v26 }
 0x4eb   : > { %v1196_v36 = vmul.f32 0.5, %v1195_v34 }
 0x4ec   : > { %v1522_v30 = vunpack.c.l.b16 %v1373_v27 }
 0x4ed   : > { %v1197_v37 = vsub.f32 1.5, %v1196_v36 }
 0x4ef   : > { %v1198_v38 = vmul.f32 %v2462_v31, %v1197_v37  ;;  %v1308_v28 = vpop.f32.mrf.mxu2  ;;  %v2441_v37 = vld [vmem:[%s763_s27] ss:$0 sm:$0xff] }
 0x4f0   : > { %v1309_v29 = vadd.f32 %v1308_v28, %v1284_v25 }
 0x4f1   : > { %v1202_v40 = vsel %vm1201_vm9, %v2462_v31, %v1198_v38 }
 0x4f2   : > { %v1203_v42 = vmul.f32 %v1202_v40, %v1186_v16  ;;  %v1441_v16 = vsel %vm921_vm1, %v1436_v14, 0  ;;  %v1374_v31 = vpack.c.bf16 %v1309_v29, %v1309_v29  ;;  %v2426_v32 = vpack.i.bf16 %v1309_v29, %v1307_v26 }
 0x4f3   : > { %1450 = vmatpush.bf16.xpose.msra.mxu1 %v1441_v16 }
 0x4f4   : > { %v1205_v43 = vmul.f32 %v1204_v39, %v1203_v42  ;;  %v1523_v33 = vunpack.c.l.b16 %v1374_v31  ;;  %2427 = vrot.lane.b32.xlu1 %v2426_v32, %s2903_s7 }
 0x4f6   : > { %v3280_v44 = vadd.f32 %v1206_v41, %v1205_v43  ;;  %v1524_v34 = vpack.c.b16 %v1523_v33, %v1522_v30 }
 0x4f8   : > { %v1208_v45 = vpack.c.bf16 %v3280_v44, %v3280_v44  ;;  %1536 = vmatpush.bf16.msra.mxu3 %v1524_v34 }
 0x4fa   : > { %2151 = vmatmul.msk.bf16.vlgmr.msrb.gmra.mxu0 %vm800_vm0, %v1208_v45 }
 0x4fc   : > { %2432 = vrot.lane.b32.xlu1 %v2426_v32, %s2902_s15 }
 0x566   : > { %v2428_v51 = vpop.permute.xlu1 %2427 }
 0x567   : > { %v2430_v52 = vunpack.i.h.bf16 %v2428_v51  ;;  %v2429_v53 = vunpack.i.l.bf16 %v2428_v51 }
 0x569   : > { %v1380_v55 = vpack.c.bf16 %v2430_v52, %v2430_v52  ;;  %v1379_v56 = vpack.c.bf16 %v2429_v53, %v2429_v53 }
 0x56b   : > { %v1589_v57 = vunpack.c.l.b16 %v1380_v55  ;;  %v1588_v58 = vunpack.c.l.b16 %v1379_v56 }
 0x56d   : > { %v1590_v60 = vpack.c.b16 %v1589_v57, %v1588_v58  ;;  %v2239_v57 = vld [vmem:[#allocation14 + $0x8] sm:$0xff]  ;;  %v2238_v58 = vld [vmem:[#allocation14] sm:$0xff] }
 0x56e   : > { %v2433_v61 = vpop.permute.xlu1 %2432 }
 0x56f   : > { %v2435_v62 = vunpack.i.h.bf16 %v2433_v61  ;;  %v2434_v63 = vunpack.i.l.bf16 %v2433_v61  ;;  %1602 = vmatpush.bf16.msrb.mxu2 %v1590_v60 }
 0x571   : > { %v1376_v0 = vpack.c.bf16 %v2435_v62, %v2435_v62  ;;  %v1375_v1 = vpack.c.bf16 %v2434_v63, %v2434_v63 }
 0x573   : > { %v1545_v2 = vunpack.c.l.b16 %v1376_v0  ;;  %v1544_v3 = vunpack.c.l.b16 %v1375_v1 }
 0x575   : > { %v1546_v5 = vpack.c.b16 %v1545_v2, %v1544_v3 }
 0x577   : > { %v1238_v10 = vpop.f32.mrf.mxu0  ;;  %1558 = vmatpush.bf16.msrb.mxu0 %v1546_v5 }
 0x578   : > { %v1239_v12 = vadd.f32 %v1238_v10, %v1213_v6 }
 0x57a   : > { %v1321_v15 = vpack.c.bf16 %v1239_v12, %v1239_v12  ;;  %1315 = vrot.lane.b32.xlu0 %v1239_v12, %s2904_s18  ;;  %1318 = vrot.lane.b32.xlu2 %v1239_v12, %s2903_s7  ;;  %s3457_s7 = sld [smem:[#allocation36_spill]] }
 0x57c   : > { %2174 = vmatmul.msk.bf16.vlgmr.msrb.gmra.mxu3 %vm921_vm1, %v1321_v15 }
 0x57d   : > { %1658 = vmatpush.bf16.msrb.mxu3 %v2239_v57 }
 0x57f   : > { %v1240_v17 = vpop.f32.mrf.mxu0 }
 0x581   : > { %1659 = vmatpush.bf16.msrb.mxu3 %v2238_v58 }
 0x582   : > { %1312 = vrot.lane.b32.xlu2 %v1239_v12, %s2902_s15  ;;  %s2219_s15 = sshll.u32 %s2879_s24, 3  ;;  %s1852_s24 = scalar_lea.sflag [#allocation4], %s3162_s8 }
 0x5d4   : > { %v1319_v18 = vpop.permute.xlu2 %1318 }
 0x5d5   : > { %v1324_v19 = vpack.c.bf16 %v1319_v18, %v1319_v18 }
 0x5d7   : > { %2177 = vmatmul.msk.bf16.vlgmr.msra.gmra.mxu2 %vm921_vm1, %v1324_v19 }
 0x5dc   : > { %v1313_v20 = vpop.permute.xlu2 %1312 }
 0x5dd   : > { %v1322_v21 = vpack.c.bf16 %v1313_v20, %v1313_v20 }
 0x5df   : > { %2175 = vmatmul.msk.bf16.vlgmr.msra.gmra.mxu0 %vm921_vm1, %v1322_v21 }
 0x5ec   : > { %v1316_v22 = vpop.permute.xlu0 %1315 }
 0x5ed   : > { %v1323_v23 = vpack.c.bf16 %v1316_v22, %v1316_v22 }
 0x5ef   : > { %2176 = vmatmul.msk.bf16.vlgmr.msra.gmra.mxu1 %vm921_vm1, %v1323_v23 }
 0x5ff   : > { %v1404_v35 = vpop.f32.mrf.mxu3 }
 0x600   : > { %v1405_v46 = vadd.f32 %v2441_v37, %v1404_v35 }
 0x602   : > { %v1480_v48 = vsel %vm1136_vm4, %v1405_v46, -inf }
 0x607   : > { %v1406_v36 = vpop.f32.mrf.mxu3 }
 0x65a   : > { %v1476_v38 = vpop.f32.mrf.mxu2 }
 0x65b   : > { %v1477_v39 = vadd.f32 %v2441_v37, %v1476_v38 }
 0x65c   : > { %v1428_v40 = vpop.f32.mrf.mxu0 }
 0x65d   : > { %v1429_v41 = vadd.f32 %v2441_v37, %v1428_v40  ;;  %v1489_v42 = vsel %vm1136_vm4, %v1477_v39, -inf }
 0x65e   : > { %1490 = vmax.xlane.f32.xlu1 %v1489_v42 }
 0x65f   : > { %v1483_v43 = vsel %vm1136_vm4, %v1429_v41, -inf }
 0x660   : > { %1484 = vmax.xlane.f32.xlu2 %v1483_v43 }
 0x662   : > { %v1478_v45 = vpop.f32.mrf.mxu2 }
 0x664   : > { %v1430_v47 = vpop.f32.mrf.mxu0 }
 0x668   : > { %1481 = vmax.xlane.f32.xlu2 %v1480_v48 }
 0x66c   : > { %v1452_v49 = vpop.f32.mrf.mxu1 }
 0x66d   : > { %v1453_v50 = vadd.f32 %v2441_v37, %v1452_v49 }
 0x66f   : > { %v1486_v54 = vsel %vm1136_vm4, %v1453_v50, -inf }
 0x670   : > { %1487 = vmax.xlane.f32.xlu0 %v1486_v54 }
 0x674   : > { %v1454_v59 = vpop.f32.mrf.mxu1 }
 0x677   : > { %2437 = vrot.lane.b32.xlu1 %v2426_v32, %s2904_s18 }
 0x6d1   : > { %v1491_v6 = vpop.xlane.xlu1 %1490 }
 0x6d2   : > { %v1495_v8 = vsub.f32 %v1477_v39, %v1491_v6  ;;  %v1636_v6 = vperm.slane %v3212_v7, 7 }
 0x6d3   : > { %v1485_v9 = vpop.xlane.xlu2 %1484 }
 0x6d4   : > { %v1502_v10 = vmul.f32 1.442695, %v1495_v8  ;;  %v1493_v4 = vsub.f32 %v1429_v41, %v1485_v9 }
 0x6d6   : > { %2463 = vpow2.f32 %v1502_v10  ;;  %v1498_v11 = vmul.f32 1.442695, %v1493_v4 }
 0x6d8   : > { %2465 = vpow2.f32 %v1498_v11 }
 0x6db   : > { %v1482_v12 = vpop.xlane.xlu2 %1481 }
 0x6dc   : > { %v2464_v14 = vpop.eup %2463  ;;  %v1492_v15 = vsub.f32 %v1405_v46, %v1482_v12 }
 0x6dd   : > { %v1519_v16 = vpack.c.bf16 %v2464_v14, %v2464_v14  ;;  %v1513_v38 = vsel %vm1136_vm4, %v2464_v14, 0.0 }
 0x6de   : > { %v2466_v17 = vpop.eup %2465  ;;  %v1496_v18 = vmul.f32 1.442695, %v1492_v15 }
 0x6df   : > { %v1517_v19 = vpack.c.bf16 %v2466_v17, %v2466_v17  ;;  %2181 = vmatmul.msk.bf16.vlgmr.msrb.gmra.mxu2 %vm1136_vm4, %v1519_v16  ;;  %v1507_v20 = vsel %vm1136_vm4, %v2466_v17, 0.0 }
 0x6e0   : > { %2467 = vpow2.f32 %v1496_v18  ;;  %1508 = vadd.xlane.f32.xlu1 %v1507_v20  ;;  %v2241_v18 = vld [vmem:[#allocation16 + $0x8] sm:$0xff] }
 0x6e1   : > { %2179 = vmatmul.msk.bf16.vlgmr.msrb.gmra.mxu0 %vm1136_vm4, %v1517_v19  ;;  %v2240_v19 = vld [vmem:[#allocation16] sm:$0xff] }
 0x6e2   : > { %1721 = vmatpush.bf16.msra.mxu0 %v2241_v18 }
 0x6e3   : > { %v1488_v21 = vpop.xlane.xlu0 %1487 }
 0x6e4   : > { %v1494_v22 = vsub.f32 %v1453_v50, %v1488_v21 }
 0x6e6   : > { %v2468_v23 = vpop.eup %2467  ;;  %v1500_v24 = vmul.f32 1.442695, %v1494_v22  ;;  %1722 = vmatpush.bf16.msra.mxu0 %v2240_v19 }
 0x6e7   : > { %v1516_v25 = vpack.c.bf16 %v2468_v23, %v2468_v23  ;;  %v1504_v26 = vsel %vm1136_vm4, %v2468_v23, 0.0 }
 0x6e8   : > { %2469 = vpow2.f32 %v1500_v24  ;;  %1505 = vadd.xlane.f32.xlu0 %v1504_v26 }
 0x6e9   : > { %2178 = vmatmul.msk.bf16.vlgmr.msra.gmra.mxu3 %vm1136_vm4, %v1516_v25  ;;  %v2438_v27 = vpop.permute.xlu1 %2437  ;;  %v3336_v25 = vld [vmem:[#allocation17 + $0x8] sm:$0xff] }
 0x6ea   : > { %v2440_v28 = vunpack.i.h.bf16 %v2438_v27  ;;  %v2439_v29 = vunpack.i.l.bf16 %v2438_v27 }
 0x6ec   : > { %v1378_v30 = vpack.c.bf16 %v2440_v28, %v2440_v28  ;;  %v1377_v31 = vpack.c.bf16 %v2439_v29, %v2439_v29  ;;  %v1688_v28 = vperm.slane %v3336_v25, 0 }
 0x6ee   : > { %v2470_v32 = vpop.eup %2469  ;;  %v1567_v33 = vunpack.c.l.b16 %v1378_v30  ;;  %v1566_v34 = vunpack.c.l.b16 %v1377_v31  ;;  %v1690_v30 = vperm.slane %v3336_v25, 1 }
 0x6ef   : > { %v1510_v35 = vsel %vm1136_vm4, %v2470_v32, 0.0  ;;  %v1518_v37 = vpack.c.bf16 %v2470_v32, %v2470_v32 }
 0x6f0   : > { %v1568_v36 = vpack.c.b16 %v1567_v33, %v1566_v34  ;;  %1511 = vadd.xlane.f32.xlu2 %v1510_v35  ;;  %v2442_v35 = vld [vmem:[%s3457_s7] ss:$0 sm:$0xff] }
 0x6f2   : > { %1580 = vmatpush.bf16.msrb.mxu1 %v1568_v36 }
 0x6f5   : > { %2180 = vmatmul.msk.bf16.vlgmr.msrb.gmra.mxu1 %vm1136_vm4, %v1518_v37 }
 0x6f8   : > { %1514 = vadd.xlane.f32.xlu2 %v1513_v38 }
 0x753   : > { %v1509_v39 = vpop.xlane.xlu1 %1508 }
 0x754   : > { %2471 = vrcp.f32 %v1509_v39 }
 0x75a   : > { %v2472_v40 = vpop.eup %2471 }
 0x75b   : > { %v1506_v59 = vpop.xlane.xlu0 %1505 }
 0x75e   : > { %v1560_v41 = vpop.f32.mrf.mxu0 }
 0x75f   : > { %v1613_v42 = vmul.f32 %v2472_v40, %v1560_v41 }
 0x761   : > { %1617 = vrot.lane.b32.xlu2 %v1613_v42, %s2908_s19 }
 0x762   : > { %v1604_v43 = vpop.f32.mrf.mxu2 }
 0x763   : > { %v1512_v45 = vpop.xlane.xlu2 %1511 }
 0x764   : > { %2473 = vrcp.f32 %v1512_v45 }
 0x766   : > { %v1562_v46 = vpop.f32.mrf.mxu0 }
 0x76a   : > { %v1606_v47 = vpop.f32.mrf.mxu2  ;;  %v2474_v50 = vpop.eup %2473 }
 0x76b   : > { %v1515_v49 = vpop.xlane.xlu2 %1514 }
 0x76c   : > { %v1538_v48 = vpop.f32.mrf.mxu3  ;;  %2475 = vrcp.f32 %v1515_v49 }
 0x76d   : > { %2477 = vrcp.f32 %v1506_v59 }
 0x772   : > { %v1582_v51 = vpop.f32.mrf.mxu1  ;;  %v2476_v54 = vpop.eup %2475 }
 0x773   : > { %v1614_v52 = vmul.f32 %v2474_v50, %v1582_v51  ;;  %v1615_v56 = vmul.f32 %v2476_v54, %v1604_v43  ;;  %v2478_v61 = vpop.eup %2477 }
 0x774   : > { %v1540_v53 = vpop.f32.mrf.mxu3  ;;  %v1612_v63 = vmul.f32 %v2478_v61, %v1538_v48 }
 0x775   : > { %1621 = vrot.lane.b32.xlu0 %v1614_v52, %s2907_s16  ;;  %s3458_s16 = sld [smem:[#allocation35_spill]] }
 0x77a   : > { %v1584_v55 = vpop.f32.mrf.mxu1 }
 0x77b   : > { %v2245_v42 = vld [vmem:[%s3458_s16 + $0x18] sm:$0xff]  ;;  %v2244_v48 = vld [vmem:[%s3458_s16 + $0x10] sm:$0xff]  ;;  %v2243_v53 = vld [vmem:[%s3458_s16 + $0x8] sm:$0xff] }
 0x77c   : > { %1814 = vmatpush.bf16.msra.mxu1 %v2245_v42  ;;  %v2242_v57 = vld [vmem:[%s3458_s16] sm:$0xff] }
 0x77d   : > { %1625 = vrot.lane.b32.xlu0 %v1615_v56, %s2906_s5  ;;  %s3459_s5 = sld [smem:[#allocation37_spill]] }
 0x780   : > { %1815 = vmatpush.bf16.msra.mxu1 %v2244_v48 }
 0x783   : > { %s1863_s19 = scalar_lea.hbm %s3459_s5, %s2219_s15  ;;  %s2805_s6 = scalar_lea.hbm %s3459_s5, 16 }
 0x784   : > { %1816 = vmatpush.bf16.msra.mxu1 %v2243_v53  ;;  %s1867_s27 = sshll.u32 %s1863_s19, 4  ;;  %s1868_s27 = int_to_ptr.hbm [resolvable:$true] %s1867_s27 }
 0x785   : > { %s2799_s20 = sshra.s32 %s1868_s27, 4  ;;  %s2800_s20 = int_to_ptr.hbm [resolvable:$true] %s2799_s20 }
 0x786   : > { %s2801_s28 = scalar_lea.hbm %s2800_s20, 8  ;;  %p2806_p11 = scmp.lt.s32.totalorder %s2800_s20, %s3459_s5 }
 0x787   : > { %p2802_p1 = scmp.ne.s32.totalorder %s2800_s20, %s2801_s28  ;;  %p2807_p12 = scmp.lt.s32.totalorder %s2805_s6, %s2801_s28 }
 0x788   : > { %1817 = vmatpush.bf16.msra.mxu1 %v2242_v57 }
 0x789   : > { %p2803_p9 = pnand %p2802_p1, %p3140_p4  ;;  %p2808_p13 = por %p2807_p12, %p2806_p11 }
 0x78b   : > { %p2804_p10 = pneg %p2803_p9 }
 0x78d   : > { %p2809_p0 = pnand %p2808_p13, %p2804_p10 }
 0x7bb   : > { %v1618_v62 = vpop.permute.xlu2 %1617 }
 0x7bc   : > { %v1628_v0 = vsel %vm921_vm1, %v1612_v63, %v1618_v62 }
 0x7e7   : > { %v1622_v60 = vpop.permute.xlu0 %1621 }
 0x7e8   : > { %v1629_v1 = vsel %vm1136_vm4, %v1628_v0, %v1622_v60 }
 0x7ef   : > { %v1626_v2 = vpop.permute.xlu0 %1625 }
 0x7f0   : > { %v1630_v3 = vsel %vm1138_vm5, %v1629_v1, %v1626_v2 }
 0x7f1   : > { %v1631_v5 = vpack.c.bf16 %v1630_v3, %v1630_v3 }
 0x7f3   : > { %2190 = vmatmul.msk.bf16.vlgmr.msrb.gmra.mxu3 %vm800_vm0, %v1631_v5 }
 0x876   : > { %v1661_v8 = vpop.f32.mrf.mxu3 }
 0x877   : > { %v1662_v9 = vadd.f32 %v1661_v8, %v1636_v6 }
 0x879   : > { %v1665_v10 = vadd.f32 %v1662_v9, %v3280_v44 }
 0x87b   : > { %v1666_v4 = vsel %vm800_vm0, %v1665_v10, 0.0 }
 0x87c   : > { %1667 = vadd.xlane.f32.xlu1 %v1666_v4 }
 0x87e   : > { %v1663_v11 = vpop.f32.mrf.mxu3 }
 0x8ef   : > { %v1668_v12 = vpop.xlane.xlu1 %1667 }
 0x8f0   : > { %v1669_v14 = vmul.f32 %v1668_v12, %v3269_v13 }
 0x8f2   : > { %v1670_v15 = vsub.f32 %v1665_v10, %v1669_v14 }
 0x8f4   : > { %v1671_v16 = vmul.f32 %v1670_v15, %v1670_v15 }
 0x8f6   : > { %v1672_v17 = vsel %vm800_vm0, %v1671_v16, 0.0 }
 0x8f7   : > { %1673 = vadd.xlane.f32.xlu2 %v1672_v17 }
 0x96a   : > { %v1674_v7 = vpop.xlane.xlu2 %1673 }
 0x96b   : > { %v1675_v20 = vmul.f32 %v1674_v7, %v3269_v13 }
 0x96d   : > { %v1676_v44 = vadd.f32 1e-05, %v1675_v20 }
 0x96f   : > { %2479 = vrsqrt.f32 %v1676_v44  ;;  %vm1683_vm11 = vweird.f32 %v1676_v44 }
 0x975   : > { %v2480_v21 = vpop.eup %2479 }
 0x976   : > { %v1678_v22 = vmul.f32 %v2480_v21, %v1676_v44  ;;  %vm1684_vm10 = vweird.f32 %v2480_v21  ;;  %v1781_v44 = vperm.slane %v3336_v25, 2 }
 0x977   : > { %vm1685_vm12 = vmor %vm1683_vm11, %vm1684_vm10 }
 0x978   : > { %v1679_v23 = vmul.f32 %v2480_v21, %v1678_v22 }
 0x97a   : > { %v1680_v24 = vmul.f32 0.5, %v1679_v23 }
 0x97c   : > { %v1681_v26 = vsub.f32 1.5, %v1680_v24 }
 0x97e   : > { %v1682_v27 = vmul.f32 %v2480_v21, %v1681_v26 }
 0x980   : > { %v1686_v29 = vsel %vm1685_vm12, %v2480_v21, %v1682_v27 }
 0x981   : > { %v1687_v31 = vmul.f32 %v1686_v29, %v1670_v15 }
 0x983   : > { %v1689_v32 = vmul.f32 %v1688_v28, %v1687_v31 }
 0x985   : > { %v3340_v33 = vadd.f32 %v1690_v30, %v1689_v32 }
 0x987   : > { %v1692_v34 = vpack.c.bf16 %v3340_v33, %v3340_v33 }
 0x989   : > { %2199 = vmatmul.msk.bf16.vlgmr.msra.gmra.mxu0 %vm800_vm0, %v1692_v34 }
 0xa06   : > { %v1724_v36 = vpop.f32.mrf.mxu0 }
 0xa07   : > { %v1725_v37 = vadd.f32 %v2442_v35, %v1724_v36 }
 0xa09   : > { %v1729_v38 = vmul.f32 0.70710677, %v1725_v37  ;;  %v1728_v18 = vmul.f32 0.5, %v1725_v37 }
 0xa0b   : > { %v1730_v39 = vmul.f32 %v1729_v38, %v1729_v38 }
 0xa0d   : > { %v1731_v40 = vmin.f32 %v1730_v39, 16.0 }
 0xa0e   : > { %v1726_v41 = vpop.f32.mrf.mxu0 }
 0xa0f   : > { %v1732_v43 = vmul.f32 2.1237322e-06, %v1731_v40  ;;  %v1743_v45 = vmul.f32 3.8918573e-05, %v1731_v40  ;;  %v1846_v41 = vperm.slane %v3336_v25, 3 }
 0xa11   : > { %v1733_v46 = vadd.f32 0.00028619796, %v1732_v43  ;;  %v1744_v47 = vadd.f32 0.001143296, %v1743_v45  ;;  %v1848_v43 = vperm.slane %v3336_v25, 4 }
 0xa13   : > { %v1734_v49 = vmul.f32 %v1733_v46, %v1731_v40  ;;  %v1745_v50 = vmul.f32 %v1744_v47, %v1731_v40 }
 0xa15   : > { %v1746_v51 = vadd.f32 0.014752088, %v1745_v50  ;;  %v1735_v52 = vadd.f32 0.0036580483, %v1734_v49 }
 0xa17   : > { %v1747_v54 = vmul.f32 %v1746_v51, %v1731_v40  ;;  %v1736_v56 = vmul.f32 %v1735_v52, %v1731_v40 }
 0xa19   : > { %v1748_v55 = vadd.f32 0.112945676, %v1747_v54  ;;  %v1737_v60 = vadd.f32 0.05243302, %v1736_v56 }
 0xa1b   : > { %v1749_v58 = vmul.f32 %v1748_v55, %v1731_v40  ;;  %v1738_v63 = vmul.f32 %v1737_v60, %v1731_v40 }
 0xa1d   : > { %v1750_v59 = vadd.f32 0.4994258, %v1749_v58  ;;  %v1739_v0 = vadd.f32 0.18741608, %v1738_v63 }
 0xa1f   : > { %v1751_v61 = vmul.f32 %v1750_v59, %v1731_v40  ;;  %v1740_v2 = vmul.f32 %v1739_v0, %v1731_v40 }
 0xa21   : > { %v1752_v62 = vadd.f32 1.0, %v1751_v61  ;;  %v1741_v8 = vadd.f32 1.1283791, %v1740_v2 }
 0xa23   : > { %2481 = vrcp.f32 %v1752_v62  ;;  %v1764_v6 = vand.u32 2147483648, %v1752_v62  ;;  %v1762_v10 = vand.u32 2147483647, %v1752_v62  ;;  %vm1758_vm14 = vweird.f32 %v1752_v62 }
 0xa24   : > { %v1742_v12 = vmul.f32 %v1741_v8, %v1729_v38 }
 0xa25   : > { %v1765_v11 = vor.u32 1.1754944e-38, %v1764_v6  ;;  %vm1763_vm1 = vcmp.eq.f32.partialorder %v1762_v10, 8.507059e+37 }
 0xa29   : > { %v2482_v1 = vpop.eup %2481 }
 0xa2a   : > { %v1754_v3 = vmul.f32 %v2482_v1, %v1752_v62  ;;  %vm1759_vm13 = vweird.f32 %v2482_v1 }
 0xa2b   : > { %vm1760_vm15 = vmor %vm1758_vm14, %vm1759_vm13 }
 0xa2c   : > { %v1755_v5 = vsub.f32 1.0, %v1754_v3 }
 0xa2e   : > { %v1756_v9 = vmul.f32 %v2482_v1, %v1755_v5 }
 0xa30   : > { %v1757_v4 = vadd.f32 %v2482_v1, %v1756_v9 }
 0xa32   : > { %v1761_v14 = vsel %vm1760_vm15, %v2482_v1, %v1757_v4 }
 0xa33   : > { %v1766_v15 = vsel %vm1763_vm1, %v1765_v11, %v1761_v14 }
 0xa34   : > { %v1767_v16 = vmul.f32 %v1766_v15, %v1742_v12 }
 0xa36   : > { %v2200_v17 = vclamps-f32 %v1767_v16, 1.0 }
 0xa38   : > { %v1770_v19 = vadd.f32 1.0, %v2200_v17 }
 0xa3a   : > { %v1771_v7 = vmul.f32 %v1770_v19, %v1728_v18 }
 0xa3c   : > { %v1772_v20 = vpack.c.bf16 %v1771_v7, %v1771_v7 }
 0xa3e   : > { %2217 = vmatmul.msk.bf16.vlgmr.msra.gmra.mxu1 %vm1806_vm2, %v1772_v20 }
 0xabb   : > { %v1819_v21 = vpop.f32.mrf.mxu1 }
 0xabc   : > { %v1820_v22 = vadd.f32 %v1819_v21, %v1781_v44 }
 0xabe   : > { %v1823_v23 = vadd.f32 %v1820_v22, %v3340_v33 }
 0xac0   : > { %v1824_v24 = vsel %vm800_vm0, %v1823_v23, 0.0 }
 0xac1   : > { %1825 = vadd.xlane.f32.xlu0 %v1824_v24 }
 0xac3   : > { %v1821_v26 = vpop.f32.mrf.mxu1 }
 0xb34   : > { %v1826_v27 = vpop.xlane.xlu0 %1825 }
 0xb35   : > { %v1827_v28 = vmul.f32 %v1826_v27, %v3269_v13 }
 0xb37   : > { %v1828_v29 = vsub.f32 %v1823_v23, %v1827_v28 }
 0xb39   : > { %v1829_v30 = vmul.f32 %v1828_v29, %v1828_v29 }
 0xb3b   : > { %v1830_v31 = vsel %vm800_vm0, %v1829_v30, 0.0 }
 0xb3c   : > { %1831 = vadd.xlane.f32.xlu1 %v1830_v31 }
 0xbaf   : > { %v1832_v32 = vpop.xlane.xlu1 %1831 }
 0xbb0   : > { %v1833_v34 = vmul.f32 %v1832_v32, %v3269_v13 }
 0xbb2   : > { %v1834_v35 = vadd.f32 1e-05, %v1833_v34 }
 0xbb4   : > { %2483 = vrsqrt.f32 %v1834_v35  ;;  %vm1841_vm4 = vweird.f32 %v1834_v35 }
 0xbba   : > { %v2484_v33 = vpop.eup %2483 }
 0xbbb   : > { %v1836_v36 = vmul.f32 %v2484_v33, %v1834_v35  ;;  %vm1842_vm3 = vweird.f32 %v2484_v33 }
 0xbbc   : > { %vm1843_vm5 = vmor %vm1841_vm4, %vm1842_vm3 }
 0xbbd   : > { %v1837_v37 = vmul.f32 %v2484_v33, %v1836_v36 }
 0xbbf   : > { %v1838_v38 = vmul.f32 0.5, %v1837_v37 }
 0xbc1   : > { %v1839_v39 = vsub.f32 1.5, %v1838_v38 }
 0xbc3   : > { %v1840_v40 = vmul.f32 %v2484_v33, %v1839_v39 }
 0xbc5   : > { %v1844_v13 = vsel %vm1843_vm5, %v2484_v33, %v1840_v40 }
 0xbc6   : > { %v1845_v42 = vmul.f32 %v1844_v13, %v1828_v29 }
 0xbc8   : > { %v1847_v45 = vmul.f32 %v1846_v41, %v1845_v42 }
 0xbca   : > { %v1849_v46 = vadd.f32 %v1848_v43, %v1847_v45 }
 0xbcc   : > { %1850 = vst.msk [vmem:[%s748_s17] sm:$0xff] %vm800_vm0, %v1849_v46 }
 0xbcd   : > { %2812 = shalt.err (!%p2809_p0)
}
 0xbce   : > { %2284 = dma.vmem_to_hbm [thread:$0]  (%p3140_p4), %s1866_s2, 128, %s1868_s27, %s1852_s24  }
 0xbcf PF: > { %s1879_s8 = sand.u32 1, %s2867_s21   ;;  %p2319_p2 = pnand %p2081_p6, %p3148_p7 }
 0xbd0   : > { %s1880_s17 = scalar_lea.sflag [#allocation4], %s1879_s8 }
 0xbd1   : > { %p2320_p5 = pneg %p2319_p2 }
 0xbd3   : > { %2862 = dma.done.wait (%p2320_p5), %s1880_s17, 128  }
 0xbd4   : > { %2864 = vsyncadd (%p2320_p5), %s1880_s17, 4294967168  ;;  %s37_s26 = sadd.s32 1, %s2887_s26   ;;  %s3460_s21 = smov %s2871_s22 }
 0xbd5   : > { %p34_p8 = scmp.ge.s32.totalorder %s37_s26, 4   ;;  %s3461_s22 = smov %s2875_s23 }
 0xbd6   : > { %s3462_s23 = smov %s3146_s0  ;;  %s3463_s24 = smov %s2883_s25 }
 0xbd7   : > { %s3464_s25 = smov %s3466_s13  ;;  %36 = sbr.rel (!%p34_p8) target bundleno = 23 (0x17), region = 174 }
 0xbdc   :  { %1886 = vsyncpa [#allocation3], 1 }
 0xbdd   :  { %1888 = vsyncpa [#allocation3 + $0x1], 1 }
 0xbde   :  { %1889 = vsyncpa [#allocation6], 1 }
 0xbdf   :  { %1890 = vsyncpa [#allocation9], 1 }
 0xbe0   :  { %1891 = vsyncpa [#allocation12], 1 }
 0xbe1   :  { %1892 = vsyncpa [#allocation15], 1 }
 0xbe2   :  { %1893 = vsyncpa [#allocation18], 1 }
 0xbe3   :  { %1894 = vsyncpa [#allocation4], 1 }
 0xbe4   :  { %1896 = vsyncpa [#allocation4 + $0x1], 1 }

// kernel: tpu_custom_call.1
= control target key start
LH: loop header
LB: loop body
LE: loop exit
PB: predicated region body
PF: predicated region fallthrough
CT: control target
= control target key end

     0   :  { %s3408_s0 = inlined_call_operand.vmem [shape: f32[2,8,32], index: 0, kind: input, shape index: {}]   ;;  %s3409_s1 = inlined_call_operand.hbm [shape: bf16[2,8,32], index: 1, kind: input, shape index: {}]   ;;  %s3410_s2 = inlined_call_operand.vmem [shape: bf16[2,16,32], index: 2, kind: input, shape index: {}]   ;;  %s3411_s3 = inlined_call_operand.vmem [shape: f32[2,1,16], index: 3, kind: input, shape index: {}]   ;;  %s3412_s4 = inlined_call_operand.vmem [shape: bf16[32,32], index: 4, kind: input, shape index: {}]   ;;  %s3413_s5 = inlined_call_operand.hbm [shape: bf16[32,32], index: 5, kind: input, shape index: {}]   ;;  %s3414_s6 = inlined_call_operand.hbm [shape: bf16[32,32], index: 6, kind: input, shape index: {}]   ;;  %s3415_s7 = inlined_call_operand.hbm [shape: bf16[32,32], index: 7, kind: input, shape index: {}]   ;;  %s3416_s8 = inlined_call_operand.hbm [shape: bf16[32,32], index: 8, kind: input, shape index: {}]   ;;  %s3417_s9 = inlined_call_operand.hbm [shape: bf16[32,32], index: 9, kind: input, shape index: {}]   ;;  %s3418_s10 = inlined_call_operand.hbm [shape: bf16[32,32], index: 10, kind: input, shape index: {}]   ;;  %s3419_s11 = inlined_call_operand.hbm [shape: bf16[32,32], index: 11, kind: input, shape index: {}]   ;;  %s3420_s12 = inlined_call_operand.hbm [shape: bf16[32,64], index: 12, kind: input, shape index: {}]   ;;  %s3421_s13 = inlined_call_operand.vmem [shape: bf16[64,32], index: 13, kind: input, shape index: {}]   ;;  %s3422_s14 = inlined_call_operand.hbm [shape: f32[16,32], index: 14, kind: input, shape index: {}]   ;;  %s3423_s15 = inlined_call_operand.vmem [shape: f32[1,64], index: 15, kind: input, shape index: {}]   ;;  %s3424_s16 = inlined_call_operand.hbm [shape: f32[2,8,32], index: 16, kind: output, shape index: {}]  }
   0x1   :  { %3430 = sst [smem:[#allocation27_spill]] %s3408_s0 }
   0x2   :  { %3431 = sst [smem:[#allocation28_spill]] %s3410_s2 }
   0x3   :  { %3432 = sst [smem:[#allocation29_spill]] %s3411_s3 }
   0x4   :  { %3433 = sst [smem:[#allocation30_spill]] %s3412_s4 }
   0x5   :  { %3434 = sst [smem:[#allocation31_spill]] %s3413_s5 }
   0x6   :  { %3435 = sst [smem:[#allocation32_spill]] %s3414_s6 }
   0x7   :  { %3436 = sst [smem:[#allocation33_spill]] %s3415_s7 }
   0x8   :  { %3437 = sst [smem:[#allocation34_spill]] %s3416_s8 }
   0x9   :  { %3438 = sst [smem:[#allocation35_spill]] %s3421_s13 }
   0xa   :  { %3439 = sst [smem:[#allocation36_spill]] %s3423_s15 }
   0xb   :  { %3440 = sst [smem:[#allocation37_spill]] %s3424_s16 }
   0xc   :  { %21 = vsyncpa [#allocation3], 0 }
   0xd   :  { %23 = vsyncpa [#allocation3 + $0x1], 0 }
   0xe   :  { %24 = vsyncpa [#allocation6], 0 }
   0xf   :  { %25 = vsyncpa [#allocation9], 0 }
  0x10   :  { %26 = vsyncpa [#allocation12], 0 }
  0x11   :  { %27 = vsyncpa [#allocation15], 0 }
  0x12   :  { %28 = vsyncpa [#allocation18], 0 }
  0x13   :  { %29 = vsyncpa [#allocation4], 0 }
  0x14   :  { %31 = vsyncpa [#allocation4 + $0x1], 0  ;;  %s2995_s21 = smov 0   ;;  %s2997_s22 = smov 0  }
  0x15   :  { %s2999_s23 = smov 0   ;;  %s3001_s24 = smov 0  }
  0x16   :  { %s3003_s25 = smov 0   ;;  %s3005_s26 = smov 0  }
  0x17 LB: > { %s3425_s27 = sadd.s32 4294967295, %s2887_s26   ;;  %p2071_p0 = scmp.ge.s32.totalorder %s2887_s26, 1  ;;  %s2887_s26 = sphi %s3005_s26, %s37_s26   ;;  %s2883_s25 = sphi %s3003_s25, %s3464_s25   ;;  %s2879_s24 = sphi %s3001_s24, %s3463_s24   ;;  %s2875_s23 = sphi %s2999_s23, %s3462_s23   ;;  %s2871_s22 = sphi %s2997_s22, %s3461_s22   ;;  %s2867_s21 = sphi %s2995_s21, %s3460_s21  }
  0x18   : > { %p3029_p1 = scmp.eq.s32.totalorder %s3425_s27, 0  ;;  %p440_p2 = scmp.lt.s32.totalorder %s2887_s26, 3 }
  0x19   : > { %s3442_s5 = sld [smem:[#allocation31_spill]]  ;;  %s2889_s18 = smov [#allocation5]  }
  0x1a   : > { %p3037_p3 = pnand %p2071_p0, %p440_p2  ;;  %s456_s19 = sshll.u32 %s2889_s18, 4  ;;  %s457_s19 = int_to_ptr.vmem [resolvable:$true] %s456_s19 }
  0x1b   : > { %p2081_p6 = scmp.ge.s32.totalorder %s2887_s26, 2  ;;  %s3445_s7 = sld [smem:[#allocation33_spill]] }
  0x1c   : > { %p2286_p4 = pneg %p3037_p3  ;;  %s2891_s16 = smov 4  }
  0x1d   : > { %s2892_s18 = smov [#allocation8]   ;;  %s510_s2 = sshll.u32 %s3417_s9, 4  ;;  %s511_s2 = int_to_ptr.hbm [resolvable:$true] %s510_s2 }
  0x1e   : > { %p3045_p5 = pnand %p2286_p4, %p3029_p1  ;;  %s484_s13 = sshll.u32 %s2892_s18, 4  ;;  %s485_s13 = int_to_ptr.vmem [resolvable:$true] %s484_s13 }
  0x1f   : > { %s454_s0 = sshll.u32 %s3442_s5, 4  ;;  %s2890_s5 = smov 64   ;;  %s455_s0 = int_to_ptr.hbm [resolvable:$true] %s454_s0 }
  0x20   : > { %2289 = dma.hbm_to_vmem [thread:$0]  (!%p3045_p5), %s455_s0, 256, %s457_s19, [#allocation6], %s2890_s5, %s2890_s5, %s2891_s16  }
  0x21   : > { %s482_s27 = sshll.u32 %s3445_s7, 4  ;;  %s538_s7 = sshll.u32 %s3419_s11, 4  ;;  %s483_s27 = int_to_ptr.hbm [resolvable:$true] %s482_s27  ;;  %s539_s7 = int_to_ptr.hbm [resolvable:$true] %s538_s7 }
  0x22   : > { %2295 = dma.hbm_to_vmem [thread:$0]  (!%p3045_p5), %s483_s27, 256, %s485_s13, [#allocation9], %s2890_s5, %s2890_s5, %s2891_s16  }
  0x23   : > { %s2893_s4 = smov [#allocation11]   ;;  %s2894_s3 = smov [#allocation14]  }
  0x24   : > { %s512_s0 = sshll.u32 %s2893_s4, 4  ;;  %s540_s15 = sshll.u32 %s2894_s3, 4  ;;  %s513_s0 = int_to_ptr.vmem [resolvable:$true] %s512_s0  ;;  %s541_s15 = int_to_ptr.vmem [resolvable:$true] %s540_s15 }
  0x25   : > { %2301 = dma.hbm_to_vmem [thread:$0]  (!%p3045_p5), %s511_s2, 256, %s513_s0, [#allocation12], %s2890_s5, %s2890_s5, %s2891_s16  }
  0x26   : > { %s3446_s6 = sld [smem:[#allocation32_spill]]  ;;  %s2895_s30 = smov [#allocation7]  }
  0x27   : > { %2307 = dma.hbm_to_vmem [thread:$0]  (!%p3045_p5), %s539_s7, 256, %s541_s15, [#allocation15], %s2890_s5, %s2890_s5, %s2891_s16  }
  0x28   : > { %s3447_s8 = sld [smem:[#allocation34_spill]]  ;;  %s470_s2 = sshll.u32 %s2895_s30, 4  ;;  %s471_s2 = int_to_ptr.vmem [resolvable:$true] %s470_s2 }
  0x29   : > { %s2896_s0 = smov [#allocation10]   ;;  %s524_s7 = sshll.u32 %s3418_s10, 4  ;;  %s525_s7 = int_to_ptr.hbm [resolvable:$true] %s524_s7 }
  0x2a   : > { %s498_s3 = sshll.u32 %s2896_s0, 4  ;;  %s552_s27 = sshll.u32 %s3420_s12, 4  ;;  %s499_s3 = int_to_ptr.vmem [resolvable:$true] %s498_s3  ;;  %s553_s27 = int_to_ptr.hbm [resolvable:$true] %s552_s27 }
  0x2b   : > { %s2897_s30 = smov [#allocation13]   ;;  %s569_s19 = sshll.u32 %s3422_s14, 4  ;;  %s570_s19 = int_to_ptr.hbm [resolvable:$true] %s569_s19 }
  0x2c   : > { %s468_s13 = sshll.u32 %s3446_s6, 4  ;;  %s2899_s18 = smov [#allocation17]   ;;  %s469_s13 = int_to_ptr.hbm [resolvable:$true] %s468_s13 }
  0x2d   : > { %2292 = dma.hbm_to_vmem [thread:$0]  (!%p3045_p5), %s469_s13, 256, %s471_s2, [#allocation6], %s2890_s5, %s2890_s5, %s2891_s16  }
  0x2e   : > { %s496_s29 = sshll.u32 %s3447_s8, 4  ;;  %s526_s13 = sshll.u32 %s2897_s30, 4  ;;  %s497_s29 = int_to_ptr.hbm [resolvable:$true] %s496_s29  ;;  %s527_s13 = int_to_ptr.vmem [resolvable:$true] %s526_s13 }
  0x2f   : > { %2298 = dma.hbm_to_vmem [thread:$0]  (!%p3045_p5), %s497_s29, 256, %s499_s3, [#allocation9], %s2890_s5, %s2890_s5, %s2891_s16  }
  0x30   : > { %2304 = dma.hbm_to_vmem [thread:$0]  (!%p3045_p5), %s525_s7, 256, %s527_s13, [#allocation12], %s2890_s5, %s2890_s5, %s2891_s16  }
  0x31   : > { %s2898_s2 = smov [#allocation16]   ;;  %s571_s7 = sshll.u32 %s2899_s18, 4  ;;  %s572_s7 = int_to_ptr.vmem [resolvable:$true] %s571_s7 }
  0x32   : > { %s554_s29 = sshll.u32 %s2898_s2, 4  ;;  %s2900_s15 = smov 128   ;;  %s555_s29 = int_to_ptr.vmem [resolvable:$true] %s554_s29 }
  0x33   : > { %2310 = dma.hbm_to_vmem [thread:$0]  (!%p3045_p5), %s553_s27, 256, %s555_s29, [#allocation15], %s2890_s5, %s2890_s5, %s2891_s16  }
  0x34   : > { %s2901_s4 = smov 8   ;;  %s2070_s30 = sadd.s32 4294967294, %s2887_s26  }
  0x35   : > { %2313 = dma.hbm_to_vmem [thread:$0]  (!%p3045_p5), %s570_s19, 256, %s572_s7, [#allocation18], %s2900_s15, %s2900_s15, %s2901_s4  }
  0x36   : > { %s49_s13 = sadd.s32 1, %s2883_s25  ;;  %s84_s2 = sadd.s32 1, %s2875_s23 }
  0x37   : > { %p51_p7 = scmp.ge.s32.totalorder %s49_s13, 2  ;;  %p91_p8 = scmp.ne.s32.totalorder %s2875_s23, %s2871_s22 }
  0x38   : > { %p92_p9 = scmp.eq.s32.totalorder %s2887_s26, 0  ;;  %p97_p10 = scmp.ne.s32.totalorder %s2871_s22, %s2867_s21 }
  0x39   : > { %s3466_s13 = smov (%p51_p7, %s49_s13), 0  ;;  %s3450_s27 = sadd.s32 4294967295, %s2887_s26  }
  0x3a   : > { %p3126_p11 = por %p92_p9, %p91_p8  ;;  %p3132_p12 = por %p3029_p1, %p97_p10 }
  0x3b   : > { %s81_s20 = ssub.s32 %s2883_s25, %s3466_s13  ;;  %p427_p13 = scmp.eq.s32.totalorder %s3450_s27, 1 }
  0x3c   : > { %p82_p0 = scmp.eq.s32.totalorder %s81_s20, 0  ;;  %p433_p2 = scmp.eq.s32.totalorder %s2070_s30, 1 }
  0x3d   : > { %p3140_p4 = por %p427_p13, %p91_p8  ;;  %p2331_p5 = scmp.lt.s32.totalorder %s2887_s26, 2 }
  0x3e   : > { %s3146_s0 = scalar_select %p82_p0, %s2875_s23, %s84_s2  }
  0x3f   : > { %p3148_p7 = por %p433_p2, %p97_p10  ;;  %s598_s19 = sand.u32 1, %s2875_s23  }
  0x40   : > { %s2082_s18 = sshll.u32 %s598_s19, 2  ;;  %s2083_s7 = sshll.u32 %s2883_s25, 2 }
  0x41   : > { %s606_s27 = scalar_lea.hbm %s3409_s1, %s2083_s7  ;;  %s602_s20 = scalar_lea.vmem [#allocation2], %s2082_s18 }
  0x42   : > { %s610_s30 = sshll.u32 %s602_s20, 4  ;;  %s608_s6 = sshll.u32 %s606_s27, 4  ;;  %s611_s30 = int_to_ptr.vmem [resolvable:$true] %s610_s30  ;;  %s609_s6 = int_to_ptr.hbm [resolvable:$true] %s608_s6 }
  0x43   : > { %p2315_p8 = pnand %p2331_p5, %p3126_p11  ;;  %s599_s2 = scalar_lea.sflag [#allocation3], %s598_s19 }
  0x44   : > { %633 = sbr.rel (%p3037_p3) target bundleno = 3023 (0xbcf), region = 84  ;;  %s3162_s8 = sand.u32 (!%p3037_p3), 1, %s2871_s22  }
  0x45   : > { %2317 = dma.hbm_to_vmem [thread:$0]  (!%p2315_p8), %s609_s6, 64, %s611_s30, %s599_s2  }
  0x46   : > { %s2085_s15 = sshll.u32 (!%p3037_p3), %s3162_s8, 2  ;;  %s636_s7 = scalar_lea.sflag (!%p3037_p3), [#allocation3], %s3162_s8 }
  0x47   : > { %s639_s18 = scalar_lea.vmem (!%p3037_p3), [#allocation2], %s2085_s15 }
  0x49   : > { %2838 = dma.done.wait (%p3132_p12), %s636_s7, 64  }
  0x4a   : > { %2840 = vsyncadd (%p3132_p12), %s636_s7, 4294967232 }
  0x4b   : > { %2842 = dma.done.wait (%p3029_p1), [#allocation6], 512  }
  0x4c   : > { %2844 = vsyncadd (%p3029_p1), [#allocation6], 4294966784 }
  0x4d   : > { %2846 = dma.done.wait (%p3029_p1), [#allocation9], 512  }
  0x4e   : > { %2848 = vsyncadd (%p3029_p1), [#allocation9], 4294966784 }
  0x4f   : > { %2850 = dma.done.wait (%p3029_p1), [#allocation12], 512  }
  0x50   : > { %2852 = vsyncadd (%p3029_p1), [#allocation12], 4294966784 }
  0x51   : > { %2854 = dma.done.wait (%p3029_p1), [#allocation15], 512  }
  0x52   : > { %2856 = vsyncadd (%p3029_p1), [#allocation15], 4294966784 }
  0x53   : > { %2858 = dma.done.wait (%p3029_p1), [#allocation18], 256  }
  0x54   : > { %2860 = vsyncadd (%p3029_p1), [#allocation18], 4294967040  ;;  %p749_p3 = scmp.lt.s32.totalorder %s2879_s24, 1  ;;  %s3453_s19 = sld [smem:[#allocation27_spill]]  ;;  %v2227_v1 = vld [vmem:[#allocation5 + $0x8] sm:$0xff]  ;;  %v2226_v3 = vld [vmem:[#allocation5] sm:$0xff]  ;;  %v774_v42 = vlaneseq }
  0x55   : > { %s3454_s30 = sld [smem:[#allocation30_spill]]  ;;  %842 = vmatpush.bf16.msra.mxu1 %v2227_v1  ;;  %vm800_vm0 = vcmask 261120   ;;  %v766_v6 = vld [vmem:[%s639_s18] sm:$0xf]  ;;  %v3212_v7 = vld [vmem:[#allocation17] sm:$0xff]  ;;  %vm921_vm1 = vcmask 64512  }
  0x56   : > { %s3192_s6 = scalar_select %p749_p3, %s2879_s24, 1  ;;  %v787_v8 = vperm.slane %v3212_v7, 0  ;;  %v2229_v17 = vld [vmem:[#allocation7 + $0x8] sm:$0xff]  ;;  %v2228_v18 = vld [vmem:[#allocation7] sm:$0xff]  ;;  %v853_v36 = vperm.slane %v3212_v7, 1  ;;  %vm1041_vm2 = vcmask 1043456  }
  0x57   : > { %s2902_s15 = smov 120   ;;  %s2903_s7 = smov 104   ;;  %872 = vmatpush.bf16.msra.mxu2 %v2229_v17  ;;  %v775_v43 = vshrl.u32 %v774_v42, 7  ;;  %v779_v44 = vand.u32 127, %v774_v42  ;;  %v2905_v45 = vmov -1e+09  }
  0x58   : > { %s2096_s17 = sshll.u32 %s3192_s6, 3  ;;  %s2904_s18 = smov 112   ;;  %vm1136_vm4 = vcmask 130048   ;;  %vm1138_vm5 = vcmask 195584  }
  0x59   : > { %843 = vmatpush.bf16.msra.mxu1 %v2226_v3  ;;  %vm780_vm3 = vcmp.ge.s32.totalorder %v775_v43, %v779_v44  ;;  %s2906_s5 = smov 24   ;;  %s2907_s16 = smov 16  }
  0x5a   : > { %s755_s4 = scalar_lea.vmem %s3453_s19, %s2096_s17  ;;  %v781_v46 = vsel %vm780_vm3, 0.0, %v2905_v45  ;;  %s2908_s19 = smov 8  }
  0x5b   : > { %v2225_v0 = vld [vmem:[%s3454_s30 + $0x8] sm:$0xff]  ;;  %v2224_v2 = vld [vmem:[%s3454_s30] sm:$0xff]  ;;  %873 = vmatpush.bf16.msra.mxu2 %v2228_v18  ;;  %s3455_s20 = sld [smem:[#allocation28_spill]] }
  0x5c   : > { %810 = vmatpush.bf16.msra.mxu0 %v2225_v0  ;;  %v3206_v4 = vld [vmem:[%s755_s4] sm:$0xff]  ;;  %2116 = vmatmul.msk.bf16.vlgmr.msra.gmra.mxu1 %vm800_vm0, %v766_v6  ;;  %s3456_s4 = sld [smem:[#allocation29_spill]] }
  0x5d   : > { %v782_v5 = vpack.c.bf16 %v3206_v4, %v3206_v4 }
  0x5e   : > { %2125 = vmatmul.msk.bf16.vlgmr.msra.gmra.mxu2 %vm800_vm0, %v766_v6 }
  0x60   : > { %811 = vmatpush.bf16.msra.mxu0 %v2224_v2 }
  0x61   : > { %s760_s28 = scalar_lea.vmem %s3455_s20, %s2096_s17 }
  0x62   : > { %s763_s27 = scalar_lea.vmem %s3456_s4, %s3192_s6  ;;  %s2095_s6 = sshll.u32 %s3162_s8, 3 }
  0x63   : > { %2107 = vmatmul.msk.bf16.vlgmr.msra.gmra.mxu0 %vm800_vm0, %v782_v5  ;;  %s748_s17 = scalar_lea.vmem [#allocation19], %s2095_s6 }
  0x64   : > { %s1865_s2 = sshll.u32 %s748_s17, 4  ;;  %s1866_s2 = int_to_ptr.vmem [resolvable:$true] %s1865_s2 }
  0xd9   : > { %v845_v10 = vpop.f32.mrf.mxu1 }
  0xda   : > { %894 = vrot.lane.b32.xlu1 %v845_v10, %s2902_s15  ;;  %900 = vrot.lane.b32.xlu0 %v845_v10, %s2903_s7  ;;  %v903_v12 = vpack.c.bf16 %v845_v10, %v845_v10 }
  0xdc   : > { %v926_v13 = vsel %vm921_vm1, %v903_v12, 0 }
  0xdd   : > { %935 = vmatpush.bf16.xpose.msra.mxu3 %v926_v13 }
  0xe0   : > { %v813_v9 = vpop.f32.mrf.mxu0 }
  0xe1   : > { %v814_v11 = vadd.f32 %v813_v9, %v787_v8  ;;  %v847_v16 = vpop.f32.mrf.mxu1  ;;  %v875_v37 = vpop.f32.mrf.mxu2 }
  0xe2   : > { %897 = vrot.lane.b32.xlu1 %v845_v10, %s2904_s18  ;;  %v876_v38 = vadd.f32 %v875_v37, %v853_v36 }
  0xe3   : > { %880 = vrot.lane.b32.xlu2 %v814_v11, %s2902_s15  ;;  %v889_v14 = vpack.c.bf16 %v814_v11, %v814_v11  ;;  %886 = vrot.lane.b32.xlu0 %v814_v11, %s2903_s7 }
  0xe4   : > { %v917_v39 = vpack.c.bf16 %v876_v38, %v876_v38 }
  0xe5   : > { %2126 = vmatmul.msk.bf16.vlgmr.msra.gmra.mxu3 %vm921_vm1, %v889_v14 }
  0xe6   : > { %v1043_v40 = vsel %vm1041_vm2, %v917_v39, 0 }
  0xe7   : > { %1052 = vmatpush.bf16.msrb.mxu3 %v1043_v40 }
  0xe8   : > { %v815_v15 = vpop.f32.mrf.mxu0 }
  0xe9   : > { %v877_v41 = vpop.f32.mrf.mxu2 }
  0xeb   : > { %883 = vrot.lane.b32.xlu2 %v814_v11, %s2904_s18 }
 0x13d   : > { %v881_v25 = vpop.permute.xlu2 %880 }
 0x13e   : > { %v890_v28 = vpack.c.bf16 %v881_v25, %v881_v25 }
 0x145   : > { %v884_v32 = vpop.permute.xlu2 %883 }
 0x146   : > { %v891_v33 = vpack.c.bf16 %v884_v32, %v884_v32 }
 0x14c   : > { %v895_v19 = vpop.permute.xlu1 %894  ;;  %v901_v20 = vpop.permute.xlu0 %900 }
 0x14d   : > { %v904_v21 = vpack.c.bf16 %v895_v19, %v895_v19  ;;  %v906_v22 = vpack.c.bf16 %v901_v20, %v901_v20 }
 0x14f   : > { %v945_v23 = vsel %vm921_vm1, %v904_v21, 0  ;;  %v983_v24 = vsel %vm921_vm1, %v906_v22, 0 }
 0x150   : > { %954 = vmatpush.bf16.xpose.msrb.mxu0 %v945_v23  ;;  %992 = vmatpush.bf16.xpose.msrb.mxu2 %v983_v24 }
 0x154   : > { %v898_v26 = vpop.permute.xlu1 %897 }
 0x155   : > { %v887_v27 = vpop.permute.xlu0 %886  ;;  %v905_v29 = vpack.c.bf16 %v898_v26, %v898_v26 }
 0x156   : > { %v892_v30 = vpack.c.bf16 %v887_v27, %v887_v27 }
 0x157   : > { %2127 = vmatmul.msk.bf16.vlgmr.msrb.gmra.mxu0 %vm921_vm1, %v890_v28  ;;  %v964_v31 = vsel %vm921_vm1, %v905_v29, 0 }
 0x158   : > { %2129 = vmatmul.msk.bf16.vlgmr.msrb.gmra.mxu2 %vm921_vm1, %v892_v30  ;;  %973 = vmatpush.bf16.xpose.msrb.mxu1 %v964_v31 }
 0x15f   : > { %2128 = vmatmul.msk.bf16.vlgmr.msrb.gmra.mxu1 %vm921_vm1, %v891_v33 }
 0x168   : > { %v937_v34 = vpop.f32.mrf.mxu3 }
 0x169   : > { %v938_v59 = vadd.f32 %v937_v34, %v781_v46 }
 0x16b   : > { %v998_v60 = vsel %vm921_vm1, %v938_v59, -inf }
 0x170   : > { %v939_v35 = vpop.f32.mrf.mxu3 }
 0x1d4   : > { %v956_v47 = vpop.f32.mrf.mxu0 }
 0x1d5   : > { %v957_v48 = vadd.f32 %v956_v47, %v781_v46 }
 0x1d7   : > { %v1001_v49 = vsel %vm921_vm1, %v957_v48, -inf }
 0x1d8   : > { %1002 = vmax.xlane.f32.xlu1 %v1001_v49 }
 0x1db   : > { %v994_v50 = vpop.f32.mrf.mxu2 }
 0x1dc   : > { %v995_v51 = vadd.f32 %v994_v50, %v781_v46  ;;  %v958_v52 = vpop.f32.mrf.mxu0  ;;  %v975_v53 = vpop.f32.mrf.mxu1  ;;  %v2230_v50 = vld [vmem:[#allocation8] sm:$0xff] }
 0x1dd   : > { %v976_v54 = vadd.f32 %v975_v53, %v781_v46 }
 0x1de   : > { %v1007_v55 = vsel %vm921_vm1, %v995_v51, -inf }
 0x1df   : > { %1008 = vmax.xlane.f32.xlu0 %v1007_v55  ;;  %v1004_v56 = vsel %vm921_vm1, %v976_v54, -inf }
 0x1e0   : > { %1005 = vmax.xlane.f32.xlu2 %v1004_v56 }
 0x1e3   : > { %v996_v57 = vpop.f32.mrf.mxu2 }
 0x1e4   : > { %v977_v58 = vpop.f32.mrf.mxu1 }
 0x1f1   : > { %911 = vrot.lane.b32.xlu1 %v876_v38, %s2904_s18 }
 0x1f3   : > { %908 = vrot.lane.b32.xlu0 %v876_v38, %s2902_s15 }
 0x1f8   : > { %914 = vrot.lane.b32.xlu2 %v876_v38, %s2903_s7 }
 0x21d   : > { %999 = vmax.xlane.f32.xlu0 %v998_v60 }
 0x24b   : > { %v1003_v61 = vpop.xlane.xlu1 %1002 }
 0x24c   : > { %v1011_v62 = vsub.f32 %v957_v48, %v1003_v61  ;;  %v2231_v48 = vld [vmem:[#allocation8 + $0x8] sm:$0xff]  ;;  %v1145_v61 = vperm.slane %v3212_v7, 2 }
 0x24d   : > { %1167 = vmatpush.bf16.msra.mxu3 %v2231_v48 }
 0x24e   : > { %v1016_v63 = vmul.f32 1.442695, %v1011_v62 }
 0x250   : > { %2443 = vpow2.f32 %v1016_v63 }
 0x251   : > { %1168 = vmatpush.bf16.msra.mxu3 %v2230_v50  ;;  %v2236_v50 = vld [vmem:[#allocation13] sm:$0xff] }
 0x252   : > { %v1009_v0 = vpop.xlane.xlu0 %1008 }
 0x253   : > { %v1013_v1 = vsub.f32 %v995_v51, %v1009_v0  ;;  %v1006_v2 = vpop.xlane.xlu2 %1005 }
 0x254   : > { %v1012_v5 = vsub.f32 %v976_v54, %v1006_v2 }
 0x255   : > { %v1020_v3 = vmul.f32 1.442695, %v1013_v1 }
 0x256   : > { %v2444_v6 = vpop.eup %2443  ;;  %v1018_v8 = vmul.f32 1.442695, %v1012_v5  ;;  %v2235_v5 = vld [vmem:[#allocation11 + $0x8] sm:$0xff] }
 0x257   : > { %2445 = vpow2.f32 %v1020_v3  ;;  %v1025_v9 = vsel %vm921_vm1, %v2444_v6, 0.0  ;;  %v1035_v25 = vpack.c.bf16 %v2444_v6, %v2444_v6  ;;  %v2909_v3 = vmov 32.0   ;;  %v2234_v6 = vld [vmem:[#allocation11] sm:$0xff] }
 0x258   : > { %2447 = vpow2.f32 %v1018_v8  ;;  %1026 = vadd.xlane.f32.xlu2 %v1025_v9  ;;  %v3265_v9 = vld [vmem:[%s760_s28] sm:$0xff] }
 0x25b   : > { %v915_v10 = vpop.permute.xlu2 %914 }
 0x25c   : > { %v920_v12 = vpack.c.bf16 %v915_v10, %v915_v10 }
 0x25d   : > { %v2446_v11 = vpop.eup %2445 }
 0x25e   : > { %v1031_v13 = vsel %vm921_vm1, %v2446_v11, 0.0  ;;  %v2448_v14 = vpop.eup %2447  ;;  %v1100_v15 = vsel %vm1041_vm2, %v920_v12, 0  ;;  %v1037_v17 = vpack.c.bf16 %v2446_v11, %v2446_v11 }
 0x25f   : > { %1032 = vadd.xlane.f32.xlu0 %v1031_v13  ;;  %1109 = vmatpush.bf16.msra.mxu2 %v1100_v15  ;;  %v1028_v16 = vsel %vm921_vm1, %v2448_v14, 0.0  ;;  %v1036_v24 = vpack.c.bf16 %v2448_v14, %v2448_v14 }
 0x260   : > { %1029 = vadd.xlane.f32.xlu1 %v1028_v16 }
 0x262   : > { %2133 = vmatmul.msk.bf16.vlgmr.msra.gmra.mxu2 %vm921_vm1, %v1037_v17 }
 0x263   : > { %v912_v18 = vpop.permute.xlu1 %911 }
 0x264   : > { %v919_v19 = vpack.c.bf16 %v912_v18, %v912_v18 }
 0x265   : > { %v909_v20 = vpop.permute.xlu0 %908 }
 0x266   : > { %v918_v21 = vpack.c.bf16 %v909_v20, %v909_v20  ;;  %v1081_v22 = vsel %vm1041_vm2, %v919_v19, 0  ;;  %v2233_v19 = vld [vmem:[#allocation10 + $0x8] sm:$0xff]  ;;  %v2232_v20 = vld [vmem:[#allocation10] sm:$0xff] }
 0x267   : > { %1090 = vmatpush.bf16.msra.mxu1 %v1081_v22 }
 0x268   : > { %v1062_v23 = vsel %vm1041_vm2, %v918_v21, 0  ;;  %vm1806_vm2 = vcmask 523264  }
 0x269   : > { %1071 = vmatpush.bf16.msra.mxu0 %v1062_v23 }
 0x26a   : > { %2132 = vmatmul.msk.bf16.vlgmr.msra.gmra.mxu1 %vm921_vm1, %v1036_v24 }
 0x26b   : > { %1272 = vmatpush.bf16.msrb.mxu1 %v2235_v5 }
 0x26c   : > { %2131 = vmatmul.msk.bf16.vlgmr.msra.gmra.mxu0 %vm921_vm1, %v1035_v25 }
 0x26d   : > { %1235 = vmatpush.bf16.msrb.mxu0 %v2233_v19 }
 0x26f   : > { %1273 = vmatpush.bf16.msrb.mxu1 %v2234_v6  ;;  %v1213_v6 = vperm.slane %v3212_v7, 5 }
 0x271   : > { %1236 = vmatpush.bf16.msrb.mxu0 %v2232_v20 }
 0x27a   : > { %2164 = vmatmul.msk.bf16.vlgmr.msrb.gmra.mxu1 %vm800_vm0, %v3265_v9 }
 0x290   : > { %v1000_v26 = vpop.xlane.xlu0 %999 }
 0x291   : > { %v1010_v27 = vsub.f32 %v938_v59, %v1000_v26 }
 0x293   : > { %v1014_v28 = vmul.f32 1.442695, %v1010_v27 }
 0x295   : > { %2449 = vpow2.f32 %v1014_v28 }
 0x29b   : > { %v2450_v29 = vpop.eup %2449 }
 0x29c   : > { %v1022_v30 = vsel %vm921_vm1, %v2450_v29, 0.0  ;;  %v1034_v31 = vpack.c.bf16 %v2450_v29, %v2450_v29 }
 0x29d   : > { %1023 = vadd.xlane.f32.xlu2 %v1022_v30 }
 0x29e   : > { %2130 = vmatmul.msk.bf16.vlgmr.msrb.gmra.mxu3 %vm921_vm1, %v1034_v31 }
 0x2cb   : > { %v1027_v34 = vpop.xlane.xlu2 %1026 }
 0x2d2   : > { %v1033_v32 = vpop.xlane.xlu0 %1032 }
 0x2d3   : > { %v1030_v33 = vpop.xlane.xlu1 %1029  ;;  %2451 = vrcp.f32 %v1033_v32 }
 0x2d4   : > { %2453 = vrcp.f32 %v1030_v33 }
 0x2d5   : > { %2455 = vrcp.f32 %v1027_v34 }
 0x2d9   : > { %v2452_v35 = vpop.eup %2451 }
 0x2da   : > { %v2454_v38 = vpop.eup %2453 }
 0x2db   : > { %v2456_v40 = vpop.eup %2455 }
 0x2e5   : > { %v1111_v36 = vpop.f32.mrf.mxu2 }
 0x2e6   : > { %v1122_v37 = vmul.f32 %v2452_v35, %v1111_v36 }
 0x2e7   : > { %v1092_v39 = vpop.f32.mrf.mxu1 }
 0x2e8   : > { %v1121_v41 = vmul.f32 %v2454_v38, %v1092_v39  ;;  %1132 = vrot.lane.b32.xlu2 %v1122_v37, %s2906_s5  ;;  %v1204_v39 = vperm.slane %v3212_v7, 3 }
 0x2e9   : > { %v1073_v42 = vpop.f32.mrf.mxu0 }
 0x2ea   : > { %v1120_v43 = vmul.f32 %v2456_v40, %v1073_v42  ;;  %1128 = vrot.lane.b32.xlu0 %v1121_v41, %s2907_s16  ;;  %v1206_v41 = vperm.slane %v3212_v7, 4 }
 0x2ec   : > { %1124 = vrot.lane.b32.xlu1 %v1120_v43, %s2908_s19 }
 0x2ed   : > { %v1113_v44 = vpop.f32.mrf.mxu2 }
 0x2ef   : > { %v1094_v45 = vpop.f32.mrf.mxu1 }
 0x2f1   : > { %v1075_v46 = vpop.f32.mrf.mxu0 }
 0x2f2   : > { %v2237_v46 = vld [vmem:[#allocation13 + $0x8] sm:$0xff] }
 0x2f3   : > { %1303 = vmatpush.bf16.msrb.mxu2 %v2237_v46 }
 0x2f7   : > { %v1275_v21 = vpop.f32.mrf.mxu1  ;;  %1304 = vmatpush.bf16.msrb.mxu2 %v2236_v50 }
 0x2f8   : > { %v1345_v25 = vpack.c.bf16 %v1275_v21, %v1275_v21 }
 0x2fa   : > { %v1386_v27 = vunpack.c.l.b16 %v1345_v25  ;;  %2173 = vmatmul.msk.bf16.vlgmr.msrb.gmra.mxu2 %vm800_vm0, %v3265_v9  ;;  %v1284_v25 = vperm.slane %v3212_v7, 6 }
 0x2ff   : > { %v1277_v26 = vpop.f32.mrf.mxu1 }
 0x300   : > { %v1346_v28 = vpack.c.bf16 %v1277_v26, %v1277_v26  ;;  %v2411_v29 = vpack.i.bf16 %v1277_v26, %v1275_v21 }
 0x302   : > { %v1387_v30 = vunpack.c.l.b16 %v1346_v28  ;;  %2412 = vrot.lane.b32.xlu2 %v2411_v29, %s2903_s7 }
 0x304   : > { %v1388_v33 = vpack.c.b16 %v1387_v30, %v1386_v27 }
 0x306   : > { %v1393_v35 = vsel %vm921_vm1, %v1388_v33, 0 }
 0x307   : > { %1402 = vmatpush.bf16.xpose.msrb.mxu3 %v1393_v35 }
 0x30a   : > { %2417 = vrot.lane.b32.xlu2 %v2411_v29, %s2902_s15 }
 0x310   : > { %v1024_v51 = vpop.xlane.xlu2 %1023 }
 0x311   : > { %2457 = vrcp.f32 %v1024_v51 }
 0x312   : > { %2459 = vrcp.f32 %v2909_v3  ;;  %2422 = vrot.lane.b32.xlu2 %v2411_v29, %s2904_s18 }
 0x317   : > { %v2458_v52 = vpop.eup %2457 }
 0x318   : > { %v2460_v8 = vpop.eup %2459 }
 0x319   : > { %v1179_v10 = vmul.f32 32.0, %v2460_v8  ;;  %vm1183_vm6 = vweird.f32 %v2460_v8 }
 0x321   : > { %v1054_v47 = vpop.f32.mrf.mxu3 }
 0x322   : > { %v1119_v53 = vmul.f32 %v2458_v52, %v1054_v47 }
 0x329   : > { %v1056_v49 = vpop.f32.mrf.mxu3 }
 0x342   : > { %v1133_v57 = vpop.permute.xlu2 %1132 }
 0x35c   : > { %v1129_v55 = vpop.permute.xlu0 %1128  ;;  %v2413_v47 = vpop.permute.xlu2 %2412 }
 0x35d   : > { %v2415_v48 = vunpack.i.h.bf16 %v2413_v47  ;;  %v2414_v49 = vunpack.i.l.bf16 %v2413_v47 }
 0x35e   : > { %v1125_v54 = vpop.permute.xlu1 %1124 }
 0x35f   : > { %v1135_v56 = vsel %vm921_vm1, %v1119_v53, %v1125_v54  ;;  %v1352_v51 = vpack.c.bf16 %v2415_v48, %v2415_v48  ;;  %v1351_v52 = vpack.c.bf16 %v2414_v49, %v2414_v49 }
 0x360   : > { %v1137_v58 = vsel %vm1136_vm4, %v1135_v56, %v1129_v55 }
 0x361   : > { %v1139_v59 = vsel %vm1138_vm5, %v1137_v58, %v1133_v57  ;;  %v1459_v53 = vunpack.c.l.b16 %v1352_v51  ;;  %v1458_v54 = vunpack.c.l.b16 %v1351_v52 }
 0x362   : > { %v1140_v60 = vpack.c.bf16 %v1139_v59, %v1139_v59 }
 0x363   : > { %v1460_v55 = vpack.c.b16 %v1459_v53, %v1458_v54 }
 0x364   : > { %2142 = vmatmul.msk.bf16.vlgmr.msra.gmra.mxu3 %vm800_vm0, %v1140_v60  ;;  %v2418_v56 = vpop.permute.xlu2 %2417 }
 0x365   : > { %v2420_v57 = vunpack.i.h.bf16 %v2418_v56  ;;  %v2419_v58 = vunpack.i.l.bf16 %v2418_v56  ;;  %v1465_v59 = vsel %vm921_vm1, %v1460_v55, 0 }
 0x366   : > { %1474 = vmatpush.bf16.xpose.msra.mxu2 %v1465_v59 }
 0x367   : > { %v1348_v60 = vpack.c.bf16 %v2420_v57, %v2420_v57 }
 0x3e7   : > { %v1170_v62 = vpop.f32.mrf.mxu3 }
 0x3e8   : > { %v1171_v63 = vadd.f32 %v1170_v62, %v1145_v61  ;;  %v1347_v61 = vpack.c.bf16 %v2419_v58, %v2419_v58  ;;  %v1411_v62 = vunpack.c.l.b16 %v1348_v60 }
 0x3ea   : > { %v1174_v0 = vadd.f32 %v1171_v63, %v3206_v4  ;;  %v1180_v4 = vsub.f32 1.0, %v1179_v10  ;;  %v1410_v63 = vunpack.c.l.b16 %v1347_v61 }
 0x3ec   : > { %v1175_v1 = vsel %vm800_vm0, %v1174_v0, 0.0  ;;  %v1181_v11 = vmul.f32 %v2460_v8, %v1180_v4 }
 0x3ed   : > { %1176 = vadd.xlane.f32.xlu0 %v1175_v1  ;;  %v2423_v1 = vpop.permute.xlu2 %2422 }
 0x3ee   : > { %v1182_v12 = vadd.f32 %v2460_v8, %v1181_v11  ;;  %v2424_v3 = vunpack.i.l.bf16 %v2423_v1 }
 0x3ef   : > { %v1172_v2 = vpop.f32.mrf.mxu3 }
 0x3f0   : > { %v3269_v13 = vsel %vm1183_vm6, %v2460_v8, %v1182_v12  ;;  %v2425_v2 = vunpack.i.h.bf16 %v2423_v1  ;;  %v1349_v9 = vpack.c.bf16 %v2424_v3, %v2424_v3 }
 0x3f2   : > { %v1350_v8 = vpack.c.bf16 %v2425_v2, %v2425_v2  ;;  %v1434_v11 = vunpack.c.l.b16 %v1349_v9 }
 0x3f4   : > { %v1435_v4 = vunpack.c.l.b16 %v1350_v8 }
 0x460   : > { %v1177_v14 = vpop.xlane.xlu0 %1176 }
 0x461   : > { %v1185_v15 = vmul.f32 %v3269_v13, %v1177_v14  ;;  %v1436_v14 = vpack.c.b16 %v1435_v4, %v1434_v11 }
 0x463   : > { %v1186_v16 = vsub.f32 %v1174_v0, %v1185_v15  ;;  %v1412_v0 = vpack.c.b16 %v1411_v62, %v1410_v63 }
 0x465   : > { %v1187_v17 = vmul.f32 %v1186_v16, %v1186_v16  ;;  %v1417_v5 = vsel %vm921_vm1, %v1412_v0, 0 }
 0x466   : > { %1426 = vmatpush.bf16.xpose.msra.mxu0 %v1417_v5 }
 0x467   : > { %v1188_v18 = vsel %vm800_vm0, %v1187_v17, 0.0 }
 0x468   : > { %1189 = vadd.xlane.f32.xlu1 %v1188_v18 }
 0x4db   : > { %v1190_v22 = vpop.xlane.xlu1 %1189 }
 0x4dc   : > { %v1191_v23 = vmul.f32 %v1190_v22, %v3269_v13 }
 0x4de   : > { %v1192_v24 = vadd.f32 1e-05, %v1191_v23 }
 0x4e0   : > { %2461 = vrsqrt.f32 %v1192_v24  ;;  %vm1199_vm8 = vweird.f32 %v1192_v24 }
 0x4e6   : > { %v2462_v31 = vpop.eup %2461 }
 0x4e7   : > { %v1194_v32 = vmul.f32 %v2462_v31, %v1192_v24  ;;  %vm1200_vm7 = vweird.f32 %v2462_v31  ;;  %v1306_v24 = vpop.f32.mrf.mxu2 }
 0x4e8   : > { %vm1201_vm9 = vmor %vm1199_vm8, %vm1200_vm7  ;;  %v1307_v26 = vadd.f32 %v1306_v24, %v1284_v25 }
 0x4e9   : > { %v1195_v34 = vmul.f32 %v2462_v31, %v1194_v32 }
 0x4ea   : > { %v1373_v27 = vpack.c.bf16 %v1307_v26, %v1307_v26 }
 0x4eb   : > { %v1196_v36 = vmul.f32 0.5, %v1195_v34 }
 0x4ec   : > { %v1522_v30 = vunpack.c.l.b16 %v1373_v27 }
 0x4ed   : > { %v1197_v37 = vsub.f32 1.5, %v1196_v36 }
 0x4ef   : > { %v1198_v38 = vmul.f32 %v2462_v31, %v1197_v37  ;;  %v1308_v28 = vpop.f32.mrf.mxu2  ;;  %v2441_v37 = vld [vmem:[%s763_s27] ss:$0 sm:$0xff] }
 0x4f0   : > { %v1309_v29 = vadd.f32 %v1308_v28, %v1284_v25 }
 0x4f1   : > { %v1202_v40 = vsel %vm1201_vm9, %v2462_v31, %v1198_v38 }
 0x4f2   : > { %v1203_v42 = vmul.f32 %v1202_v40, %v1186_v16  ;;  %v1441_v16 = vsel %vm921_vm1, %v1436_v14, 0  ;;  %v1374_v31 = vpack.c.bf16 %v1309_v29, %v1309_v29  ;;  %v2426_v32 = vpack.i.bf16 %v1309_v29, %v1307_v26 }
 0x4f3   : > { %1450 = vmatpush.bf16.xpose.msra.mxu1 %v1441_v16 }
 0x4f4   : > { %v1205_v43 = vmul.f32 %v1204_v39, %v1203_v42  ;;  %v1523_v33 = vunpack.c.l.b16 %v1374_v31  ;;  %2427 = vrot.lane.b32.xlu1 %v2426_v32, %s2903_s7 }
 0x4f6   : > { %v3280_v44 = vadd.f32 %v1206_v41, %v1205_v43  ;;  %v1524_v34 = vpack.c.b16 %v1523_v33, %v1522_v30 }
 0x4f8   : > { %v1208_v45 = vpack.c.bf16 %v3280_v44, %v3280_v44  ;;  %1536 = vmatpush.bf16.msra.mxu3 %v1524_v34 }
 0x4fa   : > { %2151 = vmatmul.msk.bf16.vlgmr.msrb.gmra.mxu0 %vm800_vm0, %v1208_v45 }
 0x4fc   : > { %2432 = vrot.lane.b32.xlu1 %v2426_v32, %s2902_s15 }
 0x566   : > { %v2428_v51 = vpop.permute.xlu1 %2427 }
 0x567   : > { %v2430_v52 = vunpack.i.h.bf16 %v2428_v51  ;;  %v2429_v53 = vunpack.i.l.bf16 %v2428_v51 }
 0x569   : > { %v1380_v55 = vpack.c.bf16 %v2430_v52, %v2430_v52  ;;  %v1379_v56 = vpack.c.bf16 %v2429_v53, %v2429_v53 }
 0x56b   : > { %v1589_v57 = vunpack.c.l.b16 %v1380_v55  ;;  %v1588_v58 = vunpack.c.l.b16 %v1379_v56 }
 0x56d   : > { %v1590_v60 = vpack.c.b16 %v1589_v57, %v1588_v58  ;;  %v2239_v57 = vld [vmem:[#allocation14 + $0x8] sm:$0xff]  ;;  %v2238_v58 = vld [vmem:[#allocation14] sm:$0xff] }
 0x56e   : > { %v2433_v61 = vpop.permute.xlu1 %2432 }
 0x56f   : > { %v2435_v62 = vunpack.i.h.bf16 %v2433_v61  ;;  %v2434_v63 = vunpack.i.l.bf16 %v2433_v61  ;;  %1602 = vmatpush.bf16.msrb.mxu2 %v1590_v60 }
 0x571   : > { %v1376_v0 = vpack.c.bf16 %v2435_v62, %v2435_v62  ;;  %v1375_v1 = vpack.c.bf16 %v2434_v63, %v2434_v63 }
 0x573   : > { %v1545_v2 = vunpack.c.l.b16 %v1376_v0  ;;  %v1544_v3 = vunpack.c.l.b16 %v1375_v1 }
 0x575   : > { %v1546_v5 = vpack.c.b16 %v1545_v2, %v1544_v3 }
 0x577   : > { %v1238_v10 = vpop.f32.mrf.mxu0  ;;  %1558 = vmatpush.bf16.msrb.mxu0 %v1546_v5 }
 0x578   : > { %v1239_v12 = vadd.f32 %v1238_v10, %v1213_v6 }
 0x57a   : > { %v1321_v15 = vpack.c.bf16 %v1239_v12, %v1239_v12  ;;  %1315 = vrot.lane.b32.xlu0 %v1239_v12, %s2904_s18  ;;  %1318 = vrot.lane.b32.xlu2 %v1239_v12, %s2903_s7  ;;  %s3457_s7 = sld [smem:[#allocation36_spill]] }
 0x57c   : > { %2174 = vmatmul.msk.bf16.vlgmr.msrb.gmra.mxu3 %vm921_vm1, %v1321_v15 }
 0x57d   : > { %1658 = vmatpush.bf16.msrb.mxu3 %v2239_v57 }
 0x57f   : > { %v1240_v17 = vpop.f32.mrf.mxu0 }
 0x581   : > { %1659 = vmatpush.bf16.msrb.mxu3 %v2238_v58 }
 0x582   : > { %1312 = vrot.lane.b32.xlu2 %v1239_v12, %s2902_s15  ;;  %s2219_s15 = sshll.u32 %s2879_s24, 3  ;;  %s1852_s24 = scalar_lea.sflag [#allocation4], %s3162_s8 }
 0x5d4   : > { %v1319_v18 = vpop.permute.xlu2 %1318 }
 0x5d5   : > { %v1324_v19 = vpack.c.bf16 %v1319_v18, %v1319_v18 }
 0x5d7   : > { %2177 = vmatmul.msk.bf16.vlgmr.msra.gmra.mxu2 %vm921_vm1, %v1324_v19 }
 0x5dc   : > { %v1313_v20 = vpop.permute.xlu2 %1312 }
 0x5dd   : > { %v1322_v21 = vpack.c.bf16 %v1313_v20, %v1313_v20 }
 0x5df   : > { %2175 = vmatmul.msk.bf16.vlgmr.msra.gmra.mxu0 %vm921_vm1, %v1322_v21 }
 0x5ec   : > { %v1316_v22 = vpop.permute.xlu0 %1315 }
 0x5ed   : > { %v1323_v23 = vpack.c.bf16 %v1316_v22, %v1316_v22 }
 0x5ef   : > { %2176 = vmatmul.msk.bf16.vlgmr.msra.gmra.mxu1 %vm921_vm1, %v1323_v23 }
 0x5ff   : > { %v1404_v35 = vpop.f32.mrf.mxu3 }
 0x600   : > { %v1405_v46 = vadd.f32 %v2441_v37, %v1404_v35 }
 0x602   : > { %v1480_v48 = vsel %vm1136_vm4, %v1405_v46, -inf }
 0x607   : > { %v1406_v36 = vpop.f32.mrf.mxu3 }
 0x65a   : > { %v1476_v38 = vpop.f32.mrf.mxu2 }
 0x65b   : > { %v1477_v39 = vadd.f32 %v2441_v37, %v1476_v38 }
 0x65c   : > { %v1428_v40 = vpop.f32.mrf.mxu0 }
 0x65d   : > { %v1429_v41 = vadd.f32 %v2441_v37, %v1428_v40  ;;  %v1489_v42 = vsel %vm1136_vm4, %v1477_v39, -inf }
 0x65e   : > { %1490 = vmax.xlane.f32.xlu1 %v1489_v42 }
 0x65f   : > { %v1483_v43 = vsel %vm1136_vm4, %v1429_v41, -inf }
 0x660   : > { %1484 = vmax.xlane.f32.xlu2 %v1483_v43 }
 0x662   : > { %v1478_v45 = vpop.f32.mrf.mxu2 }
 0x664   : > { %v1430_v47 = vpop.f32.mrf.mxu0 }
 0x668   : > { %1481 = vmax.xlane.f32.xlu2 %v1480_v48 }
 0x66c   : > { %v1452_v49 = vpop.f32.mrf.mxu1 }
 0x66d   : > { %v1453_v50 = vadd.f32 %v2441_v37, %v1452_v49 }
 0x66f   : > { %v1486_v54 = vsel %vm1136_vm4, %v1453_v50, -inf }
 0x670   : > { %1487 = vmax.xlane.f32.xlu0 %v1486_v54 }
 0x674   : > { %v1454_v59 = vpop.f32.mrf.mxu1 }
 0x677   : > { %2437 = vrot.lane.b32.xlu1 %v2426_v32, %s2904_s18 }
 0x6d1   : > { %v1491_v6 = vpop.xlane.xlu1 %1490 }
 0x6d2   : > { %v1495_v8 = vsub.f32 %v1477_v39, %v1491_v6  ;;  %v1636_v6 = vperm.slane %v3212_v7, 7 }
 0x6d3   : > { %v1485_v9 = vpop.xlane.xlu2 %1484 }
 0x6d4   : > { %v1502_v10 = vmul.f32 1.442695, %v1495_v8  ;;  %v1493_v4 = vsub.f32 %v1429_v41, %v1485_v9 }
 0x6d6   : > { %2463 = vpow2.f32 %v1502_v10  ;;  %v1498_v11 = vmul.f32 1.442695, %v1493_v4 }
 0x6d8   : > { %2465 = vpow2.f32 %v1498_v11 }
 0x6db   : > { %v1482_v12 = vpop.xlane.xlu2 %1481 }
 0x6dc   : > { %v2464_v14 = vpop.eup %2463  ;;  %v1492_v15 = vsub.f32 %v1405_v46, %v1482_v12 }
 0x6dd   : > { %v1519_v16 = vpack.c.bf16 %v2464_v14, %v2464_v14  ;;  %v1513_v38 = vsel %vm1136_vm4, %v2464_v14, 0.0 }
 0x6de   : > { %v2466_v17 = vpop.eup %2465  ;;  %v1496_v18 = vmul.f32 1.442695, %v1492_v15 }
 0x6df   : > { %v1517_v19 = vpack.c.bf16 %v2466_v17, %v2466_v17  ;;  %2181 = vmatmul.msk.bf16.vlgmr.msrb.gmra.mxu2 %vm1136_vm4, %v1519_v16  ;;  %v1507_v20 = vsel %vm1136_vm4, %v2466_v17, 0.0 }
 0x6e0   : > { %2467 = vpow2.f32 %v1496_v18  ;;  %1508 = vadd.xlane.f32.xlu1 %v1507_v20  ;;  %v2241_v18 = vld [vmem:[#allocation16 + $0x8] sm:$0xff] }
 0x6e1   : > { %2179 = vmatmul.msk.bf16.vlgmr.msrb.gmra.mxu0 %vm1136_vm4, %v1517_v19  ;;  %v2240_v19 = vld [vmem:[#allocation16] sm:$0xff] }
 0x6e2   : > { %1721 = vmatpush.bf16.msra.mxu0 %v2241_v18 }
 0x6e3   : > { %v1488_v21 = vpop.xlane.xlu0 %1487 }
 0x6e4   : > { %v1494_v22 = vsub.f32 %v1453_v50, %v1488_v21 }
 0x6e6   : > { %v2468_v23 = vpop.eup %2467  ;;  %v1500_v24 = vmul.f32 1.442695, %v1494_v22  ;;  %1722 = vmatpush.bf16.msra.mxu0 %v2240_v19 }
 0x6e7   : > { %v1516_v25 = vpack.c.bf16 %v2468_v23, %v2468_v23  ;;  %v1504_v26 = vsel %vm1136_vm4, %v2468_v23, 0.0 }
 0x6e8   : > { %2469 = vpow2.f32 %v1500_v24  ;;  %1505 = vadd.xlane.f32.xlu0 %v1504_v26 }
 0x6e9   : > { %2178 = vmatmul.msk.bf16.vlgmr.msra.gmra.mxu3 %vm1136_vm4, %v1516_v25  ;;  %v2438_v27 = vpop.permute.xlu1 %2437  ;;  %v3336_v25 = vld [vmem:[#allocation17 + $0x8] sm:$0xff] }
 0x6ea   : > { %v2440_v28 = vunpack.i.h.bf16 %v2438_v27  ;;  %v2439_v29 = vunpack.i.l.bf16 %v2438_v27 }
 0x6ec   : > { %v1378_v30 = vpack.c.bf16 %v2440_v28, %v2440_v28  ;;  %v1377_v31 = vpack.c.bf16 %v2439_v29, %v2439_v29  ;;  %v1688_v28 = vperm.slane %v3336_v25, 0 }
 0x6ee   : > { %v2470_v32 = vpop.eup %2469  ;;  %v1567_v33 = vunpack.c.l.b16 %v1378_v30  ;;  %v1566_v34 = vunpack.c.l.b16 %v1377_v31  ;;  %v1690_v30 = vperm.slane %v3336_v25, 1 }
 0x6ef   : > { %v1510_v35 = vsel %vm1136_vm4, %v2470_v32, 0.0  ;;  %v1518_v37 = vpack.c.bf16 %v2470_v32, %v2470_v32 }
 0x6f0   : > { %v1568_v36 = vpack.c.b16 %v1567_v33, %v1566_v34  ;;  %1511 = vadd.xlane.f32.xlu2 %v1510_v35  ;;  %v2442_v35 = vld [vmem:[%s3457_s7] ss:$0 sm:$0xff] }
 0x6f2   : > { %1580 = vmatpush.bf16.msrb.mxu1 %v1568_v36 }
 0x6f5   : > { %2180 = vmatmul.msk.bf16.vlgmr.msrb.gmra.mxu1 %vm1136_vm4, %v1518_v37 }
 0x6f8   : > { %1514 = vadd.xlane.f32.xlu2 %v1513_v38 }
 0x753   : > { %v1509_v39 = vpop.xlane.xlu1 %1508 }
 0x754   : > { %2471 = vrcp.f32 %v1509_v39 }
 0x75a   : > { %v2472_v40 = vpop.eup %2471 }
 0x75b   : > { %v1506_v59 = vpop.xlane.xlu0 %1505 }
 0x75e   : > { %v1560_v41 = vpop.f32.mrf.mxu0 }
 0x75f   : > { %v1613_v42 = vmul.f32 %v2472_v40, %v1560_v41 }
 0x761   : > { %1617 = vrot.lane.b32.xlu2 %v1613_v42, %s2908_s19 }
 0x762   : > { %v1604_v43 = vpop.f32.mrf.mxu2 }
 0x763   : > { %v1512_v45 = vpop.xlane.xlu2 %1511 }
 0x764   : > { %2473 = vrcp.f32 %v1512_v45 }
 0x766   : > { %v1562_v46 = vpop.f32.mrf.mxu0 }
 0x76a   : > { %v1606_v47 = vpop.f32.mrf.mxu2  ;;  %v2474_v50 = vpop.eup %2473 }
 0x76b   : > { %v1515_v49 = vpop.xlane.xlu2 %1514 }
 0x76c   : > { %v1538_v48 = vpop.f32.mrf.mxu3  ;;  %2475 = vrcp.f32 %v1515_v49 }
 0x76d   : > { %2477 = vrcp.f32 %v1506_v59 }
 0x772   : > { %v1582_v51 = vpop.f32.mrf.mxu1  ;;  %v2476_v54 = vpop.eup %2475 }
 0x773   : > { %v1614_v52 = vmul.f32 %v2474_v50, %v1582_v51  ;;  %v1615_v56 = vmul.f32 %v2476_v54, %v1604_v43  ;;  %v2478_v61 = vpop.eup %2477 }
 0x774   : > { %v1540_v53 = vpop.f32.mrf.mxu3  ;;  %v1612_v63 = vmul.f32 %v2478_v61, %v1538_v48 }
 0x775   : > { %1621 = vrot.lane.b32.xlu0 %v1614_v52, %s2907_s16  ;;  %s3458_s16 = sld [smem:[#allocation35_spill]] }
 0x77a   : > { %v1584_v55 = vpop.f32.mrf.mxu1 }
 0x77b   : > { %v2245_v42 = vld [vmem:[%s3458_s16 + $0x18] sm:$0xff]  ;;  %v2244_v48 = vld [vmem:[%s3458_s16 + $0x10] sm:$0xff]  ;;  %v2243_v53 = vld [vmem:[%s3458_s16 + $0x8] sm:$0xff] }
 0x77c   : > { %1814 = vmatpush.bf16.msra.mxu1 %v2245_v42  ;;  %v2242_v57 = vld [vmem:[%s3458_s16] sm:$0xff] }
 0x77d   : > { %1625 = vrot.lane.b32.xlu0 %v1615_v56, %s2906_s5  ;;  %s3459_s5 = sld [smem:[#allocation37_spill]] }
 0x780   : > { %1815 = vmatpush.bf16.msra.mxu1 %v2244_v48 }
 0x783   : > { %s1863_s19 = scalar_lea.hbm %s3459_s5, %s2219_s15  ;;  %s2805_s6 = scalar_lea.hbm %s3459_s5, 16 }
 0x784   : > { %1816 = vmatpush.bf16.msra.mxu1 %v2243_v53  ;;  %s1867_s27 = sshll.u32 %s1863_s19, 4  ;;  %s1868_s27 = int_to_ptr.hbm [resolvable:$true] %s1867_s27 }
 0x785   : > { %s2799_s20 = sshra.s32 %s1868_s27, 4  ;;  %s2800_s20 = int_to_ptr.hbm [resolvable:$true] %s2799_s20 }
 0x786   : > { %s2801_s28 = scalar_lea.hbm %s2800_s20, 8  ;;  %p2806_p11 = scmp.lt.s32.totalorder %s2800_s20, %s3459_s5 }
 0x787   : > { %p2802_p1 = scmp.ne.s32.totalorder %s2800_s20, %s2801_s28  ;;  %p2807_p12 = scmp.lt.s32.totalorder %s2805_s6, %s2801_s28 }
 0x788   : > { %1817 = vmatpush.bf16.msra.mxu1 %v2242_v57 }
 0x789   : > { %p2803_p9 = pnand %p2802_p1, %p3140_p4  ;;  %p2808_p13 = por %p2807_p12, %p2806_p11 }
 0x78b   : > { %p2804_p10 = pneg %p2803_p9 }
 0x78d   : > { %p2809_p0 = pnand %p2808_p13, %p2804_p10 }
 0x7bb   : > { %v1618_v62 = vpop.permute.xlu2 %1617 }
 0x7bc   : > { %v1628_v0 = vsel %vm921_vm1, %v1612_v63, %v1618_v62 }
 0x7e7   : > { %v1622_v60 = vpop.permute.xlu0 %1621 }
 0x7e8   : > { %v1629_v1 = vsel %vm1136_vm4, %v1628_v0, %v1622_v60 }
 0x7ef   : > { %v1626_v2 = vpop.permute.xlu0 %1625 }
 0x7f0   : > { %v1630_v3 = vsel %vm1138_vm5, %v1629_v1, %v1626_v2 }
 0x7f1   : > { %v1631_v5 = vpack.c.bf16 %v1630_v3, %v1630_v3 }
 0x7f3   : > { %2190 = vmatmul.msk.bf16.vlgmr.msrb.gmra.mxu3 %vm800_vm0, %v1631_v5 }
 0x876   : > { %v1661_v8 = vpop.f32.mrf.mxu3 }
 0x877   : > { %v1662_v9 = vadd.f32 %v1661_v8, %v1636_v6 }
 0x879   : > { %v1665_v10 = vadd.f32 %v1662_v9, %v3280_v44 }
 0x87b   : > { %v1666_v4 = vsel %vm800_vm0, %v1665_v10, 0.0 }
 0x87c   : > { %1667 = vadd.xlane.f32.xlu1 %v1666_v4 }
 0x87e   : > { %v1663_v11 = vpop.f32.mrf.mxu3 }
 0x8ef   : > { %v1668_v12 = vpop.xlane.xlu1 %1667 }
 0x8f0   : > { %v1669_v14 = vmul.f32 %v1668_v12, %v3269_v13 }
 0x8f2   : > { %v1670_v15 = vsub.f32 %v1665_v10, %v1669_v14 }
 0x8f4   : > { %v1671_v16 = vmul.f32 %v1670_v15, %v1670_v15 }
 0x8f6   : > { %v1672_v17 = vsel %vm800_vm0, %v1671_v16, 0.0 }
 0x8f7   : > { %1673 = vadd.xlane.f32.xlu2 %v1672_v17 }
 0x96a   : > { %v1674_v7 = vpop.xlane.xlu2 %1673 }
 0x96b   : > { %v1675_v20 = vmul.f32 %v1674_v7, %v3269_v13 }
 0x96d   : > { %v1676_v44 = vadd.f32 1e-05, %v1675_v20 }
 0x96f   : > { %2479 = vrsqrt.f32 %v1676_v44  ;;  %vm1683_vm11 = vweird.f32 %v1676_v44 }
 0x975   : > { %v2480_v21 = vpop.eup %2479 }
 0x976   : > { %v1678_v22 = vmul.f32 %v2480_v21, %v1676_v44  ;;  %vm1684_vm10 = vweird.f32 %v2480_v21  ;;  %v1781_v44 = vperm.slane %v3336_v25, 2 }
 0x977   : > { %vm1685_vm12 = vmor %vm1683_vm11, %vm1684_vm10 }
 0x978   : > { %v1679_v23 = vmul.f32 %v2480_v21, %v1678_v22 }
 0x97a   : > { %v1680_v24 = vmul.f32 0.5, %v1679_v23 }
 0x97c   : > { %v1681_v26 = vsub.f32 1.5, %v1680_v24 }
 0x97e   : > { %v1682_v27 = vmul.f32 %v2480_v21, %v1681_v26 }
 0x980   : > { %v1686_v29 = vsel %vm1685_vm12, %v2480_v21, %v1682_v27 }
 0x981   : > { %v1687_v31 = vmul.f32 %v1686_v29, %v1670_v15 }
 0x983   : > { %v1689_v32 = vmul.f32 %v1688_v28, %v1687_v31 }
 0x985   : > { %v3340_v33 = vadd.f32 %v1690_v30, %v1689_v32 }
 0x987   : > { %v1692_v34 = vpack.c.bf16 %v3340_v33, %v3340_v33 }
 0x989   : > { %2199 = vmatmul.msk.bf16.vlgmr.msra.gmra.mxu0 %vm800_vm0, %v1692_v34 }
 0xa06   : > { %v1724_v36 = vpop.f32.mrf.mxu0 }
 0xa07   : > { %v1725_v37 = vadd.f32 %v2442_v35, %v1724_v36 }
 0xa09   : > { %v1729_v38 = vmul.f32 0.70710677, %v1725_v37  ;;  %v1728_v18 = vmul.f32 0.5, %v1725_v37 }
 0xa0b   : > { %v1730_v39 = vmul.f32 %v1729_v38, %v1729_v38 }
 0xa0d   : > { %v1731_v40 = vmin.f32 %v1730_v39, 16.0 }
 0xa0e   : > { %v1726_v41 = vpop.f32.mrf.mxu0 }
 0xa0f   : > { %v1732_v43 = vmul.f32 2.1237322e-06, %v1731_v40  ;;  %v1743_v45 = vmul.f32 3.8918573e-05, %v1731_v40  ;;  %v1846_v41 = vperm.slane %v3336_v25, 3 }
 0xa11   : > { %v1733_v46 = vadd.f32 0.00028619796, %v1732_v43  ;;  %v1744_v47 = vadd.f32 0.001143296, %v1743_v45  ;;  %v1848_v43 = vperm.slane %v3336_v25, 4 }
 0xa13   : > { %v1734_v49 = vmul.f32 %v1733_v46, %v1731_v40  ;;  %v1745_v50 = vmul.f32 %v1744_v47, %v1731_v40 }
 0xa15   : > { %v1746_v51 = vadd.f32 0.014752088, %v1745_v50  ;;  %v1735_v52 = vadd.f32 0.0036580483, %v1734_v49 }
 0xa17   : > { %v1747_v54 = vmul.f32 %v1746_v51, %v1731_v40  ;;  %v1736_v56 = vmul.f32 %v1735_v52, %v1731_v40 }
 0xa19   : > { %v1748_v55 = vadd.f32 0.112945676, %v1747_v54  ;;  %v1737_v60 = vadd.f32 0.05243302, %v1736_v56 }
 0xa1b   : > { %v1749_v58 = vmul.f32 %v1748_v55, %v1731_v40  ;;  %v1738_v63 = vmul.f32 %v1737_v60, %v1731_v40 }
 0xa1d   : > { %v1750_v59 = vadd.f32 0.4994258, %v1749_v58  ;;  %v1739_v0 = vadd.f32 0.18741608, %v1738_v63 }
 0xa1f   : > { %v1751_v61 = vmul.f32 %v1750_v59, %v1731_v40  ;;  %v1740_v2 = vmul.f32 %v1739_v0, %v1731_v40 }
 0xa21   : > { %v1752_v62 = vadd.f32 1.0, %v1751_v61  ;;  %v1741_v8 = vadd.f32 1.1283791, %v1740_v2 }
 0xa23   : > { %2481 = vrcp.f32 %v1752_v62  ;;  %v1764_v6 = vand.u32 2147483648, %v1752_v62  ;;  %v1762_v10 = vand.u32 2147483647, %v1752_v62  ;;  %vm1758_vm14 = vweird.f32 %v1752_v62 }
 0xa24   : > { %v1742_v12 = vmul.f32 %v1741_v8, %v1729_v38 }
 0xa25   : > { %v1765_v11 = vor.u32 1.1754944e-38, %v1764_v6  ;;  %vm1763_vm1 = vcmp.eq.f32.partialorder %v1762_v10, 8.507059e+37 }
 0xa29   : > { %v2482_v1 = vpop.eup %2481 }
 0xa2a   : > { %v1754_v3 = vmul.f32 %v2482_v1, %v1752_v62  ;;  %vm1759_vm13 = vweird.f32 %v2482_v1 }
 0xa2b   : > { %vm1760_vm15 = vmor %vm1758_vm14, %vm1759_vm13 }
 0xa2c   : > { %v1755_v5 = vsub.f32 1.0, %v1754_v3 }
 0xa2e   : > { %v1756_v9 = vmul.f32 %v2482_v1, %v1755_v5 }
 0xa30   : > { %v1757_v4 = vadd.f32 %v2482_v1, %v1756_v9 }
 0xa32   : > { %v1761_v14 = vsel %vm1760_vm15, %v2482_v1, %v1757_v4 }
 0xa33   : > { %v1766_v15 = vsel %vm1763_vm1, %v1765_v11, %v1761_v14 }
 0xa34   : > { %v1767_v16 = vmul.f32 %v1766_v15, %v1742_v12 }
 0xa36   : > { %v2200_v17 = vclamps-f32 %v1767_v16, 1.0 }
 0xa38   : > { %v1770_v19 = vadd.f32 1.0, %v2200_v17 }
 0xa3a   : > { %v1771_v7 = vmul.f32 %v1770_v19, %v1728_v18 }
 0xa3c   : > { %v1772_v20 = vpack.c.bf16 %v1771_v7, %v1771_v7 }
 0xa3e   : > { %2217 = vmatmul.msk.bf16.vlgmr.msra.gmra.mxu1 %vm1806_vm2, %v1772_v20 }
 0xabb   : > { %v1819_v21 = vpop.f32.mrf.mxu1 }
 0xabc   : > { %v1820_v22 = vadd.f32 %v1819_v21, %v1781_v44 }
 0xabe   : > { %v1823_v23 = vadd.f32 %v1820_v22, %v3340_v33 }
 0xac0   : > { %v1824_v24 = vsel %vm800_vm0, %v1823_v23, 0.0 }
 0xac1   : > { %1825 = vadd.xlane.f32.xlu0 %v1824_v24 }
 0xac3   : > { %v1821_v26 = vpop.f32.mrf.mxu1 }
 0xb34   : > { %v1826_v27 = vpop.xlane.xlu0 %1825 }
 0xb35   : > { %v1827_v28 = vmul.f32 %v1826_v27, %v3269_v13 }
 0xb37   : > { %v1828_v29 = vsub.f32 %v1823_v23, %v1827_v28 }
 0xb39   : > { %v1829_v30 = vmul.f32 %v1828_v29, %v1828_v29 }
 0xb3b   : > { %v1830_v31 = vsel %vm800_vm0, %v1829_v30, 0.0 }
 0xb3c   : > { %1831 = vadd.xlane.f32.xlu1 %v1830_v31 }
 0xbaf   : > { %v1832_v32 = vpop.xlane.xlu1 %1831 }
 0xbb0   : > { %v1833_v34 = vmul.f32 %v1832_v32, %v3269_v13 }
 0xbb2   : > { %v1834_v35 = vadd.f32 1e-05, %v1833_v34 }
 0xbb4   : > { %2483 = vrsqrt.f32 %v1834_v35  ;;  %vm1841_vm4 = vweird.f32 %v1834_v35 }
 0xbba   : > { %v2484_v33 = vpop.eup %2483 }
 0xbbb   : > { %v1836_v36 = vmul.f32 %v2484_v33, %v1834_v35  ;;  %vm1842_vm3 = vweird.f32 %v2484_v33 }
 0xbbc   : > { %vm1843_vm5 = vmor %vm1841_vm4, %vm1842_vm3 }
 0xbbd   : > { %v1837_v37 = vmul.f32 %v2484_v33, %v1836_v36 }
 0xbbf   : > { %v1838_v38 = vmul.f32 0.5, %v1837_v37 }
 0xbc1   : > { %v1839_v39 = vsub.f32 1.5, %v1838_v38 }
 0xbc3   : > { %v1840_v40 = vmul.f32 %v2484_v33, %v1839_v39 }
 0xbc5   : > { %v1844_v13 = vsel %vm1843_vm5, %v2484_v33, %v1840_v40 }
 0xbc6   : > { %v1845_v42 = vmul.f32 %v1844_v13, %v1828_v29 }
 0xbc8   : > { %v1847_v45 = vmul.f32 %v1846_v41, %v1845_v42 }
 0xbca   : > { %v1849_v46 = vadd.f32 %v1848_v43, %v1847_v45 }
 0xbcc   : > { %1850 = vst.msk [vmem:[%s748_s17] sm:$0xff] %vm800_vm0, %v1849_v46 }
 0xbcd   : > { %2812 = shalt.err (!%p2809_p0)
}
 0xbce   : > { %2284 = dma.vmem_to_hbm [thread:$0]  (%p3140_p4), %s1866_s2, 128, %s1868_s27, %s1852_s24  }
 0xbcf PF: > { %s1879_s8 = sand.u32 1, %s2867_s21   ;;  %p2319_p2 = pnand %p2081_p6, %p3148_p7 }
 0xbd0   : > { %s1880_s17 = scalar_lea.sflag [#allocation4], %s1879_s8 }
 0xbd1   : > { %p2320_p5 = pneg %p2319_p2 }
 0xbd3   : > { %2862 = dma.done.wait (%p2320_p5), %s1880_s17, 128  }
 0xbd4   : > { %2864 = vsyncadd (%p2320_p5), %s1880_s17, 4294967168  ;;  %s37_s26 = sadd.s32 1, %s2887_s26   ;;  %s3460_s21 = smov %s2871_s22 }
 0xbd5   : > { %p34_p8 = scmp.ge.s32.totalorder %s37_s26, 4   ;;  %s3461_s22 = smov %s2875_s23 }
 0xbd6   : > { %s3462_s23 = smov %s3146_s0  ;;  %s3463_s24 = smov %s2883_s25 }
 0xbd7   : > { %s3464_s25 = smov %s3466_s13  ;;  %36 = sbr.rel (!%p34_p8) target bundleno = 23 (0x17), region = 174 }
 0xbdc   :  { %1886 = vsyncpa [#allocation3], 1 }
 0xbdd   :  { %1888 = vsyncpa [#allocation3 + $0x1], 1 }
 0xbde   :  { %1889 = vsyncpa [#allocation6], 1 }
 0xbdf   :  { %1890 = vsyncpa [#allocation9], 1 }
 0xbe0   :  { %1891 = vsyncpa [#allocation12], 1 }
 0xbe1   :  { %1892 = vsyncpa [#allocation15], 1 }
 0xbe2   :  { %1893 = vsyncpa [#allocation18], 1 }
 0xbe3   :  { %1894 = vsyncpa [#allocation4], 1 }
 0xbe4   :  { %1896 = vsyncpa [#allocation4 + $0x1], 1 }

</bundles_post_ra>
